<compile_context>
chip_gen: v6e
topology: v6e:2x2x1
jax: 0.10.0
libtpu: 0.0.40
codegen_flags: <defaults>
</compile_context>

<pallas_src>
import functools

import jax
import jax.numpy as jnp
import numpy as np
from jax import lax
from jax.experimental import pallas as pl
from jax.experimental.pallas import tpu as pltpu

C_CHANNELS = 64                                   # Down2d(channels=64)
GROUPS = 16
REDUCTION = 8
C_MID = GROUPS * (C_CHANNELS // 2 // GROUPS)      # 32
C_SE = C_CHANNELS // REDUCTION                    # 8
BN_EPS = 1e-5


def _round_up(x, m):
  return (x + m - 1) // m * m


# ---------------------------------------------------------------------------
# The single fused kernel: one grid step == one image, everything stays in VMEM
# ---------------------------------------------------------------------------
def _down2d_kernel(x_ref, w1_ref, b1_ref, w2_ref, b2_ref, w3_ref, b3_ref,
                   ws_ref, bs_ref, sw1_ref, sb1_ref, sw2_ref, sb2_ref,
                   o_ref, spad_ref, *, H, W, CM):
  HW = H * W
  Ho, Wo = H // 2, W // 2
  base = _round_up(W + 1, 8)          # aligned offset of image row 0 inside the halo pad

  x2d = x_ref[...]                    # (HW, C) f32, raster order: row = h*W + w

  # ---- conv1: 1x1 ConvBR2d (BN folded) + ReLU -------------------------------------
  s = jnp.dot(x2d, w1_ref[...], preferred_element_type=jnp.float32) + b1_ref[...]
  s = jnp.maximum(s, 0.0)             # (HW, CM)

  # ---- conv2: 3x3 grouped ConvBR2d (groups=16, block-diag dense weight) + ReLU ----
  # Write s into a zero-padded halo scratch, then accumulate the 9 taps as shifted
  # (HW, CM) @ (CM, CM) matmuls.  Rows above/below the image hit the zero padding;
  # the +-1 column taps are masked at the left/right image borders.
  spad_ref[...] = jnp.zeros_like(spad_ref)
  spad_ref[pl.ds(base, HW), :] = s

  w_of_row = lax.broadcasted_iota(jnp.int32, (HW, 1), 0) & (W - 1)   # w coord (W pow2)

  acc = jnp.zeros((HW, CM), jnp.float32)
  for dy in range(3):
    for dx in range(3):
      k = dy * 3 + dx
      tap = spad_ref[pl.ds(base + (dy - 1) * W + (dx - 1), HW), :]
      if dx == 0:                      # source column w-1 : invalid at w == 0
        tap = jnp.where(w_of_row >= 1, tap, 0.0)
      elif dx == 2:                    # source column w+1 : invalid at w == W-1
        tap = jnp.where(w_of_row < W - 1, tap, 0.0)
      acc = acc + jnp.dot(tap, w2_ref[pl.ds(k * CM, CM), :],
                          preferred_element_type=jnp.float32)
  s2 = jnp.maximum(acc + b2_ref[...], 0.0)          # (HW, CM)

  # ---- 2x2 / stride-2 pooling (in-kernel, via tiny 0/1 selector matmuls) ----------
  # (Ho*Wo, HW) selectors are negligible at this size; for large H*W this block
  # should switch to strided sublane loads.
  qq = lax.broadcasted_iota(jnp.int32, (Ho * Wo, HW), 0)     # pooled row index q
  rr = lax.broadcasted_iota(jnp.int32, (Ho * Wo, HW), 1)     # source row index r
  q_ho = qq >> (Wo.bit_length() - 1)                         # q // Wo  (Wo pow2)
  q_wo = qq & (Wo - 1)                                       # q %  Wo
  r00 = 2 * q_ho * W + 2 * q_wo                              # window anchor row

  # MaxPool2d(2, 2) of the conv2 output
  pooled = None
  for (i, j) in ((0, 0), (0, 1), (1, 0), (1, 1)):
    sel = jnp.where(rr == r00 + i * W + j, 1.0, 0.0).astype(jnp.float32)
    v = jnp.dot(sel, s2, preferred_element_type=jnp.float32)
    pooled = v if pooled is None else jnp.maximum(pooled, v)  # (Ho*Wo, CM)

  # conv3: 1x1 ConvBR2d (BN folded, no activation)
  t = jnp.dot(pooled, w3_ref[...], preferred_element_type=jnp.float32) + b3_ref[...]

  # ---- SE: global average pool -> fc1+ReLU -> fc2+sigmoid -------------------------
  gap = jnp.sum(t, axis=0, keepdims=True) * (1.0 / (Ho * Wo))           # (1, C)
  hid = jnp.maximum(
      jnp.dot(gap, sw1_ref[...], preferred_element_type=jnp.float32) + sb1_ref[...], 0.0)
  gate = jax.nn.sigmoid(
      jnp.dot(hid, sw2_ref[...], preferred_element_type=jnp.float32) + sb2_ref[...])  # (1, C)

  # ---- shortcut: AvgPool2d(2, 2) (one 4-tap selector, 0.25 folded in) + 1x1 ConvBR2d
  avg_sel = jnp.where((rr == r00) | (rr == r00 + 1) |
                      (rr == r00 + W) | (rr == r00 + W + 1),
                      0.25, 0.0).astype(jnp.float32)
  xp = jnp.dot(avg_sel, x2d, preferred_element_type=jnp.float32)        # (Ho*Wo, C)
  sc = jnp.dot(xp, ws_ref[...], preferred_element_type=jnp.float32) + bs_ref[...]

  # ---- SE gating + residual add + final ReLU --------------------------------------
  o_ref[...] = jnp.maximum(sc + t * gate, 0.0)


# ---------------------------------------------------------------------------
# Wrapper: NCHW in / NCHW out, one pallas_call for the whole bottleneck
# ---------------------------------------------------------------------------
def down2d_forward(x_nchw, params):
  n, c, h, w = x_nchw.shape
  assert c == C_CHANNELS and h % 2 == 0 and w % 2 == 0
  assert (w & (w - 1)) == 0, "W must be a power of two for the in-kernel bit tricks"
  ho, wo = h // 2, w // 2
  hw = h * w
  cm = C_MID

  # NCHW -> NHWC rows (channels on lanes).  This transpose is the only XLA data
  # movement; everything else runs inside the single fused pallas_call.
  x_rows = jnp.transpose(x_nchw, (0, 2, 3, 1)).reshape(n, hw, c).astype(jnp.float32)

  w2_stacked = params["w2_dense"].reshape(9 * cm, cm).astype(jnp.float32)

  def row(v):
    return v.reshape(1, -1).astype(jnp.float32)

  spad_rows = _round_up(_round_up(w + 1, 8) + hw + w + 1, 8)

  def full(shape):
    return pl.BlockSpec(shape, lambda b: (0,) * len(shape))

  kernel = functools.partial(_down2d_kernel, H=h, W=w, CM=cm)

  out = pl.pallas_call(
      kernel,
      out_shape=jax.ShapeDtypeStruct((n, ho * wo, c), jnp.float32),
      grid=(n,),
      in_specs=[
          pl.BlockSpec((None, hw, c), lambda b: (b, 0, 0)),   # x: one image per grid step
          full((c, cm)), full((1, cm)),                       # conv1
          full((9 * cm, cm)), full((1, cm)),                  # conv2 (tap-stacked block-diag)
          full((cm, c)), full((1, c)),                        # conv3
          full((c, c)), full((1, c)),                         # shortcut conv
          full((c, C_SE)), full((1, C_SE)),                   # SE fc1
          full((C_SE, c)), full((1, c)),                      # SE fc2
      ],
      out_specs=pl.BlockSpec((None, ho * wo, c), lambda b: (b, 0, 0)),
      scratch_shapes=[pltpu.VMEM((spad_rows, cm), jnp.float32)],
      compiler_params=pltpu.CompilerParams(
          dimension_semantics=("parallel",),   # v7x: images split across the 2 TensorCores
      ),
  )(x_rows,
    params["w1"].astype(jnp.float32), row(params["b1"]),
    w2_stacked, row(params["b2"]),
    params["w3"].astype(jnp.float32), row(params["b3"]),
    params["ws"].astype(jnp.float32), row(params["bs"]),
    params["se_w1"].astype(jnp.float32), row(params["se_b1"]),
    params["se_w2"].astype(jnp.float32), row(params["se_b2"]))

  out = out.reshape(n, ho, wo, c)
  return jnp.transpose(out, (0, 3, 1, 2))              # back to NCHW


# ---------------------------------------------------------------------------
# Deterministic synthetic parameters (BatchNorm folded, inference mode)
# ---------------------------------------------------------------------------
def make_params(key):
  ks = jax.random.split(key, 12)

  def bn_fold(k, ch):
    k1, k2, k3, k4 = jax.random.split(k, 4)
    gamma = jax.random.uniform(k1, (ch,), jnp.float32, 0.8, 1.2)
    beta = 0.1 * jax.random.normal(k2, (ch,), jnp.float32)
    mean = 0.1 * jax.random.normal(k3, (ch,), jnp.float32)
    var = jax.random.uniform(k4, (ch,), jnp.float32, 0.5, 1.5)
    scale = gamma * jax.lax.rsqrt(var + BN_EPS)
    return scale, beta - mean * scale

  def rand_w(k, shape, fan_in):
    return jax.random.normal(k, shape, jnp.float32) / jnp.sqrt(float(fan_in))

  in_pg = C_MID // GROUPS
  out_pg = C_MID // GROUPS

  # conv1 (1x1, C -> C_MID) + BN
  w1 = rand_w(ks[0], (C_CHANNELS, C_MID), C_CHANNELS)
  s1, b1 = bn_fold(ks[1], C_MID)
  w1 = w1 * s1[None, :]

  # conv2 (3x3 grouped, C_MID -> C_MID) + BN; HWIO-grouped weight (3,3,in_pg,C_MID)
  w2g = rand_w(ks[2], (3, 3, in_pg, C_MID), 9 * in_pg)
  s2, b2 = bn_fold(ks[3], C_MID)
  w2g = w2g * s2[None, None, None, :]
  w2_dense = jnp.zeros((3, 3, C_MID, C_MID), jnp.float32)
  for g in range(GROUPS):  # expand grouped weight to an equivalent block-diagonal dense one
    i0, o0 = g * in_pg, g * out_pg
    w2_dense = w2_dense.at[:, :, i0:i0 + in_pg, o0:o0 + out_pg].set(
        w2g[:, :, :, o0:o0 + out_pg])

  # conv3 (1x1, C_MID -> C) + BN (no activation)
  w3 = rand_w(ks[4], (C_MID, C_CHANNELS), C_MID)
  s3, b3 = bn_fold(ks[5], C_CHANNELS)
  w3 = w3 * s3[None, :]

  # shortcut (1x1, C -> C) + BN (no activation)
  ws = rand_w(ks[6], (C_CHANNELS, C_CHANNELS), C_CHANNELS)
  ss, bs = bn_fold(ks[7], C_CHANNELS)
  ws = ws * ss[None, :]

  # SE module (channel squeeze-excitation), 1x1 convs with bias
  se_w1 = rand_w(ks[8], (C_CHANNELS, C_SE), C_CHANNELS)
  se_b1 = 0.1 * jax.random.normal(ks[9], (C_SE,), jnp.float32)
  se_w2 = rand_w(ks[10], (C_SE, C_CHANNELS), C_SE)
  se_b2 = 0.1 * jax.random.normal(ks[11], (C_CHANNELS,), jnp.float32)

  return dict(w1=w1, b1=b1, w2_grouped=w2g, w2_dense=w2_dense, b2=b2,
              w3=w3, b3=b3, ws=ws, bs=bs,
              se_w1=se_w1, se_b1=se_b1, se_w2=se_w2, se_b2=se_b2)


# ---------------------------------------------------------------------------
# Pure-JAX reference (same folded params) for the correctness check
# ---------------------------------------------------------------------------
def down2d_reference(x_nchw, params):
  x = jnp.transpose(x_nchw, (0, 2, 3, 1)).astype(jnp.float32)
  n, h, w, c = x.shape
  s = jax.nn.relu(jnp.einsum("nhwc,cd->nhwd", x, params["w1"]) + params["b1"])
  s = jax.lax.conv_general_dilated(
      s, params["w2_grouped"], window_strides=(1, 1), padding=((1, 1), (1, 1)),
      dimension_numbers=("NHWC", "HWIO", "NHWC"), feature_group_count=GROUPS)
  s = jax.nn.relu(s + params["b2"])
  cm = s.shape[-1]
  s = s.reshape(n, h // 2, 2, w // 2, 2, cm).max(axis=(2, 4))
  t = jnp.einsum("nhwc,cd->nhwd", s, params["w3"]) + params["b3"]
  gap = t.mean(axis=(1, 2))
  hid = jax.nn.relu(gap @ params["se_w1"] + params["se_b1"])
  gate = jax.nn.sigmoid(hid @ params["se_w2"] + params["se_b2"])
  t = t * gate[:, None, None, :]
  xp = x.reshape(n, h // 2, 2, w // 2, 2, c).mean(axis=(2, 4))
  sc = jnp.einsum("nhwc,cd->nhwd", xp, params["ws"]) + params["bs"]
  y = jax.nn.relu(sc + t)
  return jnp.transpose(y, (0, 3, 1, 2))


if __name__ == "__main__":
  key = jax.random.PRNGKey(0)
  kp, kx = jax.random.split(key)
  params = make_params(kp)
  x = jax.random.normal(kx, (2, C_CHANNELS, 16, 16), jnp.float32)   # NCHW, like PyTorch

  fwd = jax.jit(down2d_forward)
  out = jax.block_until_ready(fwd(x, params))
  assert out.shape == (2, C_CHANNELS, 8, 8) and out.dtype == jnp.float32

  ref = jax.block_until_ready(down2d_reference(x, params))
  np.testing.assert_allclose(np.asarray(out), np.asarray(ref), rtol=5e-2, atol=5e-2)
  print("KERNEL_OK")
</pallas_src>

<mosaic_0001>
module attributes {stable_mosaic.version = 11 : i64} {
  func.func @_down2d_kernel(%arg0: i32, %arg1: memref<1x256x64xf32, #tpu.memory_space<vmem>>, %arg2: memref<64x32xf32, #tpu.memory_space<vmem>>, %arg3: memref<1x32xf32, #tpu.memory_space<vmem>>, %arg4: memref<288x32xf32, #tpu.memory_space<vmem>>, %arg5: memref<1x32xf32, #tpu.memory_space<vmem>>, %arg6: memref<32x64xf32, #tpu.memory_space<vmem>>, %arg7: memref<1x64xf32, #tpu.memory_space<vmem>>, %arg8: memref<64x64xf32, #tpu.memory_space<vmem>>, %arg9: memref<1x64xf32, #tpu.memory_space<vmem>>, %arg10: memref<64x8xf32, #tpu.memory_space<vmem>>, %arg11: memref<1x8xf32, #tpu.memory_space<vmem>>, %arg12: memref<8x64xf32, #tpu.memory_space<vmem>>, %arg13: memref<1x64xf32, #tpu.memory_space<vmem>>, %arg14: memref<1x64x64xf32, #tpu.memory_space<vmem>>, %arg15: memref<304x32xf32, #tpu.memory_space<vmem>>) attributes {dimension_semantics = [#tpu.dimension_semantics<parallel>], iteration_bounds = array<i64: 2>, scalar_prefetch = 0 : i64, scratch_operands = 1 : i64, tpu.core_type = #tpu.core_type<tc>, window_params = [{transform_indices = @transform_0, window_bounds = array<i64: 1, 256, 64>}, {pipeline_mode = #tpu.pipeline_mode<synchronous>, transform_indices = @transform_1, window_bounds = array<i64: 64, 32>}, {pipeline_mode = #tpu.pipeline_mode<synchronous>, transform_indices = @transform_2, window_bounds = array<i64: 1, 32>}, {pipeline_mode = #tpu.pipeline_mode<synchronous>, transform_indices = @transform_3, window_bounds = array<i64: 288, 32>}, {pipeline_mode = #tpu.pipeline_mode<synchronous>, transform_indices = @transform_4, window_bounds = array<i64: 1, 32>}, {pipeline_mode = #tpu.pipeline_mode<synchronous>, transform_indices = @transform_5, window_bounds = array<i64: 32, 64>}, {pipeline_mode = #tpu.pipeline_mode<synchronous>, transform_indices = @transform_6, window_bounds = array<i64: 1, 64>}, {pipeline_mode = #tpu.pipeline_mode<synchronous>, transform_indices = @transform_7, window_bounds = array<i64: 64, 64>}, {pipeline_mode = #tpu.pipeline_mode<synchronous>, transform_indices = @transform_8, window_bounds = array<i64: 1, 64>}, {pipeline_mode = #tpu.pipeline_mode<synchronous>, transform_indices = @transform_9, window_bounds = array<i64: 64, 8>}, {pipeline_mode = #tpu.pipeline_mode<synchronous>, transform_indices = @transform_10, window_bounds = array<i64: 1, 8>}, {pipeline_mode = #tpu.pipeline_mode<synchronous>, transform_indices = @transform_11, window_bounds = array<i64: 8, 64>}, {pipeline_mode = #tpu.pipeline_mode<synchronous>, transform_indices = @transform_12, window_bounds = array<i64: 1, 64>}, {transform_indices = @transform_13, window_bounds = array<i64: 1, 64, 64>}]} {
    %c0 = arith.constant 0 : index
    %c0_0 = arith.constant 0 : index
    %c0_1 = arith.constant 0 : index
    %0 = vector.load %arg1[%c0, %c0_0, %c0_1] : memref<1x256x64xf32, #tpu.memory_space<vmem>>, vector<1x256x64xf32>
    %1 = vector.shape_cast %0 : vector<1x256x64xf32> to vector<256x64xf32>
    %c0_2 = arith.constant 0 : index
    %c0_3 = arith.constant 0 : index
    %2 = vector.load %arg2[%c0_2, %c0_3] : memref<64x32xf32, #tpu.memory_space<vmem>>, vector<64x32xf32>
    %cst = arith.constant dense<0.000000e+00> : vector<256x32xf32>
    %3 = tpu.matmul %1, %2, %cst {dimension_numbers = #tpu.dot_dimension_numbers<[1], [0], [0], [1], [0, 0, 1, 1], [], []>} : vector<256x64xf32>, vector<64x32xf32>, vector<256x32xf32> -> vector<256x32xf32>
    %c0_4 = arith.constant 0 : index
    %c0_5 = arith.constant 0 : index
    %4 = vector.load %arg3[%c0_4, %c0_5] : memref<1x32xf32, #tpu.memory_space<vmem>>, vector<1x32xf32>
    %5 = vector.broadcast %4 : vector<1x32xf32> to vector<256x32xf32>
    %6 = arith.addf %3, %5 : vector<256x32xf32>
    %cst_6 = arith.constant 0.000000e+00 : f32
    %7 = vector.broadcast %cst_6 : f32 to vector<256x32xf32>
    %8 = arith.maximumf %6, %7 : vector<256x32xf32>
    %cst_7 = arith.constant 0.000000e+00 : f32
    %9 = vector.broadcast %cst_7 : f32 to vector<304x32xf32>
    %c0_8 = arith.constant 0 : index
    %c0_9 = arith.constant 0 : index
    %10 = vector.load %arg15[%c0_8, %c0_9] : memref<304x32xf32, #tpu.memory_space<vmem>>, vector<304x32xf32>
    tpu.vector_store %arg15[%c0_8, %c0_9], %9 {strides = array<i32>} : memref<304x32xf32, #tpu.memory_space<vmem>>, vector<304x32xf32>,
    %c24 = arith.constant 24 : index
    %c0_10 = arith.constant 0 : index
    %11 = vector.load %arg15[%c24, %c0_10] : memref<304x32xf32, #tpu.memory_space<vmem>>, vector<256x32xf32>
    tpu.vector_store %arg15[%c24, %c0_10], %8 {strides = array<i32>} : memref<304x32xf32, #tpu.memory_space<vmem>>, vector<256x32xf32>,
    %12 = tpu.iota {dimensions = array<i32: 0>} : vector<256x1xi32>
    %c15_i32 = arith.constant 15 : i32
    %13 = vector.broadcast %c15_i32 : i32 to vector<256x1xi32>
    %14 = arith.andi %12, %13 : vector<256x1xi32>
    %cst_11 = arith.constant 0.000000e+00 : f32
    %15 = vector.broadcast %cst_11 : f32 to vector<256x32xf32>
    %c7 = arith.constant 7 : index
    %c0_12 = arith.constant 0 : index
    %16 = vector.load %arg15[%c7, %c0_12] : memref<304x32xf32, #tpu.memory_space<vmem>>, vector<256x32xf32>
    %c1_i32 = arith.constant 1 : i32
    %17 = vector.broadcast %c1_i32 : i32 to vector<256x1xi32>
    %18 = arith.cmpi sge, %14, %17 : vector<256x1xi32>
    %cst_13 = arith.constant 0.000000e+00 : f32
    %19 = vector.shape_cast %18 : vector<256x1xi1> to vector<256x1xi1>
    %20 = vector.broadcast %19 : vector<256x1xi1> to vector<256x32xi1>
    %21 = vector.broadcast %cst_13 : f32 to vector<256x32xf32>
    %22 = arith.select %20, %16, %21 : vector<256x32xi1>, vector<256x32xf32>
    %c0_14 = arith.constant 0 : index
    %c0_15 = arith.constant 0 : index
    %23 = vector.load %arg4[%c0_14, %c0_15] : memref<288x32xf32, #tpu.memory_space<vmem>>, vector<32x32xf32>
    %cst_16 = arith.constant dense<0.000000e+00> : vector<256x32xf32>
    %24 = tpu.matmul %22, %23, %cst_16 {dimension_numbers = #tpu.dot_dimension_numbers<[1], [0], [0], [1], [0, 0, 1, 1], [], []>} : vector<256x32xf32>, vector<32x32xf32>, vector<256x32xf32> -> vector<256x32xf32>
    %25 = arith.addf %15, %24 : vector<256x32xf32>
    %c8 = arith.constant 8 : index
    %c0_17 = arith.constant 0 : index
    %26 = vector.load %arg15[%c8, %c0_17] : memref<304x32xf32, #tpu.memory_space<vmem>>, vector<256x32xf32>
    %c32 = arith.constant 32 : index
    %c0_18 = arith.constant 0 : index
    %27 = vector.load %arg4[%c32, %c0_18] : memref<288x32xf32, #tpu.memory_space<vmem>>, vector<32x32xf32>
    %cst_19 = arith.constant dense<0.000000e+00> : vector<256x32xf32>
    %28 = tpu.matmul %26, %27, %cst_19 {dimension_numbers = #tpu.dot_dimension_numbers<[1], [0], [0], [1], [0, 0, 1, 1], [], []>} : vector<256x32xf32>, vector<32x32xf32>, vector<256x32xf32> -> vector<256x32xf32>
    %29 = arith.addf %25, %28 : vector<256x32xf32>
    %c9 = arith.constant 9 : index
    %c0_20 = arith.constant 0 : index
    %30 = vector.load %arg15[%c9, %c0_20] : memref<304x32xf32, #tpu.memory_space<vmem>>, vector<256x32xf32>
    %c15_i32_21 = arith.constant 15 : i32
    %31 = vector.broadcast %c15_i32_21 : i32 to vector<256x1xi32>
    %32 = arith.cmpi slt, %14, %31 : vector<256x1xi32>
    %cst_22 = arith.constant 0.000000e+00 : f32
    %33 = vector.shape_cast %32 : vector<256x1xi1> to vector<256x1xi1>
    %34 = vector.broadcast %33 : vector<256x1xi1> to vector<256x32xi1>
    %35 = vector.broadcast %cst_22 : f32 to vector<256x32xf32>
    %36 = arith.select %34, %30, %35 : vector<256x32xi1>, vector<256x32xf32>
    %c64 = arith.constant 64 : index
    %c0_23 = arith.constant 0 : index
    %37 = vector.load %arg4[%c64, %c0_23] : memref<288x32xf32, #tpu.memory_space<vmem>>, vector<32x32xf32>
    %cst_24 = arith.constant dense<0.000000e+00> : vector<256x32xf32>
    %38 = tpu.matmul %36, %37, %cst_24 {dimension_numbers = #tpu.dot_dimension_numbers<[1], [0], [0], [1], [0, 0, 1, 1], [], []>} : vector<256x32xf32>, vector<32x32xf32>, vector<256x32xf32> -> vector<256x32xf32>
    %39 = arith.addf %29, %38 : vector<256x32xf32>
    %c23 = arith.constant 23 : index
    %c0_25 = arith.constant 0 : index
    %40 = vector.load %arg15[%c23, %c0_25] : memref<304x32xf32, #tpu.memory_space<vmem>>, vector<256x32xf32>
    %c1_i32_26 = arith.constant 1 : i32
    %41 = vector.broadcast %c1_i32_26 : i32 to vector<256x1xi32>
    %42 = arith.cmpi sge, %14, %41 : vector<256x1xi32>
    %cst_27 = arith.constant 0.000000e+00 : f32
    %43 = vector.shape_cast %42 : vector<256x1xi1> to vector<256x1xi1>
    %44 = vector.broadcast %43 : vector<256x1xi1> to vector<256x32xi1>
    %45 = vector.broadcast %cst_27 : f32 to vector<256x32xf32>
    %46 = arith.select %44, %40, %45 : vector<256x32xi1>, vector<256x32xf32>
    %c96 = arith.constant 96 : index
    %c0_28 = arith.constant 0 : index
    %47 = vector.load %arg4[%c96, %c0_28] : memref<288x32xf32, #tpu.memory_space<vmem>>, vector<32x32xf32>
    %cst_29 = arith.constant dense<0.000000e+00> : vector<256x32xf32>
    %48 = tpu.matmul %46, %47, %cst_29 {dimension_numbers = #tpu.dot_dimension_numbers<[1], [0], [0], [1], [0, 0, 1, 1], [], []>} : vector<256x32xf32>, vector<32x32xf32>, vector<256x32xf32> -> vector<256x32xf32>
    %49 = arith.addf %39, %48 : vector<256x32xf32>
    %c24_30 = arith.constant 24 : index
    %c0_31 = arith.constant 0 : index
    %50 = vector.load %arg15[%c24_30, %c0_31] : memref<304x32xf32, #tpu.memory_space<vmem>>, vector<256x32xf32>
    %c128 = arith.constant 128 : index
    %c0_32 = arith.constant 0 : index
    %51 = vector.load %arg4[%c128, %c0_32] : memref<288x32xf32, #tpu.memory_space<vmem>>, vector<32x32xf32>
    %cst_33 = arith.constant dense<0.000000e+00> : vector<256x32xf32>
    %52 = tpu.matmul %50, %51, %cst_33 {dimension_numbers = #tpu.dot_dimension_numbers<[1], [0], [0], [1], [0, 0, 1, 1], [], []>} : vector<256x32xf32>, vector<32x32xf32>, vector<256x32xf32> -> vector<256x32xf32>
    %53 = arith.addf %49, %52 : vector<256x32xf32>
    %c25 = arith.constant 25 : index
    %c0_34 = arith.constant 0 : index
    %54 = vector.load %arg15[%c25, %c0_34] : memref<304x32xf32, #tpu.memory_space<vmem>>, vector<256x32xf32>
    %c15_i32_35 = arith.constant 15 : i32
    %55 = vector.broadcast %c15_i32_35 : i32 to vector<256x1xi32>
    %56 = arith.cmpi slt, %14, %55 : vector<256x1xi32>
    %cst_36 = arith.constant 0.000000e+00 : f32
    %57 = vector.shape_cast %56 : vector<256x1xi1> to vector<256x1xi1>
    %58 = vector.broadcast %57 : vector<256x1xi1> to vector<256x32xi1>
    %59 = vector.broadcast %cst_36 : f32 to vector<256x32xf32>
    %60 = arith.select %58, %54, %59 : vector<256x32xi1>, vector<256x32xf32>
    %c160 = arith.constant 160 : index
    %c0_37 = arith.constant 0 : index
    %61 = vector.load %arg4[%c160, %c0_37] : memref<288x32xf32, #tpu.memory_space<vmem>>, vector<32x32xf32>
    %cst_38 = arith.constant dense<0.000000e+00> : vector<256x32xf32>
    %62 = tpu.matmul %60, %61, %cst_38 {dimension_numbers = #tpu.dot_dimension_numbers<[1], [0], [0], [1], [0, 0, 1, 1], [], []>} : vector<256x32xf32>, vector<32x32xf32>, vector<256x32xf32> -> vector<256x32xf32>
    %63 = arith.addf %53, %62 : vector<256x32xf32>
    %c39 = arith.constant 39 : index
    %c0_39 = arith.constant 0 : index
    %64 = vector.load %arg15[%c39, %c0_39] : memref<304x32xf32, #tpu.memory_space<vmem>>, vector<256x32xf32>
    %c1_i32_40 = arith.constant 1 : i32
    %65 = vector.broadcast %c1_i32_40 : i32 to vector<256x1xi32>
    %66 = arith.cmpi sge, %14, %65 : vector<256x1xi32>
    %cst_41 = arith.constant 0.000000e+00 : f32
    %67 = vector.shape_cast %66 : vector<256x1xi1> to vector<256x1xi1>
    %68 = vector.broadcast %67 : vector<256x1xi1> to vector<256x32xi1>
    %69 = vector.broadcast %cst_41 : f32 to vector<256x32xf32>
    %70 = arith.select %68, %64, %69 : vector<256x32xi1>, vector<256x32xf32>
    %c192 = arith.constant 192 : index
    %c0_42 = arith.constant 0 : index
    %71 = vector.load %arg4[%c192, %c0_42] : memref<288x32xf32, #tpu.memory_space<vmem>>, vector<32x32xf32>
    %cst_43 = arith.constant dense<0.000000e+00> : vector<256x32xf32>
    %72 = tpu.matmul %70, %71, %cst_43 {dimension_numbers = #tpu.dot_dimension_numbers<[1], [0], [0], [1], [0, 0, 1, 1], [], []>} : vector<256x32xf32>, vector<32x32xf32>, vector<256x32xf32> -> vector<256x32xf32>
    %73 = arith.addf %63, %72 : vector<256x32xf32>
    %c40 = arith.constant 40 : index
    %c0_44 = arith.constant 0 : index
    %74 = vector.load %arg15[%c40, %c0_44] : memref<304x32xf32, #tpu.memory_space<vmem>>, vector<256x32xf32>
    %c224 = arith.constant 224 : index
    %c0_45 = arith.constant 0 : index
    %75 = vector.load %arg4[%c224, %c0_45] : memref<288x32xf32, #tpu.memory_space<vmem>>, vector<32x32xf32>
    %cst_46 = arith.constant dense<0.000000e+00> : vector<256x32xf32>
    %76 = tpu.matmul %74, %75, %cst_46 {dimension_numbers = #tpu.dot_dimension_numbers<[1], [0], [0], [1], [0, 0, 1, 1], [], []>} : vector<256x32xf32>, vector<32x32xf32>, vector<256x32xf32> -> vector<256x32xf32>
    %77 = arith.addf %73, %76 : vector<256x32xf32>
    %c41 = arith.constant 41 : index
    %c0_47 = arith.constant 0 : index
    %78 = vector.load %arg15[%c41, %c0_47] : memref<304x32xf32, #tpu.memory_space<vmem>>, vector<256x32xf32>
    %c15_i32_48 = arith.constant 15 : i32
    %79 = vector.broadcast %c15_i32_48 : i32 to vector<256x1xi32>
    %80 = arith.cmpi slt, %14, %79 : vector<256x1xi32>
    %cst_49 = arith.constant 0.000000e+00 : f32
    %81 = vector.shape_cast %80 : vector<256x1xi1> to vector<256x1xi1>
    %82 = vector.broadcast %81 : vector<256x1xi1> to vector<256x32xi1>
    %83 = vector.broadcast %cst_49 : f32 to vector<256x32xf32>
    %84 = arith.select %82, %78, %83 : vector<256x32xi1>, vector<256x32xf32>
    %c256 = arith.constant 256 : index
    %c0_50 = arith.constant 0 : index
    %85 = vector.load %arg4[%c256, %c0_50] : memref<288x32xf32, #tpu.memory_space<vmem>>, vector<32x32xf32>
    %cst_51 = arith.constant dense<0.000000e+00> : vector<256x32xf32>
    %86 = tpu.matmul %84, %85, %cst_51 {dimension_numbers = #tpu.dot_dimension_numbers<[1], [0], [0], [1], [0, 0, 1, 1], [], []>} : vector<256x32xf32>, vector<32x32xf32>, vector<256x32xf32> -> vector<256x32xf32>
    %87 = arith.addf %77, %86 : vector<256x32xf32>
    %c0_52 = arith.constant 0 : index
    %c0_53 = arith.constant 0 : index
    %88 = vector.load %arg5[%c0_52, %c0_53] : memref<1x32xf32, #tpu.memory_space<vmem>>, vector<1x32xf32>
    %89 = vector.broadcast %88 : vector<1x32xf32> to vector<256x32xf32>
    %90 = arith.addf %87, %89 : vector<256x32xf32>
    %cst_54 = arith.constant 0.000000e+00 : f32
    %91 = vector.broadcast %cst_54 : f32 to vector<256x32xf32>
    %92 = arith.maximumf %90, %91 : vector<256x32xf32>
    %93 = tpu.iota {dimensions = array<i32: 0>} : vector<64x256xi32>
    %94 = tpu.iota {dimensions = array<i32: 1>} : vector<64x256xi32>
    %c3_i32 = arith.constant 3 : i32
    %95 = vector.broadcast %c3_i32 : i32 to vector<64x256xi32>
    %96 = arith.shrsi %93, %95 : vector<64x256xi32>
    %c7_i32 = arith.constant 7 : i32
    %97 = vector.broadcast %c7_i32 : i32 to vector<64x256xi32>
    %98 = arith.andi %93, %97 : vector<64x256xi32>
    %c2_i32 = arith.constant 2 : i32
    %99 = vector.broadcast %c2_i32 : i32 to vector<64x256xi32>
    %100 = arith.muli %99, %96 : vector<64x256xi32>
    %c16_i32 = arith.constant 16 : i32
    %101 = vector.broadcast %c16_i32 : i32 to vector<64x256xi32>
    %102 = arith.muli %100, %101 : vector<64x256xi32>
    %c2_i32_55 = arith.constant 2 : i32
    %103 = vector.broadcast %c2_i32_55 : i32 to vector<64x256xi32>
    %104 = arith.muli %103, %98 : vector<64x256xi32>
    %105 = arith.addi %102, %104 : vector<64x256xi32>
    %c0_i32 = arith.constant 0 : i32
    %106 = vector.broadcast %c0_i32 : i32 to vector<64x256xi32>
    %107 = arith.addi %105, %106 : vector<64x256xi32>
    %c0_i32_56 = arith.constant 0 : i32
    %108 = vector.broadcast %c0_i32_56 : i32 to vector<64x256xi32>
    %109 = arith.addi %107, %108 : vector<64x256xi32>
    %110 = arith.cmpi eq, %94, %109 : vector<64x256xi32>
    %cst_57 = arith.constant 1.000000e+00 : f32
    %cst_58 = arith.constant 0.000000e+00 : f32
    %111 = vector.broadcast %cst_57 : f32 to vector<64x256xf32>
    %112 = vector.broadcast %cst_58 : f32 to vector<64x256xf32>
    %113 = arith.select %110, %111, %112 : vector<64x256xi1>, vector<64x256xf32>
    %cst_59 = arith.constant dense<0.000000e+00> : vector<64x32xf32>
    %114 = tpu.matmul %113, %92, %cst_59 {dimension_numbers = #tpu.dot_dimension_numbers<[1], [0], [0], [1], [0, 0, 1, 1], [], []>} : vector<64x256xf32>, vector<256x32xf32>, vector<64x32xf32> -> vector<64x32xf32>
    %c0_i32_60 = arith.constant 0 : i32
    %115 = vector.broadcast %c0_i32_60 : i32 to vector<64x256xi32>
    %116 = arith.addi %105, %115 : vector<64x256xi32>
    %c1_i32_61 = arith.constant 1 : i32
    %117 = vector.broadcast %c1_i32_61 : i32 to vector<64x256xi32>
    %118 = arith.addi %116, %117 : vector<64x256xi32>
    %119 = arith.cmpi eq, %94, %118 : vector<64x256xi32>
    %cst_62 = arith.constant 1.000000e+00 : f32
    %cst_63 = arith.constant 0.000000e+00 : f32
    %120 = vector.broadcast %cst_62 : f32 to vector<64x256xf32>
    %121 = vector.broadcast %cst_63 : f32 to vector<64x256xf32>
    %122 = arith.select %119, %120, %121 : vector<64x256xi1>, vector<64x256xf32>
    %cst_64 = arith.constant dense<0.000000e+00> : vector<64x32xf32>
    %123 = tpu.matmul %122, %92, %cst_64 {dimension_numbers = #tpu.dot_dimension_numbers<[1], [0], [0], [1], [0, 0, 1, 1], [], []>} : vector<64x256xf32>, vector<256x32xf32>, vector<64x32xf32> -> vector<64x32xf32>
    %124 = arith.maximumf %114, %123 : vector<64x32xf32>
    %c16_i32_65 = arith.constant 16 : i32
    %125 = vector.broadcast %c16_i32_65 : i32 to vector<64x256xi32>
    %126 = arith.addi %105, %125 : vector<64x256xi32>
    %c0_i32_66 = arith.constant 0 : i32
    %127 = vector.broadcast %c0_i32_66 : i32 to vector<64x256xi32>
    %128 = arith.addi %126, %127 : vector<64x256xi32>
    %129 = arith.cmpi eq, %94, %128 : vector<64x256xi32>
    %cst_67 = arith.constant 1.000000e+00 : f32
    %cst_68 = arith.constant 0.000000e+00 : f32
    %130 = vector.broadcast %cst_67 : f32 to vector<64x256xf32>
    %131 = vector.broadcast %cst_68 : f32 to vector<64x256xf32>
    %132 = arith.select %129, %130, %131 : vector<64x256xi1>, vector<64x256xf32>
    %cst_69 = arith.constant dense<0.000000e+00> : vector<64x32xf32>
    %133 = tpu.matmul %132, %92, %cst_69 {dimension_numbers = #tpu.dot_dimension_numbers<[1], [0], [0], [1], [0, 0, 1, 1], [], []>} : vector<64x256xf32>, vector<256x32xf32>, vector<64x32xf32> -> vector<64x32xf32>
    %134 = arith.maximumf %124, %133 : vector<64x32xf32>
    %c16_i32_70 = arith.constant 16 : i32
    %135 = vector.broadcast %c16_i32_70 : i32 to vector<64x256xi32>
    %136 = arith.addi %105, %135 : vector<64x256xi32>
    %c1_i32_71 = arith.constant 1 : i32
    %137 = vector.broadcast %c1_i32_71 : i32 to vector<64x256xi32>
    %138 = arith.addi %136, %137 : vector<64x256xi32>
    %139 = arith.cmpi eq, %94, %138 : vector<64x256xi32>
    %cst_72 = arith.constant 1.000000e+00 : f32
    %cst_73 = arith.constant 0.000000e+00 : f32
    %140 = vector.broadcast %cst_72 : f32 to vector<64x256xf32>
    %141 = vector.broadcast %cst_73 : f32 to vector<64x256xf32>
    %142 = arith.select %139, %140, %141 : vector<64x256xi1>, vector<64x256xf32>
    %cst_74 = arith.constant dense<0.000000e+00> : vector<64x32xf32>
    %143 = tpu.matmul %142, %92, %cst_74 {dimension_numbers = #tpu.dot_dimension_numbers<[1], [0], [0], [1], [0, 0, 1, 1], [], []>} : vector<64x256xf32>, vector<256x32xf32>, vector<64x32xf32> -> vector<64x32xf32>
    %144 = arith.maximumf %134, %143 : vector<64x32xf32>
    %c0_75 = arith.constant 0 : index
    %c0_76 = arith.constant 0 : index
    %145 = vector.load %arg6[%c0_75, %c0_76] : memref<32x64xf32, #tpu.memory_space<vmem>>, vector<32x64xf32>
    %cst_77 = arith.constant dense<0.000000e+00> : vector<64x64xf32>
    %146 = tpu.matmul %144, %145, %cst_77 {dimension_numbers = #tpu.dot_dimension_numbers<[1], [0], [0], [1], [0, 0, 1, 1], [], []>} : vector<64x32xf32>, vector<32x64xf32>, vector<64x64xf32> -> vector<64x64xf32>
    %c0_78 = arith.constant 0 : index
    %c0_79 = arith.constant 0 : index
    %147 = vector.load %arg7[%c0_78, %c0_79] : memref<1x64xf32, #tpu.memory_space<vmem>>, vector<1x64xf32>
    %148 = vector.broadcast %147 : vector<1x64xf32> to vector<64x64xf32>
    %149 = arith.addf %146, %148 : vector<64x64xf32>
    %cst_80 = arith.constant dense<0.000000e+00> : vector<64xf32>
    %150 = vector.multi_reduction <add>, %149, %cst_80 [0] : vector<64x64xf32> to vector<64xf32>
    %151 = vector.shape_cast %150 : vector<64xf32> to vector<1x64xf32>
    %cst_81 = arith.constant 1.562500e-02 : f32
    %152 = vector.broadcast %cst_81 : f32 to vector<1x64xf32>
    %153 = arith.mulf %151, %152 : vector<1x64xf32>
    %c0_82 = arith.constant 0 : index
    %c0_83 = arith.constant 0 : index
    %154 = vector.load %arg10[%c0_82, %c0_83] : memref<64x8xf32, #tpu.memory_space<vmem>>, vector<64x8xf32>
    %cst_84 = arith.constant dense<0.000000e+00> : vector<1x8xf32>
    %155 = tpu.matmul %153, %154, %cst_84 {dimension_numbers = #tpu.dot_dimension_numbers<[1], [0], [0], [1], [0, 0, 1, 1], [], []>} : vector<1x64xf32>, vector<64x8xf32>, vector<1x8xf32> -> vector<1x8xf32>
    %c0_85 = arith.constant 0 : index
    %c0_86 = arith.constant 0 : index
    %156 = vector.load %arg11[%c0_85, %c0_86] : memref<1x8xf32, #tpu.memory_space<vmem>>, vector<1x8xf32>
    %157 = arith.addf %155, %156 : vector<1x8xf32>
    %cst_87 = arith.constant 0.000000e+00 : f32
    %158 = vector.broadcast %cst_87 : f32 to vector<1x8xf32>
    %159 = arith.maximumf %157, %158 : vector<1x8xf32>
    %c0_88 = arith.constant 0 : index
    %c0_89 = arith.constant 0 : index
    %160 = vector.load %arg12[%c0_88, %c0_89] : memref<8x64xf32, #tpu.memory_space<vmem>>, vector<8x64xf32>
    %cst_90 = arith.constant dense<0.000000e+00> : vector<1x64xf32>
    %161 = tpu.matmul %159, %160, %cst_90 {dimension_numbers = #tpu.dot_dimension_numbers<[1], [0], [0], [1], [0, 0, 1, 1], [], []>} : vector<1x8xf32>, vector<8x64xf32>, vector<1x64xf32> -> vector<1x64xf32>
    %c0_91 = arith.constant 0 : index
    %c0_92 = arith.constant 0 : index
    %162 = vector.load %arg13[%c0_91, %c0_92] : memref<1x64xf32, #tpu.memory_space<vmem>>, vector<1x64xf32>
    %163 = arith.addf %161, %162 : vector<1x64xf32>
    %164 = arith.negf %163 : vector<1x64xf32>
    %165 = math.exp %164 : vector<1x64xf32>
    %cst_93 = arith.constant 1.000000e+00 : f32
    %166 = vector.broadcast %cst_93 : f32 to vector<1x64xf32>
    %167 = arith.addf %166, %165 : vector<1x64xf32>
    %168 = arith.divf %166, %167 : vector<1x64xf32>
    %169 = arith.cmpi eq, %94, %105 : vector<64x256xi32>
    %c1_i32_94 = arith.constant 1 : i32
    %170 = vector.broadcast %c1_i32_94 : i32 to vector<64x256xi32>
    %171 = arith.addi %105, %170 : vector<64x256xi32>
    %172 = arith.cmpi eq, %94, %171 : vector<64x256xi32>
    %173 = arith.ori %169, %172 : vector<64x256xi1>
    %c16_i32_95 = arith.constant 16 : i32
    %174 = vector.broadcast %c16_i32_95 : i32 to vector<64x256xi32>
    %175 = arith.addi %105, %174 : vector<64x256xi32>
    %176 = arith.cmpi eq, %94, %175 : vector<64x256xi32>
    %177 = arith.ori %173, %176 : vector<64x256xi1>
    %c16_i32_96 = arith.constant 16 : i32
    %178 = vector.broadcast %c16_i32_96 : i32 to vector<64x256xi32>
    %179 = arith.addi %105, %178 : vector<64x256xi32>
    %c1_i32_97 = arith.constant 1 : i32
    %180 = vector.broadcast %c1_i32_97 : i32 to vector<64x256xi32>
    %181 = arith.addi %179, %180 : vector<64x256xi32>
    %182 = arith.cmpi eq, %94, %181 : vector<64x256xi32>
    %183 = arith.ori %177, %182 : vector<64x256xi1>
    %cst_98 = arith.constant 2.500000e-01 : f32
    %cst_99 = arith.constant 0.000000e+00 : f32
    %184 = vector.broadcast %cst_98 : f32 to vector<64x256xf32>
    %185 = vector.broadcast %cst_99 : f32 to vector<64x256xf32>
    %186 = arith.select %183, %184, %185 : vector<64x256xi1>, vector<64x256xf32>
    %cst_100 = arith.constant dense<0.000000e+00> : vector<64x64xf32>
    %187 = tpu.matmul %186, %1, %cst_100 {dimension_numbers = #tpu.dot_dimension_numbers<[1], [0], [0], [1], [0, 0, 1, 1], [], []>} : vector<64x256xf32>, vector<256x64xf32>, vector<64x64xf32> -> vector<64x64xf32>
    %c0_101 = arith.constant 0 : index
    %c0_102 = arith.constant 0 : index
    %188 = vector.load %arg8[%c0_101, %c0_102] : memref<64x64xf32, #tpu.memory_space<vmem>>, vector<64x64xf32>
    %cst_103 = arith.constant dense<0.000000e+00> : vector<64x64xf32>
    %189 = tpu.matmul %187, %188, %cst_103 {dimension_numbers = #tpu.dot_dimension_numbers<[1], [0], [0], [1], [0, 0, 1, 1], [], []>} : vector<64x64xf32>, vector<64x64xf32>, vector<64x64xf32> -> vector<64x64xf32>
    %c0_104 = arith.constant 0 : index
    %c0_105 = arith.constant 0 : index
    %190 = vector.load %arg9[%c0_104, %c0_105] : memref<1x64xf32, #tpu.memory_space<vmem>>, vector<1x64xf32>
    %191 = vector.broadcast %190 : vector<1x64xf32> to vector<64x64xf32>
    %192 = arith.addf %189, %191 : vector<64x64xf32>
    %193 = vector.broadcast %168 : vector<1x64xf32> to vector<64x64xf32>
    %194 = arith.mulf %149, %193 : vector<64x64xf32>
    %195 = arith.addf %192, %194 : vector<64x64xf32>
    %cst_106 = arith.constant 0.000000e+00 : f32
    %196 = vector.broadcast %cst_106 : f32 to vector<64x64xf32>
    %197 = arith.maximumf %195, %196 : vector<64x64xf32>
    %c0_107 = arith.constant 0 : index
    %c0_108 = arith.constant 0 : index
    %c0_109 = arith.constant 0 : index
    %198 = vector.load %arg14[%c0_107, %c0_108, %c0_109] : memref<1x64x64xf32, #tpu.memory_space<vmem>>, vector<1x64x64xf32>
    %199 = vector.shape_cast %198 : vector<1x64x64xf32> to vector<64x64xf32>
    %200 = vector.shape_cast %197 : vector<64x64xf32> to vector<1x64x64xf32>
    tpu.vector_store %arg14[%c0_107, %c0_108, %c0_109], %200 {strides = array<i32>} : memref<1x64x64xf32, #tpu.memory_space<vmem>>, vector<1x64x64xf32>,
    return
  }
  func.func @transform_0(%arg0: i32) -> (i32, i32, i32) {
    %c0_i32 = arith.constant 0 : i32
    %c0_i32_0 = arith.constant 0 : i32
    %c0_i32_1 = arith.constant 0 : i32
    return %arg0, %c0_i32, %c0_i32_0 : i32, i32, i32
  }
  func.func @transform_1(%arg0: i32) -> (i32, i32) {
    %c0_i32 = arith.constant 0 : i32
    %c0_i32_0 = arith.constant 0 : i32
    %c0_i32_1 = arith.constant 0 : i32
    return %c0_i32, %c0_i32_0 : i32, i32
  }
  func.func @transform_2(%arg0: i32) -> (i32, i32) {
    %c0_i32 = arith.constant 0 : i32
    %c0_i32_0 = arith.constant 0 : i32
    %c0_i32_1 = arith.constant 0 : i32
    return %c0_i32, %c0_i32_0 : i32, i32
  }
  func.func @transform_3(%arg0: i32) -> (i32, i32) {
    %c0_i32 = arith.constant 0 : i32
    %c0_i32_0 = arith.constant 0 : i32
    %c0_i32_1 = arith.constant 0 : i32
    return %c0_i32, %c0_i32_0 : i32, i32
  }
  func.func @transform_4(%arg0: i32) -> (i32, i32) {
    %c0_i32 = arith.constant 0 : i32
    %c0_i32_0 = arith.constant 0 : i32
    %c0_i32_1 = arith.constant 0 : i32
    return %c0_i32, %c0_i32_0 : i32, i32
  }
  func.func @transform_5(%arg0: i32) -> (i32, i32) {
    %c0_i32 = arith.constant 0 : i32
    %c0_i32_0 = arith.constant 0 : i32
    %c0_i32_1 = arith.constant 0 : i32
    return %c0_i32, %c0_i32_0 : i32, i32
  }
  func.func @transform_6(%arg0: i32) -> (i32, i32) {
    %c0_i32 = arith.constant 0 : i32
    %c0_i32_0 = arith.constant 0 : i32
    %c0_i32_1 = arith.constant 0 : i32
    return %c0_i32, %c0_i32_0 : i32, i32
  }
  func.func @transform_7(%arg0: i32) -> (i32, i32) {
    %c0_i32 = arith.constant 0 : i32
    %c0_i32_0 = arith.constant 0 : i32
    %c0_i32_1 = arith.constant 0 : i32
    return %c0_i32, %c0_i32_0 : i32, i32
  }
  func.func @transform_8(%arg0: i32) -> (i32, i32) {
    %c0_i32 = arith.constant 0 : i32
    %c0_i32_0 = arith.constant 0 : i32
    %c0_i32_1 = arith.constant 0 : i32
    return %c0_i32, %c0_i32_0 : i32, i32
  }
  func.func @transform_9(%arg0: i32) -> (i32, i32) {
    %c0_i32 = arith.constant 0 : i32
    %c0_i32_0 = arith.constant 0 : i32
    %c0_i32_1 = arith.constant 0 : i32
    return %c0_i32, %c0_i32_0 : i32, i32
  }
  func.func @transform_10(%arg0: i32) -> (i32, i32) {
    %c0_i32 = arith.constant 0 : i32
    %c0_i32_0 = arith.constant 0 : i32
    %c0_i32_1 = arith.constant 0 : i32
    return %c0_i32, %c0_i32_0 : i32, i32
  }
  func.func @transform_11(%arg0: i32) -> (i32, i32) {
    %c0_i32 = arith.constant 0 : i32
    %c0_i32_0 = arith.constant 0 : i32
    %c0_i32_1 = arith.constant 0 : i32
    return %c0_i32, %c0_i32_0 : i32, i32
  }
  func.func @transform_12(%arg0: i32) -> (i32, i32) {
    %c0_i32 = arith.constant 0 : i32
    %c0_i32_0 = arith.constant 0 : i32
    %c0_i32_1 = arith.constant 0 : i32
    return %c0_i32, %c0_i32_0 : i32, i32
  }
  func.func @transform_13(%arg0: i32) -> (i32, i32, i32) {
    %c0_i32 = arith.constant 0 : i32
    %c0_i32_0 = arith.constant 0 : i32
    %c0_i32_1 = arith.constant 0 : i32
    return %arg0, %c0_i32, %c0_i32_0 : i32, i32, i32
  }
}

</mosaic_0001>

<bundles_post_ra>
// kernel: down2d_forward.1
= control target key start
LH: loop header
LB: loop body
LE: loop exit
PB: predicated region body
PF: predicated region fallthrough
CT: control target
= control target key end

     0   :  { %s11854_s0 = inlined_call_operand.hbm [shape: f32[2,256,64], index: 0, kind: input, shape index: {}]   ;;  %s11855_s1 = inlined_call_operand.vmem [shape: f32[64,32], index: 1, kind: input, shape index: {}]   ;;  %s11856_s2 = inlined_call_operand.vmem [shape: f32[1,32], index: 2, kind: input, shape index: {}]   ;;  %s11857_s3 = inlined_call_operand.hbm [shape: f32[288,32], index: 3, kind: input, shape index: {}]   ;;  %s11858_s4 = inlined_call_operand.vmem [shape: f32[1,32], index: 4, kind: input, shape index: {}]   ;;  %s11859_s5 = inlined_call_operand.vmem [shape: f32[32,64], index: 5, kind: input, shape index: {}]   ;;  %s11860_s6 = inlined_call_operand.vmem [shape: f32[1,64], index: 6, kind: input, shape index: {}]   ;;  %s11861_s7 = inlined_call_operand.vmem [shape: f32[64,64], index: 7, kind: input, shape index: {}]   ;;  %s11862_s8 = inlined_call_operand.vmem [shape: f32[1,64], index: 8, kind: input, shape index: {}]   ;;  %s11863_s9 = inlined_call_operand.vmem [shape: f32[64,8], index: 9, kind: input, shape index: {}]   ;;  %s11864_s10 = inlined_call_operand.vmem [shape: f32[1,8], index: 10, kind: input, shape index: {}]   ;;  %s11865_s11 = inlined_call_operand.vmem [shape: f32[8,64], index: 11, kind: input, shape index: {}]   ;;  %s11866_s12 = inlined_call_operand.vmem [shape: f32[1,64], index: 12, kind: input, shape index: {}]   ;;  %s11867_s13 = inlined_call_operand.hbm [shape: f32[2,64,64], index: 13, kind: output, shape index: {}]  }
   0x1   :  { %12084 = sst [smem:[#allocation75_spill]] %s11857_s3 }
   0x2   :  { %12085 = sst [smem:[#allocation76_spill]] %s11862_s8 }
   0x3   :  { %12086 = sst [smem:[#allocation77_spill]] %s11866_s12 }
   0x4   :  { %12087 = sst [smem:[#allocation78_spill]] %s11867_s13 }
   0x5   :  { %18 = vsyncpa [#allocation4], 0 }
   0x6   :  { %20 = vsyncpa [#allocation4 + $0x1], 0 }
   0x7   :  { %21 = vsyncpa [#allocation7], 0 }
   0x8   :  { %22 = vsyncpa [#allocation5], 0 }
   0x9   :  { %24 = vsyncpa [#allocation5 + $0x1], 0  ;;  %s8401_s25 = smov 0   ;;  %s8403_s26 = smov 0  }
   0xa   :  { %s8405_s27 = smov 0   ;;  %s8407_s28 = smov 0  }
   0xb LB: > { %12088 = sst [smem:[#allocation12_spill]] %s8306_s25  ;;  %s8422_s29 = sadd.s32 4294967295, %s8318_s28   ;;  %s8318_s28 = sphi %s8407_s28, %s12593_s28   ;;  %s8314_s27 = sphi %s8405_s27, %s12596_s27   ;;  %s8310_s26 = sphi %s8403_s26, %s12595_s26   ;;  %s8306_s25 = sphi %s8401_s25, %s12594_s25  }
   0xc   : > { %s6323_s30 = sadd.s32 4294967294, %s8318_s28   ;;  %p50_p0 = scmp.ne.s32.totalorder %s8310_s26, %s8306_s25 }
   0xd   : > { %p11874_p1 = scmp.eq.s32.totalorder %s8422_s29, 0  ;;  %p332_p3 = scmp.eq.s32.totalorder %s6323_s30, 1 }
   0xe   : > { %p6324_p5 = scmp.ge.s32.totalorder %s8318_s28, 1  ;;  %p339_p7 = scmp.lt.s32.totalorder %s8318_s28, 3 }
   0xf   : > { %p8431_p4 = por %p11874_p1, %p50_p0  ;;  %p8436_p6 = por %p332_p3, %p50_p0 }
  0x10   : > { %p8441_p8 = pnand %p6324_p5, %p339_p7  ;;  %s8320_s17 = smov [#allocation6]  }
  0x11   : > { %s12089_s14 = scalar_select %p8431_p4, 1, 0 }
  0x12   : > { %s12090_s15 = scalar_select %p8436_p6, 1, 0 }
  0x13   : > { %s12092_s16 = scalar_select %p8441_p8, 1, 0 }
  0x14   : > { %12091 = sst [smem:[#allocation13_spill]] %s12090_s15  ;;  %s357_s18 = sshll.u32 %s8320_s17, 4  ;;  %s358_s18 = int_to_ptr.vmem [resolvable:$true] %s357_s18 }
  0x15   : > { %p8103_p9 = pneg %p8441_p8  ;;  %s8455_s20 = sadd.s32 1, %s8318_s28  }
  0x16   : > { %12094 = sst [smem:[#allocation14_spill]] %s8455_s20  ;;  %s37_s21 = sadd.s32 1, %s8314_s27 }
  0x17   : > { %p8450_p11 = pnand %p8103_p9, %p11874_p1  ;;  %s34_s22 = ssub.s32 %s8318_s28, %s8455_s20 }
  0x18   : > { %s8207_s23 = scalar_lea.vmem %s358_s18, 4608  ;;  %p8215_p5 = scmp.lt.s32.totalorder %s358_s18, %s358_s18 }
  0x19   : > { %p8198_p12 = pneg %p8450_p11  ;;  %p8208_p13 = scmp.ne.s32.totalorder %s358_s18, %s8207_s23 }
  0x1a   : > { %p8216_p7 = scmp.lt.s32.totalorder %s8207_s23, %s8207_s23 }
  0x1b   : > { %p8210_p0 = pnand %p8208_p13, %p8198_p12 }
  0x1c   : > { %p8217_p10 = por %p8216_p7, %p8215_p5 }
  0x1d   : > { %p8211_p3 = pneg %p8210_p0 }
  0x1f   : > { %p8218_p2 = pnand %p8217_p10, %p8211_p3 }
  0x21   : > { %8221 = shalt.err (!%p8218_p2)
}
  0x22   : > { %s11873_s24 = smov 128   ;;  %s11875_s30 = smov 8  }
  0x23   : > { %s12095_s3 = sld [smem:[#allocation75_spill]]  ;;  %p35_p2 = scmp.eq.s32.totalorder %s34_s22, 0 }
  0x24   : > { %p44_p9 = scmp.ne.s32.totalorder %s8314_s27, %s8310_s26  ;;  %p45_p10 = scmp.eq.s32.totalorder %s8318_s28, 0 }
  0x25   : > { %p8116_p12 = scmp.lt.s32.totalorder %s8318_s28, 2  ;;  %p12096_p0 = scmp.eq.s32.totalorder %s8422_s29, 1 }
  0x26   : > { %s8475_s20 = scalar_select %p35_p2, %s8314_s27, %s37_s21  }
  0x27   : > { %p46_p13 = por %p45_p10, %p44_p9  ;;  %p8479_p3 = por %p12096_p0, %p44_p9 }
  0x28   : > { %s398_s19 = sand.u32 1, %s8314_s27   ;;  %s6762_s25 = sshll.u32 %s8318_s28, 12 }
  0x29   : > { %8106 = dma.hbm_to_vmem [thread:$0]  (!%p8450_p11), %s12095_s3, 4608, %s358_s18, [#allocation7], %s11873_s24, %s11873_s24, %s11875_s30  }
  0x2a   : > { %s12097_s15 = scalar_select %p8479_p3, 1, 0 }
  0x2b   : > { %s6327_s13 = sshll.u32 %s398_s19, 8  ;;  %s8488_s17 = scalar_lea.hbm %s11854_s0, %s6762_s25 }
  0x2c   : > { %s402_s18 = scalar_lea.vmem [#allocation3], %s6327_s13  ;;  %p8490_p11 = pnand %p8116_p12, %p46_p13 }
  0x2d   : > { %s409_s21 = sshll.u32 %s402_s18, 4  ;;  %s8496_s23 = scalar_lea.sflag [#allocation4], %s398_s19  ;;  %s8494_s21 = int_to_ptr.vmem [resolvable:$true] %s409_s21 }
  0x2e   : > { %s8222_s24 = scalar_lea.hbm %s8488_s17, 4096  ;;  %p8224_p7 = pneg %p8490_p11 }
  0x2f   : > { %p8223_p5 = scmp.ne.s32.totalorder %s8488_s17, %s8222_s24  ;;  %s8227_s13 = scalar_lea.hbm %s11854_s0, 8192 }
  0x30   : > { %p8228_p10 = scmp.lt.s32.totalorder %s8488_s17, %s11854_s0  ;;  %p8229_p12 = scmp.lt.s32.totalorder %s8227_s13, %s8222_s24 }
  0x31   : > { %p8225_p2 = pnand %p8224_p7, %p8223_p5 }
  0x32   : > { %p8230_p13 = por %p8229_p12, %p8228_p10 }
  0x33   : > { %p8226_p9 = pneg %p8225_p2 }
  0x35   : > { %p8231_p0 = pnand %p8230_p13, %p8226_p9 }
  0x37   : > { %8234 = shalt.err (!%p8231_p0)
}
  0x38   : > { %s8235_s19 = scalar_lea.vmem %s8494_s21, 4096  ;;  %s8323_s30 = smov [#allocation3]  }
  0x39   : > { %p8236_p1 = scmp.ne.s32.totalorder %s8494_s21, %s8235_s19  ;;  %s8240_s3 = sshll.u32 %s8323_s30, 4  ;;  %s8241_s3 = int_to_ptr.vmem [resolvable:$false] %s8240_s3 }
  0x3a   : > { %s8242_s8 = scalar_lea.vmem %s8241_s3, 8192  ;;  %p8243_p2 = scmp.lt.s32.totalorder %s8494_s21, %s8241_s3 }
  0x3b   : > { %p8238_p6 = pnand %p8236_p1, %p8224_p7  ;;  %p8244_p3 = scmp.lt.s32.totalorder %s8242_s8, %s8235_s19 }
  0x3d   : > { %p8239_p5 = pneg %p8238_p6  ;;  %p8245_p4 = por %p8244_p3, %p8243_p2 }
  0x3f   : > { %p8246_p8 = pnand %p8245_p4, %p8239_p5 }
  0x41   : > { %8249 = shalt.err (!%p8246_p8)
}
  0x42   : > { %s12099_s24 = smov 8   ;;  %s12100_s12 = smov 128  }
  0x43   : > { %8110 = dma.hbm_to_vmem [thread:$0]  (!%p8490_p11), %s8488_s17, 4096, %s8494_s21, %s8496_s23, %s12100_s12, %s12100_s12, %s12099_s24  }
  0x44   : > { %p12101_p1 = scmp.ne.s32.totalorder %s12092_s16, 0 }
  0x46   : > { %421 = sbr.rel (%p12101_p1) target bundleno = 1797 (0x705), region = 72 }
  0x4b   : > { %s8523_s30 = sand.u32 1, %s8310_s26   ;;  %p12102_p4 = scmp.ne.s32.totalorder %s12089_s14, 0 }
  0x4c   : > { %s6331_s3 = sshll.u32 %s8523_s30, 8  ;;  %s424_s13 = scalar_lea.sflag [#allocation4], %s8523_s30 }
  0x4d   : > { %s8527_s25 = scalar_lea.vmem [#allocation3], %s6331_s3 }
  0x4e   : > { %8293 = dma.done.wait (%p12102_p4), %s424_s13, 4096  }
  0x4f   : > { %8295 = vsyncadd (%p12102_p4), %s424_s13, 4294963200  ;;  %p12103_p6 = scmp.eq.s32.totalorder %s8422_s29, 0 }
  0x51   : > { %8297 = dma.done.wait (%p12103_p6), [#allocation7], 4608   ;;  %p12104_p8 = pmov %p12103_p6 }
  0x52   : > { %v513_v0 = vld [vmem:[%s11855_s1 + $0x38] sm:$0xff]  ;;  %v512_v1 = vld [vmem:[%s11855_s1 + $0x30] sm:$0xff]  ;;  %vm11884_vm0 = vcmask 523264   ;;  %v511_v2 = vld [vmem:[%s11855_s1 + $0x28] sm:$0xff]  ;;  %vm875_vm1 = vcmask 261120   ;;  %v11879_v40 = vmov 0.0   ;;  %v11881_v55 = vlaneseq }
  0x53   : > { %8299 = vsyncadd (%p12104_p8), [#allocation7], 4294962688  ;;  %7447 = vmatprep.subr.mxu0 %v513_v0  ;;  %v474_v3 = vld [vmem:[%s8527_s25] sm:$0xff]  ;;  %v510_v4 = vld [vmem:[%s11855_s1 + $0x20] sm:$0xff]  ;;  %880 = vst.msk [vmem:[#allocation2 + $0x20] sm:$0xff] %vm875_vm1, %v11879_v40  ;;  %s12576_s16 = sld [smem:[#allocation77_spill]] }
  0x54   : > { %7448 = vmatpush3.msra.mxu0 %v513_v0  ;;  %7463 = vmatprep.mubr.msk.f32.mxu0 %vm11884_vm0, %v474_v3  ;;  %v509_v5 = vld [vmem:[%s11855_s1 + $0x18] sm:$0xff]  ;;  %v508_v6 = vld [vmem:[%s11855_s1 + $0x10] sm:$0xff]  ;;  %v507_v7 = vld [vmem:[%s11855_s1 + $0x8] sm:$0xff]  ;;  %876 = vst.msk [vmem:[#allocation2] sm:$0xff] %vm875_vm1, %v11879_v40  ;;  %v8717_v61 = vshrl.u32 %v11881_v55, 7  ;;  %s12578_s22 = sld [smem:[#allocation76_spill]] }
  0x55   : > { %7449 = vmatprep.subr.mxu0 %v512_v1  ;;  %v506_v8 = vld [vmem:[%s11855_s1] sm:$0xff]  ;;  %v475_v9 = vld [vmem:[%s8527_s25 + $0x8] sm:$0xff]  ;;  %v477_v11 = vld [vmem:[%s8527_s25 + $0x18] sm:$0xff]  ;;  %877 = vst.msk [vmem:[#allocation2 + $0x8] sm:$0xff] %vm875_vm1, %v11879_v40  ;;  %s6333_s14 = sshll.u32 %s8523_s30, 6  ;;  %s6763_s23 = sshll.u32 %s8422_s29, 10 }
  0x56   : > { %7450 = vmatpush3.msra.mxu0 %v512_v1  ;;  %v476_v10 = vld [vmem:[%s8527_s25 + $0x10] sm:$0xff]  ;;  %v478_v12 = vld [vmem:[%s8527_s25 + $0x20] sm:$0xff]  ;;  %v479_v13 = vld [vmem:[%s8527_s25 + $0x28] sm:$0xff]  ;;  %878 = vst.msk [vmem:[#allocation2 + $0x10] sm:$0xff] %vm875_vm1, %v11879_v40  ;;  %s473_s18 = scalar_lea.vmem [#allocation8], %s6333_s14  ;;  %s12579_s24 = sld [smem:[#allocation78_spill]] }
  0x57   : > { %7451 = vmatprep.subr.mxu0 %v511_v2  ;;  %v480_v14 = vld [vmem:[%s8527_s25 + $0x30] sm:$0xff]  ;;  %v481_v15 = vld [vmem:[%s8527_s25 + $0x38] sm:$0xff]  ;;  %v482_v16 = vld [vmem:[%s8527_s25 + $0x40] sm:$0xff]  ;;  %879 = vst.msk [vmem:[#allocation2 + $0x18] sm:$0xff] %vm875_vm1, %v11879_v40  ;;  %s6240_s19 = sshll.u32 %s473_s18, 4  ;;  %s6227_s29 = scalar_lea.sflag [#allocation5], %s8523_s30  ;;  %s11803_s19 = int_to_ptr.vmem [resolvable:$true] %s6240_s19 }
  0x58   : > { %7452 = vmatpush3.msra.mxu0 %v511_v2  ;;  %v483_v17 = vld [vmem:[%s8527_s25 + $0x48] sm:$0xff]  ;;  %v484_v18 = vld [vmem:[%s8527_s25 + $0x50] sm:$0xff]  ;;  %v485_v19 = vld [vmem:[%s8527_s25 + $0x58] sm:$0xff]  ;;  %881 = vst.msk [vmem:[#allocation2 + $0x28] sm:$0xff] %vm875_vm1, %v11879_v40  ;;  %s8250_s3 = scalar_lea.vmem %s11803_s19, 1024  ;;  %p12588_p11 = scmp.ne.s32.totalorder %s12097_s15, 0 }
  0x59   : > { %7453 = vmatprep.subr.mxu0 %v510_v4  ;;  %v486_v20 = vld [vmem:[%s8527_s25 + $0x60] sm:$0xff]  ;;  %v487_v21 = vld [vmem:[%s8527_s25 + $0x68] sm:$0xff]  ;;  %v488_v22 = vld [vmem:[%s8527_s25 + $0x70] sm:$0xff]  ;;  %882 = vst.msk [vmem:[#allocation2 + $0x30] sm:$0xff] %vm875_vm1, %v11879_v40  ;;  %p8251_p3 = scmp.ne.s32.totalorder %s11803_s19, %s8250_s3  ;;  %s8328_s13 = smov [#allocation8]  }
  0x5a   : > { %7454 = vmatpush3.msra.mxu0 %v510_v4  ;;  %v489_v23 = vld [vmem:[%s8527_s25 + $0x78] sm:$0xff]  ;;  %v490_v24 = vld [vmem:[%s8527_s25 + $0x80] sm:$0xff]  ;;  %v491_v25 = vld [vmem:[%s8527_s25 + $0x88] sm:$0xff]  ;;  %883 = vst.msk [vmem:[#allocation2 + $0x38] sm:$0xff] %vm875_vm1, %v11879_v40  ;;  %v8724_v4 = vadd.s32 8, %v8717_v61 }
  0x5b   : > { %7455 = vmatprep.subr.mxu0 %v509_v5  ;;  %v492_v26 = vld [vmem:[%s8527_s25 + $0x90] sm:$0xff]  ;;  %v493_v27 = vld [vmem:[%s8527_s25 + $0x98] sm:$0xff]  ;;  %v494_v28 = vld [vmem:[%s8527_s25 + $0xa0] sm:$0xff]  ;;  %884 = vst.msk [vmem:[#allocation2 + $0x40] sm:$0xff] %vm875_vm1, %v11879_v40  ;;  %p8252_p7 = pnand %p8251_p3, %p12588_p11 }
  0x5c   : > { %7456 = vmatpush3.msra.mxu0 %v509_v5  ;;  %v495_v29 = vld [vmem:[%s8527_s25 + $0xa8] sm:$0xff]  ;;  %v496_v30 = vld [vmem:[%s8527_s25 + $0xb0] sm:$0xff]  ;;  %v497_v31 = vld [vmem:[%s8527_s25 + $0xb8] sm:$0xff]  ;;  %885 = vst.msk [vmem:[#allocation2 + $0x48] sm:$0xff] %vm875_vm1, %v11879_v40  ;;  %s11801_s12 = scalar_lea.hbm %s12579_s24, %s6763_s23 }
  0x5d   : > { %7457 = vmatprep.subr.mxu0 %v508_v6  ;;  %v498_v32 = vld [vmem:[%s8527_s25 + $0xc0] sm:$0xff]  ;;  %v499_v33 = vld [vmem:[%s8527_s25 + $0xc8] sm:$0xff]  ;;  %v500_v34 = vld [vmem:[%s8527_s25 + $0xd0] sm:$0xff]  ;;  %886 = vst.msk [vmem:[#allocation2 + $0x50] sm:$0xff] %vm875_vm1, %v11879_v40  ;;  %p8253_p9 = pneg %p8252_p7 }
  0x5e   : > { %7458 = vmatpush3.msra.mxu0 %v508_v6  ;;  %v501_v35 = vld [vmem:[%s8527_s25 + $0xd8] sm:$0xff]  ;;  %v502_v36 = vld [vmem:[%s8527_s25 + $0xe0] sm:$0xff]  ;;  %v503_v37 = vld [vmem:[%s8527_s25 + $0xe8] sm:$0xff]  ;;  %887 = vst.msk [vmem:[#allocation2 + $0x58] sm:$0xff] %vm875_vm1, %v11879_v40 }
  0x5f   : > { %7459 = vmatprep.subr.mxu0 %v507_v7  ;;  %v504_v38 = vld [vmem:[%s8527_s25 + $0xf0] sm:$0xff]  ;;  %v505_v39 = vld [vmem:[%s8527_s25 + $0xf8] sm:$0xff]  ;;  %888 = vst.msk [vmem:[#allocation2 + $0x60] sm:$0xff] %vm875_vm1, %v11879_v40  ;;  %889 = vst.msk [vmem:[#allocation2 + $0x68] sm:$0xff] %vm875_vm1, %v11879_v40 }
  0x60   : > { %7460 = vmatpush3.msra.mxu0 %v507_v7  ;;  %890 = vst.msk [vmem:[#allocation2 + $0x70] sm:$0xff] %vm875_vm1, %v11879_v40  ;;  %891 = vst.msk [vmem:[#allocation2 + $0x78] sm:$0xff] %vm875_vm1, %v11879_v40  ;;  %v1210_v41 = vld [vmem:[#allocation6 + $0x38] sm:$0xff]  ;;  %v1209_v42 = vld [vmem:[#allocation6 + $0x30] sm:$0xff] }
  0x61   : > { %7461 = vmatprep.subr.mxu0 %v506_v8  ;;  %892 = vst.msk [vmem:[#allocation2 + $0x80] sm:$0xff] %vm875_vm1, %v11879_v40  ;;  %893 = vst.msk [vmem:[#allocation2 + $0x88] sm:$0xff] %vm875_vm1, %v11879_v40  ;;  %8087 = vmatprep.subr.mxu1 %v1210_v41  ;;  %v1208_v43 = vld [vmem:[#allocation6 + $0x28] sm:$0xff]  ;;  %v1207_v44 = vld [vmem:[#allocation6 + $0x20] sm:$0xff] }
  0x62   : > { %7462 = vmatpush3.msra.mxu0 %v506_v8  ;;  %894 = vst.msk [vmem:[#allocation2 + $0x90] sm:$0xff] %vm875_vm1, %v11879_v40  ;;  %895 = vst.msk [vmem:[#allocation2 + $0x98] sm:$0xff] %vm875_vm1, %v11879_v40  ;;  %8091 = vmatpush3.msra.mxu1 %v1210_v41  ;;  %v1175_v45 = vld [vmem:[#allocation2 + $0x8] sm:$0xff]  ;;  %v1176_v46 = vld [vmem:[#allocation2 + $0x10] sm:$0xff] }
  0x63   : > { %7464 = vmatmul.mubr.msk.f32.vlgmr.msra.gmra.mxu0 %vm11884_vm0, %v475_v9  ;;  %896 = vst.msk [vmem:[#allocation2 + $0xa0] sm:$0xff] %vm875_vm1, %v11879_v40  ;;  %897 = vst.msk [vmem:[#allocation2 + $0xa8] sm:$0xff] %vm875_vm1, %v11879_v40  ;;  %7511 = vmatprep.subr.mxu0 %v1210_v41  ;;  %v2016_v47 = vld [vmem:[#allocation6 + $0x58] sm:$0xff]  ;;  %v2015_v48 = vld [vmem:[#allocation6 + $0x50] sm:$0xff] }
  0x64   : > { %7466 = vmatprep.mubr.msk.f32.mxu0 %vm11884_vm0, %v476_v10  ;;  %898 = vst.msk [vmem:[#allocation2 + $0xb0] sm:$0xff] %vm875_vm1, %v11879_v40  ;;  %899 = vst.msk [vmem:[#allocation2 + $0xb8] sm:$0xff] %vm875_vm1, %v11879_v40  ;;  %7512 = vmatpush3.msra.mxu0 %v1210_v41  ;;  %v2014_v49 = vld [vmem:[#allocation6 + $0x48] sm:$0xff]  ;;  %v2013_v50 = vld [vmem:[#allocation6 + $0x40] sm:$0xff] }
  0x65   : > { %900 = vst.msk [vmem:[#allocation2 + $0xc0] sm:$0xff] %vm875_vm1, %v11879_v40  ;;  %901 = vst.msk [vmem:[#allocation2 + $0xc8] sm:$0xff] %vm875_vm1, %v11879_v40  ;;  %7513 = vmatprep.subr.mxu0 %v1209_v42  ;;  %8088 = vmatprep.subr.mxu1 %v1209_v42  ;;  %v8703_v51 = vld [vmem:[#allocation6 + $0x18] sm:$0xff]  ;;  %v8712_v53 = vld [vmem:[%s11856_s2] ss:$0 sm:$0xff] }
  0x66   : > { %902 = vst.msk [vmem:[#allocation2 + $0xd0] sm:$0xff] %vm875_vm1, %v11879_v40  ;;  %903 = vst.msk [vmem:[#allocation2 + $0xd8] sm:$0xff] %vm875_vm1, %v11879_v40  ;;  %7514 = vmatpush3.msra.mxu0 %v1209_v42  ;;  %8092 = vmatpush3.msra.mxu1 %v1209_v42  ;;  %v8706_v52 = vld [vmem:[#allocation6 + $0x98] sm:$0xff] }
  0x67   : > { %7467 = vmatmul.mubr.msk.f32.gmra.mxu0 %vm11884_vm0, %v477_v11  ;;  %904 = vst.msk [vmem:[#allocation2 + $0xe0] sm:$0xff] %vm875_vm1, %v11879_v40  ;;  %905 = vst.msk [vmem:[#allocation2 + $0xe8] sm:$0xff] %vm875_vm1, %v11879_v40  ;;  %7515 = vmatprep.subr.mxu0 %v1208_v43  ;;  %v980_v11 = vand.u32 15, %v8724_v4 }
  0x68   : > { %7469 = vmatprep.mubr.msk.f32.mxu0 %vm11884_vm0, %v478_v12  ;;  %906 = vst.msk [vmem:[#allocation2 + $0xf0] sm:$0xff] %vm875_vm1, %v11879_v40  ;;  %907 = vst.msk [vmem:[#allocation2 + $0xf8] sm:$0xff] %vm875_vm1, %v11879_v40  ;;  %8089 = vmatprep.subr.mxu1 %v1208_v43  ;;  %v8732_v12 = vadd.s32 24, %v8717_v61 }
  0x69   : > { %908 = vst.msk [vmem:[#allocation2 + $0x100] sm:$0xff] %vm875_vm1, %v11879_v40  ;;  %909 = vst.msk [vmem:[#allocation2 + $0x108] sm:$0xff] %vm875_vm1, %v11879_v40  ;;  %7516 = vmatpush3.msra.mxu0 %v1208_v43  ;;  %8093 = vmatpush3.msra.mxu1 %v1208_v43  ;;  %vm8749_vm2 = vcmp.lt.s32.totalorder %v980_v11, 15  ;;  %v12115_v43 = vmov 0  ;;  %v4475_v11 = vld [vmem:[#allocation6 + $0x100] sm:$0xff] }
  0x6a   : > { %910 = vst.msk [vmem:[#allocation2 + $0x110] sm:$0xff] %vm875_vm1, %v11879_v40  ;;  %911 = vst.msk [vmem:[#allocation2 + $0x118] sm:$0xff] %vm875_vm1, %v11879_v40  ;;  %7517 = vmatprep.subr.mxu0 %v1207_v44  ;;  %8090 = vmatprep.subr.mxu1 %v1207_v44 }
  0x6b   : > { %7470 = vmatmul.mubr.msk.f32.gmra.mxu0 %vm11884_vm0, %v479_v13  ;;  %912 = vst.msk [vmem:[#allocation2 + $0x120] sm:$0xff] %vm875_vm1, %v11879_v40  ;;  %913 = vst.msk [vmem:[#allocation2 + $0x128] sm:$0xff] %vm875_vm1, %v11879_v40  ;;  %8094 = vmatpush3.msra.mxu1 %v1207_v44 }
  0x6c   : > { %7472 = vmatprep.mubr.msk.f32.mxu0 %vm11884_vm0, %v480_v14  ;;  %7518 = vmatpush3.msra.mxu0 %v1207_v44  ;;  %12105 = vst [vmem:[#allocation15_spill] sm:$0xff] %v8717_v61  ;;  %12106 = vst [vmem:[#allocation16_spill] sm:$0xff] %v8724_v4 }
  0x6d   : > { %7623 = vmatprep.subr.mxu0 %v2016_v47  ;;  %7567 = vmatprep.subr.mxu1 %v8703_v51  ;;  %12107 = vst [vmem:[#allocation17_spill] sm:$0xff] %v8732_v12 }
  0x6f   : > { %7473 = vmatmul.mubr.msk.f32.gmra.mxu0 %vm11884_vm0, %v481_v15 }
  0x70   : > { %7475 = vmatprep.mubr.msk.f32.mxu0 %vm11884_vm0, %v482_v16 }
  0x73   : > { %7476 = vmatmul.mubr.msk.f32.gmra.mxu0 %vm11884_vm0, %v483_v17  ;;  %v1853_v17 = vld [vmem:[#allocation2 + $0x9] sm:$0xff] }
  0x74   : > { %7478 = vmatprep.mubr.msk.f32.mxu0 %vm11884_vm0, %v484_v18  ;;  %v8739_v18 = vadd.s32 16, %v8717_v61 }
  0x76   : > { %12108 = vst [vmem:[#allocation18_spill] sm:$0xff] %v8739_v18 }
  0x77   : > { %7479 = vmatmul.mubr.msk.f32.gmra.mxu0 %vm11884_vm0, %v485_v19 }
  0x78   : > { %7481 = vmatprep.mubr.msk.f32.mxu0 %vm11884_vm0, %v486_v20 }
  0x7b   : > { %7482 = vmatmul.mubr.msk.f32.gmra.mxu0 %vm11884_vm0, %v487_v21 }
  0x7c   : > { %7484 = vmatprep.mubr.msk.f32.mxu0 %vm11884_vm0, %v488_v22 }
  0x7f   : > { %7485 = vmatmul.mubr.msk.f32.gmra.mxu0 %vm11884_vm0, %v489_v23 }
  0x80   : > { %7487 = vmatprep.mubr.msk.f32.mxu0 %vm11884_vm0, %v490_v24  ;;  %v12109_v24 = vmov 0 }
  0x81   : > { %v12110_v24 = vsel %vm8749_vm2, 4294967295, %v12109_v24 }
  0x82   : > { %12111 = vst [vmem:[#allocation19_spill] sm:$0xff] %v12110_v24 }
  0x83   : > { %7488 = vmatmul.mubr.msk.f32.gmra.mxu0 %vm11884_vm0, %v491_v25  ;;  %v982_v25 = vand.u32 15, %v8732_v12 }
  0x84   : > { %7490 = vmatprep.mubr.msk.f32.mxu0 %vm11884_vm0, %v492_v26  ;;  %v8755_v26 = vadd.s32 40, %v8717_v61 }
  0x85   : > { %vm8780_vm3 = vcmp.lt.s32.totalorder %v982_v25, 15  ;;  %v8849_v25 = vld [vmem:[#allocation6 + $0x78] sm:$0xff] }
  0x86   : > { %12112 = vst [vmem:[#allocation20_spill] sm:$0xff] %v8755_v26  ;;  %v12116_v43 = vsel %vm8780_vm3, 4294967295, %v12115_v43  ;;  %v984_v44 = vand.u32 15, %v8755_v26 }
  0x87   : > { %7491 = vmatmul.mubr.msk.f32.gmra.mxu0 %vm11884_vm0, %v493_v27  ;;  %12117 = vst [vmem:[#allocation23_spill] sm:$0xff] %v12116_v43 }
  0x88   : > { %7493 = vmatprep.mubr.msk.f32.mxu0 %vm11884_vm0, %v494_v28  ;;  %vm8814_vm5 = vcmp.lt.s32.totalorder %v984_v44, 15 }
  0x8b   : > { %7494 = vmatmul.mubr.msk.f32.gmra.mxu0 %vm11884_vm0, %v495_v29 }
  0x8c   : > { %7496 = vmatprep.mubr.msk.f32.mxu0 %vm11884_vm0, %v496_v30 }
  0x8f   : > { %7497 = vmatmul.mubr.msk.f32.gmra.mxu0 %vm11884_vm0, %v497_v31  ;;  %v981_v31 = vand.u32 15, %v8739_v18  ;;  %v970_v18 = vadd.s32 184, %v8717_v61 }
  0x90   : > { %7499 = vmatprep.mubr.msk.f32.mxu0 %vm11884_vm0, %v498_v32  ;;  %v8764_v32 = vadd.s32 32, %v8717_v61 }
  0x91   : > { %vm8791_vm4 = vcmp.ge.s32.totalorder %v981_v31, 1 }
  0x92   : > { %12113 = vst [vmem:[#allocation21_spill] sm:$0xff] %v8764_v32 }
  0x93   : > { %7500 = vmatmul.mubr.msk.f32.gmra.mxu0 %vm11884_vm0, %v499_v33 }
  0x94   : > { %7502 = vmatprep.mubr.msk.f32.mxu0 %vm11884_vm0, %v500_v34 }
  0x97   : > { %7503 = vmatmul.mubr.msk.f32.gmra.mxu0 %vm11884_vm0, %v501_v35 }
  0x98   : > { %7505 = vmatprep.mubr.msk.f32.mxu0 %vm11884_vm0, %v502_v36 }
  0x9b   : > { %7506 = vmatmul.mubr.msk.f32.gmra.mxu0 %vm11884_vm0, %v503_v37  ;;  %v8775_v37 = vadd.s32 56, %v8717_v61 }
  0x9c   : > { %7508 = vmatprep.mubr.msk.f32.mxu0 %vm11884_vm0, %v504_v38  ;;  %v1173_v38 = vld [vmem:[#allocation6 + $0x10] sm:$0xff] }
  0x9d   : > { %12114 = vst [vmem:[#allocation22_spill] sm:$0xff] %v8775_v37 }
  0x9f   : > { %7509 = vmatmul.mubr.msk.f32.gmra.mxu0 %vm11884_vm0, %v505_v39 }
  0xa0   : > { %7519 = vmatprep.mubr.msk.f32.mxu0 %vm875_vm1, %v1175_v45 }
  0xa3   : > { %7520 = vmatmul.mubr.msk.f32.vlgmr.msra.gmra.mxu0 %vm875_vm1, %v1176_v46 }
  0xa4   : > { %7624 = vmatpush3.msra.mxu0 %v2016_v47 }
  0xa5   : > { %7625 = vmatprep.subr.mxu0 %v2015_v48 }
  0xa6   : > { %7626 = vmatpush3.msra.mxu0 %v2015_v48 }
  0xa7   : > { %7627 = vmatprep.subr.mxu0 %v2014_v49 }
  0xa8   : > { %7628 = vmatpush3.msra.mxu0 %v2014_v49  ;;  %v1172_v49 = vld [vmem:[#allocation6 + $0x8] sm:$0xff] }
  0xa9   : > { %7629 = vmatprep.subr.mxu0 %v2013_v50 }
  0xaa   : > { %7630 = vmatpush3.msra.mxu0 %v2013_v50  ;;  %v4476_v50 = vld [vmem:[#allocation6 + $0x108] sm:$0xff] }
  0xab   : > { %7735 = vmatprep.subr.mxu0 %v8706_v52 }
 0x123   : > { %v7465_v54 = vpop.f32.mrf.mxu0 }
 0x124   : > { %v690_v56 = vadd.f32 %v7465_v54, %v8712_v53  ;;  %v983_v54 = vand.u32 15, %v8764_v32 }
 0x125   : > { %v684_v57 = vpop.f32.mrf.mxu0 }
 0x126   : > { %v844_v58 = vmax.f32 %v690_v56, 0.0  ;;  %v685_v59 = vadd.f32 %v8712_v53, %v684_v57  ;;  %v8798_v56 = vadd.s32 48, %v8717_v61  ;;  %vm8827_vm6 = vcmp.ge.s32.totalorder %v983_v54, 1 }
 0x127   : > { %v7468_v60 = vpop.f32.mrf.mxu0 }
 0x128   : > { %915 = vst.msk [vmem:[#allocation2 + $0x20] sm:$0xff] %vm875_vm1, %v844_v58  ;;  %v843_v62 = vmax.f32 %v685_v59, 0.0  ;;  %v700_v63 = vadd.f32 %v7468_v60, %v8712_v53  ;;  %12120 = vst [vmem:[#allocation24_spill] sm:$0xff] %v8798_v56  ;;  %v2825_v60 = vld [vmem:[#allocation6 + $0x90] sm:$0xff] }
 0x129   : > { %v694_v0 = vpop.f32.mrf.mxu0 }
 0x12a   : > { %914 = vst.msk [vmem:[#allocation2 + $0x18] sm:$0xff] %vm875_vm1, %v843_v62  ;;  %v846_v1 = vmax.f32 %v700_v63, 0.0  ;;  %v695_v2 = vadd.f32 %v8712_v53, %v694_v0 }
 0x12b   : > { %v7471_v3 = vpop.f32.mrf.mxu0 }
 0x12c   : > { %917 = vst.msk [vmem:[#allocation2 + $0x30] sm:$0xff] %vm875_vm1, %v846_v1  ;;  %v845_v5 = vmax.f32 %v695_v2, 0.0  ;;  %v710_v6 = vadd.f32 %v7471_v3, %v8712_v53  ;;  %v12121_v2 = vmov 0  ;;  %v956_v3 = vadd.s32 72, %v8717_v61 }
 0x12d   : > { %v704_v7 = vpop.f32.mrf.mxu0  ;;  %v12122_v2 = vsel %vm8814_vm5, 4294967295, %v12121_v2 }
 0x12e   : > { %916 = vst.msk [vmem:[#allocation2 + $0x28] sm:$0xff] %vm875_vm1, %v845_v5  ;;  %v848_v8 = vmax.f32 %v710_v6, 0.0  ;;  %v705_v9 = vadd.f32 %v8712_v53, %v704_v7  ;;  %12123 = vst [vmem:[#allocation25_spill] sm:$0xff] %v12122_v2  ;;  %v1171_v5 = vld [vmem:[#allocation6] sm:$0xff]  ;;  %v988_v31 = vand.u32 15, %v956_v3  ;;  %v960_v3 = vadd.s32 104, %v8717_v61 }
 0x12f   : > { %v7474_v10 = vpop.f32.mrf.mxu0  ;;  %v8745_v21 = vld [vmem:[#allocation2 + $0x20] sm:$0xff]  ;;  %v965_v6 = vadd.s32 144, %v8717_v61  ;;  %v971_v2 = vadd.s32 192, %v8717_v61 }
 0x130   : > { %919 = vst.msk [vmem:[#allocation2 + $0x40] sm:$0xff] %vm875_vm1, %v848_v8  ;;  %v847_v13 = vmax.f32 %v705_v9, 0.0  ;;  %v720_v14 = vadd.f32 %v7474_v10, %v8712_v53  ;;  %vm8883_vm9 = vcmp.lt.s32.totalorder %v988_v31, 15 }
 0x131   : > { %v714_v15 = vpop.f32.mrf.mxu0  ;;  %v8736_v16 = vld [vmem:[#allocation2 + $0x18] sm:$0xff] }
 0x132   : > { %918 = vst.msk [vmem:[#allocation2 + $0x38] sm:$0xff] %vm875_vm1, %v847_v13  ;;  %v850_v19 = vmax.f32 %v720_v14, 0.0  ;;  %v715_v20 = vadd.f32 %v8712_v53, %v714_v15  ;;  %7522 = vmatprep.mubr.msk.f32.mxu0 %vm875_vm1, %v8736_v16  ;;  %v1854_v23 = vld [vmem:[#allocation2 + $0x11] sm:$0xff]  ;;  %v1855_v41 = vld [vmem:[#allocation2 + $0x19] sm:$0xff]  ;;  %v985_v13 = vand.u32 15, %v8798_v56  ;;  %v8833_v14 = vadd.s32 64, %v8717_v61 }
 0x133   : > { %v7477_v22 = vpop.f32.mrf.mxu0  ;;  %7523 = vmatmul.mubr.msk.f32.gmra.mxu0 %vm875_vm1, %v8745_v21  ;;  %v8770_v35 = vld [vmem:[#allocation2 + $0x30] sm:$0xff]  ;;  %v1982_v36 = vsel %vm8749_vm2, %v1854_v23, 0.0 }
 0x134   : > { %921 = vst.msk [vmem:[#allocation2 + $0x50] sm:$0xff] %vm875_vm1, %v850_v19  ;;  %v849_v27 = vmax.f32 %v715_v20, 0.0  ;;  %v730_v28 = vadd.f32 %v7477_v22, %v8712_v53  ;;  %7631 = vmatprep.mubr.msk.f32.mxu0 %vm875_vm1, %v1853_v17  ;;  %v12126_v22 = vmov 0  ;;  %vm8863_vm8 = vcmp.ge.s32.totalorder %v985_v13, 1 }
 0x135   : > { %v724_v29 = vpop.f32.mrf.mxu0  ;;  %v8760_v30 = vld [vmem:[#allocation2 + $0x28] sm:$0xff] }
 0x136   : > { %920 = vst.msk [vmem:[#allocation2 + $0x48] sm:$0xff] %vm875_vm1, %v849_v27  ;;  %v852_v33 = vmax.f32 %v730_v28, 0.0  ;;  %v725_v34 = vadd.f32 %v8712_v53, %v724_v29  ;;  %7525 = vmatprep.mubr.msk.f32.mxu1 %vm875_vm1, %v8760_v30  ;;  %v1856_v42 = vld [vmem:[#allocation2 + $0x21] sm:$0xff]  ;;  %v1857_v0 = vld [vmem:[#allocation2 + $0x29] sm:$0xff] }
 0x137   : > { %v7480_v39 = vpop.f32.mrf.mxu0  ;;  %7526 = vmatmul.mubr.msk.f32.vlgmr.msra.gmra.mxu1 %vm875_vm1, %v8770_v35  ;;  %7632 = vmatmul.mubr.msk.f32.vlgmr.msra.gmra.mxu0 %vm875_vm1, %v1982_v36  ;;  %v8804_v58 = vld [vmem:[#allocation2 + $0x40] sm:$0xff]  ;;  %v1984_v59 = vsel %vm8780_vm3, %v1856_v42, 0.0 }
 0x138   : > { %923 = vst.msk [vmem:[#allocation2 + $0x60] sm:$0xff] %vm875_vm1, %v852_v33  ;;  %v851_v45 = vmax.f32 %v725_v34, 0.0  ;;  %v740_v46 = vadd.f32 %v7480_v39, %v8712_v53  ;;  %7634 = vmatprep.mubr.msk.f32.mxu0 %vm875_vm1, %v1855_v41  ;;  %7568 = vmatpush3.msra.mxu1 %v8703_v51  ;;  %v958_v33 = vadd.s32 88, %v8717_v61  ;;  %v2824_v34 = vld [vmem:[#allocation6 + $0x88] sm:$0xff] }
 0x139   : > { %v734_v47 = vpop.f32.mrf.mxu0  ;;  %v8789_v48 = vld [vmem:[#allocation2 + $0x38] sm:$0xff]  ;;  %7569 = vmatprep.subr.mxu1 %v1173_v38  ;;  %7736 = vmatpush3.msra.mxu0 %v8706_v52  ;;  %v986_v52 = vand.u32 15, %v8775_v37 }
 0x13a   : > { %922 = vst.msk [vmem:[#allocation2 + $0x58] sm:$0xff] %vm875_vm1, %v851_v45  ;;  %v854_v57 = vmax.f32 %v740_v46, 0.0  ;;  %v735_v51 = vadd.f32 %v8712_v53, %v734_v47  ;;  %7528 = vmatprep.mubr.msk.f32.mxu1 %vm875_vm1, %v8789_v48  ;;  %7570 = vmatpush3.msra.mxu1 %v1173_v38  ;;  %v8809_v62 = vld [vmem:[#allocation2 + $0x37] sm:$0xff]  ;;  %v957_v45 = vadd.s32 80, %v8717_v61 }
 0x13b   : > { %v7483_v63 = vpop.f32.mrf.mxu0  ;;  %7529 = vmatmul.mubr.msk.f32.gmra.mxu1 %vm875_vm1, %v8804_v58  ;;  %7635 = vmatmul.mubr.msk.f32.gmra.mxu0 %vm875_vm1, %v1984_v59  ;;  %v1858_v1 = vld [vmem:[#allocation2 + $0x31] sm:$0xff]  ;;  %vm8843_vm7 = vcmp.lt.s32.totalorder %v986_v52, 15  ;;  %v1859_v28 = vld [vmem:[#allocation2 + $0x39] sm:$0xff] }
 0x13c   : > { %925 = vst.msk [vmem:[#allocation2 + $0x70] sm:$0xff] %vm875_vm1, %v854_v57  ;;  %v853_v7 = vmax.f32 %v735_v51, 0.0  ;;  %v750_v8 = vadd.f32 %v7483_v63, %v8712_v53  ;;  %7637 = vmatprep.mubr.msk.f32.mxu0 %vm875_vm1, %v1857_v0  ;;  %7571 = vmatprep.subr.mxu1 %v1172_v49  ;;  %v8839_v19 = vld [vmem:[#allocation2 + $0x50] sm:$0xff]  ;;  %v1986_v20 = vsel %vm8814_vm5, %v1858_v1, 0.0  ;;  %v12127_v22 = vsel %vm8843_vm7, 4294967295, %v12126_v22 }
 0x13d   : > { %v744_v9 = vpop.f32.mrf.mxu0  ;;  %v8825_v10 = vld [vmem:[#allocation2 + $0x48] sm:$0xff]  ;;  %7572 = vmatpush3.msra.mxu1 %v1172_v49  ;;  %7737 = vmatprep.subr.mxu0 %v2825_v60  ;;  %12128 = vst [vmem:[#allocation26_spill] sm:$0xff] %v12127_v22  ;;  %v2823_v57 = vld [vmem:[#allocation6 + $0x80] sm:$0xff]  ;;  %v987_v51 = vand.u32 15, %v8833_v14  ;;  %v12131_v0 = vmov 0  ;;  %v990_v1 = vand.u32 15, %v958_v33 }
 0x13e   : > { %924 = vst.msk [vmem:[#allocation2 + $0x68] sm:$0xff] %vm875_vm1, %v853_v7  ;;  %v856_v15 = vmax.f32 %v750_v8, 0.0  ;;  %v745_v17 = vadd.f32 %v8712_v53, %v744_v9  ;;  %7531 = vmatprep.mubr.msk.f32.mxu1 %vm875_vm1, %v8825_v10  ;;  %7573 = vmatprep.subr.mxu1 %v1171_v5  ;;  %v8847_v23 = vld [vmem:[#allocation2 + $0x47] sm:$0xff]  ;;  %v12132_v0 = vsel %vm8883_vm9, 4294967295, %v12131_v0  ;;  %v989_v14 = vand.u32 15, %v957_v45 }
 0x13f   : > { %v7486_v27 = vpop.f32.mrf.mxu0  ;;  %7532 = vmatmul.mubr.msk.f32.gmra.mxu1 %vm875_vm1, %v8839_v19  ;;  %7638 = vmatmul.mubr.msk.f32.gmra.mxu0 %vm875_vm1, %v1986_v20  ;;  %v1860_v29 = vld [vmem:[#allocation2 + $0x41] sm:$0xff]  ;;  %12133 = vst [vmem:[#allocation27_spill] sm:$0xff] %v12132_v0  ;;  %vm8907_vm10 = vcmp.ge.s32.totalorder %v987_v51, 1  ;;  %vm8916_vm11 = vcmp.lt.s32.totalorder %v990_v1, 15  ;;  %v992_v45 = vand.u32 15, %v960_v3  ;;  %v972_v0 = vadd.s32 200, %v8717_v61 }
 0x140   : > { %927 = vst.msk [vmem:[#allocation2 + $0x80] sm:$0xff] %vm875_vm1, %v856_v15  ;;  %v855_v38 = vmax.f32 %v745_v17, 0.0  ;;  %v760_v39 = vadd.f32 %v7486_v27, %v8712_v53  ;;  %7640 = vmatprep.mubr.msk.f32.mxu0 %vm875_vm1, %v1859_v28  ;;  %7574 = vmatpush3.msra.mxu1 %v1171_v5  ;;  %v8873_v49 = vld [vmem:[#allocation2 + $0x60] sm:$0xff]  ;;  %v1988_v54 = vsel %vm8843_vm7, %v1860_v29, 0.0  ;;  %v959_v15 = vadd.s32 96, %v8717_v61  ;;  %v8897_v17 = vld [vmem:[#allocation6 + $0xd8] sm:$0xff] }
 0x141   : > { %v754_v41 = vpop.f32.mrf.mxu0  ;;  %v8861_v42 = vld [vmem:[#allocation2 + $0x58] sm:$0xff]  ;;  %7738 = vmatpush3.msra.mxu0 %v2825_v60  ;;  %7679 = vmatprep.subr.mxu1 %v8849_v25  ;;  %v1861_v60 = vld [vmem:[#allocation2 + $0x49] sm:$0xff]  ;;  %vm8930_vm12 = vcmp.ge.s32.totalorder %v989_v14, 1  ;;  %vm8948_vm13 = vcmp.lt.s32.totalorder %v992_v45, 15 }
 0x142   : > { %926 = vst.msk [vmem:[#allocation2 + $0x78] sm:$0xff] %vm875_vm1, %v855_v38  ;;  %v858_v46 = vmax.f32 %v760_v39, 0.0  ;;  %v755_v47 = vadd.f32 %v8712_v53, %v754_v41  ;;  %7534 = vmatprep.mubr.msk.f32.mxu1 %vm875_vm1, %v8861_v42  ;;  %7739 = vmatprep.subr.mxu0 %v2824_v34  ;;  %v8878_v59 = vld [vmem:[#allocation2 + $0x57] sm:$0xff]  ;;  %v12136_v41 = vmov 0 }
 0x143   : > { %v7489_v52 = vpop.f32.mrf.mxu0  ;;  %7535 = vmatmul.mubr.msk.f32.gmra.mxu1 %vm875_vm1, %v8873_v49  ;;  %7641 = vmatmul.mubr.msk.f32.gmra.mxu0 %vm875_vm1, %v1988_v54  ;;  %v1862_v63 = vld [vmem:[#allocation2 + $0x51] sm:$0xff]  ;;  %v1863_v38 = vld [vmem:[#allocation2 + $0x59] sm:$0xff]  ;;  %v12137_v41 = vsel %vm8916_vm11, 4294967295, %v12136_v41 }
 0x144   : > { %929 = vst.msk [vmem:[#allocation2 + $0x90] sm:$0xff] %vm875_vm1, %v858_v46  ;;  %v857_v7 = vmax.f32 %v755_v47, 0.0  ;;  %v770_v8 = vadd.f32 %v7489_v52, %v8712_v53  ;;  %7643 = vmatprep.mubr.msk.f32.mxu0 %vm875_vm1, %v1861_v60  ;;  %7740 = vmatpush3.msra.mxu0 %v2824_v34  ;;  %v8903_v28 = vld [vmem:[#allocation2 + $0x70] sm:$0xff]  ;;  %v1990_v29 = vsel %vm8883_vm9, %v1862_v63, 0.0  ;;  %12138 = vst [vmem:[#allocation28_spill] sm:$0xff] %v12137_v41  ;;  %v962_v46 = vadd.s32 120, %v8717_v61 }
 0x145   : > { %v764_v9 = vpop.f32.mrf.mxu0  ;;  %v8894_v13 = vld [vmem:[#allocation2 + $0x68] sm:$0xff]  ;;  %7741 = vmatprep.subr.mxu0 %v2823_v57  ;;  %v991_v63 = vand.u32 15, %v959_v15  ;;  %v966_v47 = vadd.s32 152, %v8717_v61  ;;  %v1002_v41 = vand.u32 15, %v970_v18 }
 0x146   : > { %928 = vst.msk [vmem:[#allocation2 + $0x88] sm:$0xff] %vm875_vm1, %v857_v7  ;;  %v860_v20 = vmax.f32 %v770_v8, 0.0  ;;  %v765_v27 = vadd.f32 %v8712_v53, %v764_v9  ;;  %7537 = vmatprep.mubr.msk.f32.mxu1 %vm875_vm1, %v8894_v13  ;;  %7742 = vmatpush3.msra.mxu0 %v2823_v57  ;;  %v8911_v33 = vld [vmem:[#allocation2 + $0x67] sm:$0xff]  ;;  %v961_v9 = vadd.s32 112, %v8717_v61 }
 0x147   : > { %v7492_v34 = vpop.f32.mrf.mxu0  ;;  %7538 = vmatmul.mubr.msk.f32.gmra.mxu1 %vm875_vm1, %v8903_v28  ;;  %7644 = vmatmul.mubr.msk.f32.gmra.mxu0 %vm875_vm1, %v1990_v29  ;;  %v1864_v39 = vld [vmem:[#allocation2 + $0x61] sm:$0xff]  ;;  %v1865_v15 = vld [vmem:[#allocation2 + $0x69] sm:$0xff]  ;;  %v12141_v29 = vmov 0  ;;  %vm8961_vm14 = vcmp.ge.s32.totalorder %v991_v63, 1  ;;  %vm9103_vm7 = vcmp.lt.s32.totalorder %v1002_v41, 15  ;;  %v12209_v44 = vsel %vm8907_vm10, %v8911_v33, 0.0 }
 0x148   : > { %931 = vst.msk [vmem:[#allocation2 + $0xa0] sm:$0xff] %vm875_vm1, %v860_v20  ;;  %v859_v54 = vmax.f32 %v765_v27, 0.0  ;;  %v780_v57 = vadd.f32 %v7492_v34, %v8712_v53  ;;  %7646 = vmatprep.mubr.msk.f32.mxu0 %vm875_vm1, %v1863_v38  ;;  %7847 = vmatprep.subr.mxu0 %v8897_v17  ;;  %v8938_v7 = vld [vmem:[#allocation2 + $0x80] sm:$0xff]  ;;  %v1992_v8 = vsel %vm8916_vm11, %v1864_v39, 0.0  ;;  %v12142_v29 = vsel %vm8948_vm13, 4294967295, %v12141_v29 }
 0x149   : > { %v774_v51 = vpop.f32.mrf.mxu0  ;;  %v8928_v52 = vld [vmem:[#allocation2 + $0x78] sm:$0xff]  ;;  %12143 = vst [vmem:[#allocation29_spill] sm:$0xff] %v12142_v29  ;;  %v994_v34 = vand.u32 15, %v962_v46  ;;  %v964_v38 = vadd.s32 136, %v8717_v61  ;;  %v963_v46 = vadd.s32 128, %v8717_v61 }
 0x14a   : > { %930 = vst.msk [vmem:[#allocation2 + $0x98] sm:$0xff] %vm875_vm1, %v859_v54  ;;  %v862_v1 = vmax.f32 %v780_v57, 0.0  ;;  %v775_v3 = vadd.f32 %v8712_v53, %v774_v51  ;;  %7540 = vmatprep.mubr.msk.f32.mxu1 %vm875_vm1, %v8928_v52  ;;  %v8943_v14 = vld [vmem:[#allocation2 + $0x77] sm:$0xff] }
 0x14b   : > { %v7495_v20 = vpop.f32.mrf.mxu0  ;;  %7541 = vmatmul.mubr.msk.f32.gmra.mxu1 %vm875_vm1, %v8938_v7  ;;  %7647 = vmatmul.mubr.msk.f32.gmra.mxu0 %vm875_vm1, %v1992_v8  ;;  %v1866_v27 = vld [vmem:[#allocation2 + $0x71] sm:$0xff]  ;;  %vm8979_vm15 = vcmp.lt.s32.totalorder %v994_v34, 15  ;;  %v996_v39 = vand.u32 15, %v964_v38  ;;  %v995_v34 = vand.u32 15, %v963_v46  ;;  %v12210_v31 = vsel %vm8930_vm12, %v8943_v14, 0.0 }
 0x14c   : > { %933 = vst.msk [vmem:[#allocation2 + $0xb0] sm:$0xff] %vm875_vm1, %v862_v1  ;;  %v861_v54 = vmax.f32 %v775_v3, 0.0  ;;  %v790_v57 = vadd.f32 %v7495_v20, %v8712_v53  ;;  %7649 = vmatprep.mubr.msk.f32.mxu0 %vm875_vm1, %v1865_v15  ;;  %v8970_v1 = vld [vmem:[#allocation2 + $0x90] sm:$0xff]  ;;  %v1994_v3 = vsel %vm8948_vm13, %v1866_v27, 0.0  ;;  %v993_v20 = vand.u32 15, %v961_v9 }
 0x14d   : > { %v784_v51 = vpop.f32.mrf.mxu0  ;;  %v8959_v8 = vld [vmem:[#allocation2 + $0x88] sm:$0xff]  ;;  %vm9010_vm13 = vcmp.lt.s32.totalorder %v996_v39, 15  ;;  %v998_v9 = vand.u32 15, %v966_v47  ;;  %v997_v47 = vand.u32 15, %v965_v6  ;;  %v12156_v6 = vmov 0 }
 0x14e   : > { %932 = vst.msk [vmem:[#allocation2 + $0xa8] sm:$0xff] %vm875_vm1, %v861_v54  ;;  %v864_v40 = vmax.f32 %v790_v57, 0.0  ;;  %v785_v55 = vadd.f32 %v8712_v53, %v784_v51  ;;  %7543 = vmatprep.mubr.msk.f32.mxu1 %vm875_vm1, %v8959_v8  ;;  %v8974_v63 = vld [vmem:[#allocation2 + $0x87] sm:$0xff]  ;;  %v1867_v54 = vld [vmem:[#allocation2 + $0x79] sm:$0xff]  ;;  %v12146_v51 = vmov 0  ;;  %vm9001_vm0 = vcmp.ge.s32.totalorder %v993_v20, 1 }
 0x14f   : > { %v7498_v15 = vpop.f32.mrf.mxu0  ;;  %7544 = vmatmul.mubr.msk.f32.gmra.mxu1 %vm875_vm1, %v8970_v1  ;;  %7650 = vmatmul.mubr.msk.f32.gmra.mxu0 %vm875_vm1, %v1994_v3  ;;  %v1868_v57 = vld [vmem:[#allocation2 + $0x81] sm:$0xff]  ;;  %v12147_v51 = vsel %vm8979_vm15, 4294967295, %v12146_v51  ;;  %v968_v20 = vadd.s32 168, %v8717_v61  ;;  %vm9041_vm11 = vcmp.lt.s32.totalorder %v998_v9, 15  ;;  %v12211_v60 = vsel %vm8961_vm14, %v8974_v63, 0.0 }
 0x150   : > { %12148 = vst [vmem:[#allocation30_spill] sm:$0xff] %v12147_v51  ;;  %935 = vst.msk [vmem:[#allocation2 + $0xc0] sm:$0xff] %vm875_vm1, %v864_v40  ;;  %v863_v27 = vmax.f32 %v785_v55, 0.0  ;;  %v800_v5 = vadd.f32 %v7498_v15, %v8712_v53  ;;  %7652 = vmatprep.mubr.msk.f32.mxu0 %vm875_vm1, %v1867_v54  ;;  %v8997_v40 = vld [vmem:[#allocation2 + $0xa0] sm:$0xff]  ;;  %v1996_v55 = vsel %vm8979_vm15, %v1868_v57, 0.0  ;;  %vm9023_vm15 = vcmp.ge.s32.totalorder %v995_v34, 1 }
 0x151   : > { %v794_v3 = vpop.f32.mrf.mxu0  ;;  %v8990_v36 = vld [vmem:[#allocation2 + $0x98] sm:$0xff]  ;;  %v12157_v6 = vsel %vm9041_vm11, 4294967295, %v12156_v6 }
 0x152   : > { %934 = vst.msk [vmem:[#allocation2 + $0xb8] sm:$0xff] %vm875_vm1, %v863_v27  ;;  %v866_v38 = vmax.f32 %v800_v5, 0.0  ;;  %v795_v37 = vadd.f32 %v8712_v53, %v794_v3  ;;  %7546 = vmatprep.mubr.msk.f32.mxu1 %vm875_vm1, %v8990_v36  ;;  %v9005_v46 = vld [vmem:[#allocation2 + $0x97] sm:$0xff]  ;;  %v1869_v5 = vld [vmem:[#allocation2 + $0x89] sm:$0xff]  ;;  %v12151_v3 = vmov 0  ;;  %12158 = vst [vmem:[#allocation32_spill] sm:$0xff] %v12157_v6 }
 0x153   : > { %v7501_v54 = vpop.f32.mrf.mxu0  ;;  %7547 = vmatmul.mubr.msk.f32.gmra.mxu1 %vm875_vm1, %v8997_v40  ;;  %7653 = vmatmul.mubr.msk.f32.gmra.mxu0 %vm875_vm1, %v1996_v55  ;;  %v1870_v27 = vld [vmem:[#allocation2 + $0x91] sm:$0xff]  ;;  %v12152_v3 = vsel %vm9010_vm13, 4294967295, %v12151_v3  ;;  %v12212_v45 = vsel %vm9001_vm0, %v9005_v46, 0.0 }
 0x154   : > { %12153 = vst [vmem:[#allocation31_spill] sm:$0xff] %v12152_v3  ;;  %937 = vst.msk [vmem:[#allocation2 + $0xd0] sm:$0xff] %vm875_vm1, %v866_v38  ;;  %v865_v56 = vmax.f32 %v795_v37, 0.0  ;;  %v810_v26 = vadd.f32 %v7501_v54, %v8712_v53  ;;  %7655 = vmatprep.mubr.msk.f32.mxu0 %vm875_vm1, %v1869_v5  ;;  %v9031_v37 = vld [vmem:[#allocation2 + $0xb0] sm:$0xff]  ;;  %v1998_v38 = vsel %vm9010_vm13, %v1870_v27, 0.0  ;;  %v967_v54 = vadd.s32 160, %v8717_v61 }
 0x155   : > { %v804_v55 = vpop.f32.mrf.mxu0  ;;  %v9021_v32 = vld [vmem:[#allocation2 + $0xa8] sm:$0xff]  ;;  %vm9054_vm13 = vcmp.ge.s32.totalorder %v997_v47, 1 }
 0x156   : > { %936 = vst.msk [vmem:[#allocation2 + $0xc8] sm:$0xff] %vm875_vm1, %v865_v56  ;;  %v868_v12 = vmax.f32 %v810_v26, 0.0  ;;  %v805_v57 = vadd.f32 %v8712_v53, %v804_v55  ;;  %7549 = vmatprep.mubr.msk.f32.mxu1 %vm875_vm1, %v9021_v32  ;;  %v9036_v34 = vld [vmem:[#allocation2 + $0xa7] sm:$0xff]  ;;  %v1871_v26 = vld [vmem:[#allocation2 + $0x99] sm:$0xff]  ;;  %v1000_v55 = vand.u32 15, %v968_v20  ;;  %v969_v20 = vadd.s32 176, %v8717_v61 }
 0x157   : > { %v7504_v5 = vpop.f32.mrf.mxu0  ;;  %7550 = vmatmul.mubr.msk.f32.gmra.mxu1 %vm875_vm1, %v9031_v37  ;;  %7656 = vmatmul.mubr.msk.f32.gmra.mxu0 %vm875_vm1, %v1998_v38  ;;  %v1872_v56 = vld [vmem:[#allocation2 + $0xa1] sm:$0xff]  ;;  %v12213_v15 = vsel %vm9023_vm15, %v9036_v34, 0.0 }
 0x158   : > { %939 = vst.msk [vmem:[#allocation2 + $0xe0] sm:$0xff] %vm875_vm1, %v868_v12  ;;  %v867_v4 = vmax.f32 %v805_v57, 0.0  ;;  %v820_v3 = vadd.f32 %v7504_v5, %v8712_v53  ;;  %7658 = vmatprep.mubr.msk.f32.mxu0 %vm875_vm1, %v1871_v26  ;;  %v9063_v12 = vld [vmem:[#allocation2 + $0xc0] sm:$0xff]  ;;  %v2000_v57 = vsel %vm9041_vm11, %v1872_v56, 0.0  ;;  %v999_v5 = vand.u32 15, %v967_v54 }
 0x159   : > { %v814_v38 = vpop.f32.mrf.mxu0  ;;  %v9052_v51 = vld [vmem:[#allocation2 + $0xb8] sm:$0xff]  ;;  %vm9072_vm9 = vcmp.lt.s32.totalorder %v1000_v55, 15  ;;  %v1001_v55 = vand.u32 15, %v969_v20  ;;  %v1004_v54 = vand.u32 15, %v972_v0  ;;  %v1003_v0 = vand.u32 15, %v971_v2 }
 0x15a   : > { %938 = vst.msk [vmem:[#allocation2 + $0xd8] sm:$0xff] %vm875_vm1, %v867_v4  ;;  %v870_v29 = vmax.f32 %v820_v3, 0.0  ;;  %v815_v27 = vadd.f32 %v8712_v53, %v814_v38  ;;  %7552 = vmatprep.mubr.msk.f32.mxu1 %vm875_vm1, %v9052_v51  ;;  %v9067_v47 = vld [vmem:[#allocation2 + $0xb7] sm:$0xff]  ;;  %v1873_v4 = vld [vmem:[#allocation2 + $0xa9] sm:$0xff]  ;;  %v12161_v38 = vmov 0  ;;  %vm9094_vm11 = vcmp.ge.s32.totalorder %v999_v5, 1 }
 0x15b   : > { %v7507_v26 = vpop.f32.mrf.mxu0  ;;  %7553 = vmatmul.mubr.msk.f32.gmra.mxu1 %vm875_vm1, %v9063_v12  ;;  %7659 = vmatmul.mubr.msk.f32.gmra.mxu0 %vm875_vm1, %v2000_v57  ;;  %v1874_v3 = vld [vmem:[#allocation2 + $0xb1] sm:$0xff]  ;;  %v12162_v38 = vsel %vm9072_vm9, 4294967295, %v12161_v38  ;;  %v974_v5 = vadd.s32 216, %v8717_v61  ;;  %vm9134_vm5 = vcmp.lt.s32.totalorder %v1004_v54, 15  ;;  %v12214_v39 = vsel %vm9054_vm13, %v9067_v47, 0.0 }
 0x15c   : > { %12163 = vst [vmem:[#allocation33_spill] sm:$0xff] %v12162_v38  ;;  %941 = vst.msk [vmem:[#allocation2 + $0xf0] sm:$0xff] %vm875_vm1, %v870_v29  ;;  %v869_v56 = vmax.f32 %v815_v27, 0.0  ;;  %v830_v6 = vadd.f32 %v7507_v26, %v8712_v53  ;;  %7661 = vmatprep.mubr.msk.f32.mxu0 %vm875_vm1, %v1873_v4  ;;  %v9090_v29 = vld [vmem:[#allocation2 + $0xd0] sm:$0xff]  ;;  %v2002_v27 = vsel %vm9072_vm9, %v1874_v3, 0.0  ;;  %vm9116_vm9 = vcmp.ge.s32.totalorder %v1001_v55, 1 }
 0x15d   : > { %v824_v57 = vpop.f32.mrf.mxu0  ;;  %v9083_v22 = vld [vmem:[#allocation2 + $0xc8] sm:$0xff]  ;;  %12165 = vst [vmem:[#allocation35_spill] sm:$0xff] %v9090_v29 }
 0x15e   : > { %12164 = vst [vmem:[#allocation34_spill] sm:$0xff] %v9083_v22  ;;  %940 = vst.msk [vmem:[#allocation2 + $0xe8] sm:$0xff] %vm875_vm1, %v869_v56  ;;  %v872_v18 = vmax.f32 %v830_v6, 0.0  ;;  %v825_v43 = vadd.f32 %v8712_v53, %v824_v57  ;;  %7555 = vmatprep.mubr.msk.f32.mxu1 %vm875_vm1, %v9083_v22  ;;  %v9098_v20 = vld [vmem:[#allocation2 + $0xc7] sm:$0xff]  ;;  %v1875_v6 = vld [vmem:[#allocation2 + $0xb9] sm:$0xff]  ;;  %v12168_v57 = vmov 0 }
 0x15f   : > { %v7510_v4 = vpop.f32.mrf.mxu0  ;;  %7556 = vmatmul.mubr.msk.f32.gmra.mxu1 %vm875_vm1, %v9090_v29  ;;  %7662 = vmatmul.mubr.msk.f32.gmra.mxu0 %vm875_vm1, %v2002_v27  ;;  %v1876_v56 = vld [vmem:[#allocation2 + $0xc1] sm:$0xff]  ;;  %v12169_v57 = vsel %vm9103_vm7, 4294967295, %v12168_v57  ;;  %v12215_v9 = vsel %vm9094_vm11, %v9098_v20, 0.0 }
 0x160   : > { %12170 = vst [vmem:[#allocation36_spill] sm:$0xff] %v12169_v57  ;;  %943 = vst.msk [vmem:[#allocation2 + $0x100] sm:$0xff] %vm875_vm1, %v872_v18  ;;  %v871_v38 = vmax.f32 %v825_v43, 0.0  ;;  %v840_v24 = vadd.f32 %v7510_v4, %v8712_v53  ;;  %7664 = vmatprep.mubr.msk.f32.mxu0 %vm875_vm1, %v1875_v6  ;;  %v9124_v43 = vld [vmem:[#allocation2 + $0xe0] sm:$0xff]  ;;  %v2004_v18 = vsel %vm9103_vm7, %v1876_v56, 0.0  ;;  %v973_v4 = vadd.s32 208, %v8717_v61 }
 0x161   : > { %v834_v27 = vpop.f32.mrf.mxu0  ;;  %v9114_v29 = vld [vmem:[#allocation2 + $0xd8] sm:$0xff]  ;;  %12173 = vst [vmem:[#allocation37_spill] sm:$0xff] %v9124_v43  ;;  %v976_v6 = vadd.s32 232, %v8717_v61  ;;  %v1011_v56 = vld [vmem:[#allocation2 + $0x7] sm:$0xff]  ;;  %vm9154_vm7 = vcmp.ge.s32.totalorder %v1003_v0, 1  ;;  %v978_v0 = vadd.s32 248, %v8717_v61 }
 0x162   : > { %942 = vst.msk [vmem:[#allocation2 + $0xf8] sm:$0xff] %vm875_vm1, %v871_v38  ;;  %v874_v22 = vmax.f32 %v840_v24, 0.0  ;;  %v835_v3 = vadd.f32 %v8712_v53, %v834_v27  ;;  %7558 = vmatprep.mubr.msk.f32.mxu1 %vm875_vm1, %v9114_v29  ;;  %v9129_v55 = vld [vmem:[#allocation2 + $0xd7] sm:$0xff]  ;;  %v1877_v24 = vld [vmem:[#allocation2 + $0xc9] sm:$0xff]  ;;  %v12174_v53 = vmov 0  ;;  %v1006_v38 = vand.u32 15, %v974_v5 }
 0x163   : > { %7559 = vmatmul.mubr.msk.f32.gmra.mxu1 %vm875_vm1, %v9124_v43  ;;  %7665 = vmatmul.mubr.msk.f32.gmra.mxu0 %vm875_vm1, %v2004_v18  ;;  %v1878_v2 = vld [vmem:[#allocation2 + $0xd1] sm:$0xff]  ;;  %v12175_v53 = vsel %vm9134_vm5, 4294967295, %v12174_v53  ;;  %v979_v18 = vand.u32 15, %v8717_v61  ;;  %v12181_v43 = vmov 0  ;;  %v12216_v26 = vsel %vm9116_vm9, %v9129_v55, 0.0 }
 0x164   : > { %12176 = vst [vmem:[#allocation38_spill] sm:$0xff] %v12175_v53  ;;  %945 = vst.msk [vmem:[#allocation2 + $0x110] sm:$0xff] %vm875_vm1, %v874_v22  ;;  %v873_v27 = vmax.f32 %v835_v3, 0.0  ;;  %7667 = vmatprep.mubr.msk.f32.mxu0 %vm875_vm1, %v1877_v24  ;;  %v9150_v54 = vld [vmem:[#allocation2 + $0xf0] sm:$0xff]  ;;  %v2006_v5 = vsel %vm9134_vm5, %v1878_v2, 0.0  ;;  %v1005_v3 = vand.u32 15, %v973_v4 }
 0x165   : > { %v9145_v57 = vld [vmem:[#allocation2 + $0xe8] sm:$0xff]  ;;  %12178 = vst [vmem:[#allocation40_spill] sm:$0xff] %v9150_v54  ;;  %vm9163_vm3 = vcmp.lt.s32.totalorder %v1006_v38, 15  ;;  %v1008_v2 = vand.u32 15, %v976_v6  ;;  %vm9172_vm5 = vcmp.ge.s32.totalorder %v979_v18, 1  ;;  %v12184_v53 = vmov 0 }
 0x166   : > { %12177 = vst [vmem:[#allocation39_spill] sm:$0xff] %v9145_v57  ;;  %944 = vst.msk [vmem:[#allocation2 + $0x108] sm:$0xff] %vm875_vm1, %v873_v27  ;;  %7561 = vmatprep.mubr.msk.f32.mxu1 %vm875_vm1, %v9145_v57  ;;  %v9158_v24 = vld [vmem:[#allocation2 + $0xe7] sm:$0xff]  ;;  %v1879_v27 = vld [vmem:[#allocation2 + $0xd9] sm:$0xff]  ;;  %v12182_v43 = vsel %vm9163_vm3, 4294967295, %v12181_v43  ;;  %v12185_v53 = vsel %vm9172_vm5, 4294967295, %v12184_v53 }
 0x167   : > { %7562 = vmatmul.mubr.msk.f32.gmra.mxu1 %vm875_vm1, %v9150_v54  ;;  %7668 = vmatmul.mubr.msk.f32.gmra.mxu0 %vm875_vm1, %v2006_v5  ;;  %v1880_v57 = vld [vmem:[#allocation2 + $0xe1] sm:$0xff]  ;;  %12183 = vst [vmem:[#allocation41_spill] sm:$0xff] %v12182_v43  ;;  %12186 = vst [vmem:[#allocation42_spill] sm:$0xff] %v12185_v53  ;;  %v1139_v38 = vsel %vm9172_vm5, %v1011_v56, 0.0  ;;  %vm9186_vm2 = vcmp.ge.s32.totalorder %v1005_v3, 1  ;;  %v1881_v56 = vld [vmem:[#allocation2 + $0xe9] sm:$0xff] }
 0x168   : > { %7670 = vmatprep.mubr.msk.f32.mxu0 %vm875_vm1, %v1879_v27  ;;  %v9182_v6 = vld [vmem:[#allocation2 + $0x100] sm:$0xff]  ;;  %v2008_v54 = vsel %vm9163_vm3, %v1880_v57, 0.0  ;;  %vm9195_vm5 = vcmp.lt.s32.totalorder %v1008_v2, 15  ;;  %v1010_v53 = vand.u32 15, %v978_v0  ;;  %v1012_v3 = vld [vmem:[#allocation2 + $0xf] sm:$0xff]  ;;  %v9204_v43 = vld [vmem:[#allocation2 + $0x17] sm:$0xff] }
 0x169   : > { %v9176_v5 = vld [vmem:[#allocation2 + $0xf8] sm:$0xff]  ;;  %v1141_v2 = vsel %vm8791_vm4, %v9204_v43, 0.0  ;;  %v12218_v41 = vsel %vm9154_vm7, %v9158_v24, 0.0 }
 0x16a   : > { %12187 = vst [vmem:[#allocation43_spill] sm:$0xff] %v9176_v5  ;;  %7564 = vmatprep.mubr.msk.f32.mxu1 %vm875_vm1, %v9176_v5  ;;  %v9190_v18 = vld [vmem:[#allocation2 + $0xf7] sm:$0xff]  ;;  %v12190_v5 = vmov 0  ;;  %vm9213_vm3 = vcmp.lt.s32.totalorder %v1010_v53, 15 }
 0x16b   : > { %7565 = vmatmul.mubr.msk.f32.gmra.mxu1 %vm875_vm1, %v9182_v6  ;;  %7671 = vmatmul.mubr.msk.f32.gmra.mxu0 %vm875_vm1, %v2008_v54  ;;  %v1882_v27 = vld [vmem:[#allocation2 + $0xf1] sm:$0xff]  ;;  %v12191_v5 = vsel %vm9195_vm5, 4294967295, %v12190_v5  ;;  %v1883_v0 = vld [vmem:[#allocation2 + $0xf9] sm:$0xff]  ;;  %v12219_v22 = vsel %vm9186_vm2, %v9190_v18, 0.0 }
 0x16c   : > { %7673 = vmatprep.mubr.msk.f32.mxu0 %vm875_vm1, %v1881_v56  ;;  %7575 = vmatprep.mubr.msk.f32.mxu1 %vm875_vm1, %v1139_v38  ;;  %v2010_v54 = vsel %vm9195_vm5, %v1882_v27, 0.0  ;;  %v12192_v56 = vmov 0  ;;  %v2436_v38 = vld [vmem:[#allocation6 + $0x70] sm:$0xff]  ;;  %v3631_v4 = vld [vmem:[#allocation2 + $0x117] sm:$0xff] }
 0x16d   : > { %v1884_v57 = vld [vmem:[#allocation2 + $0x101] sm:$0xff]  ;;  %v12193_v56 = vsel %vm9213_vm3, 4294967295, %v12192_v56 }
 0x16e   : > { %v9219_v27 = vld [vmem:[#allocation2 + $0x27] sm:$0xff] }
 0x16f   : > { %7576 = vmatmul.mubr.msk.f32.vlgmr.msra.gmra.mxu1 %vm875_vm1, %v1012_v3  ;;  %7674 = vmatmul.mubr.msk.f32.gmra.mxu0 %vm875_vm1, %v2010_v54  ;;  %v9222_v3 = vld [vmem:[#allocation2 + $0x1f] sm:$0xff]  ;;  %v2012_v54 = vsel %vm9213_vm3, %v1884_v57, 0.0  ;;  %v1143_v53 = vsel %vm8827_vm6, %v9219_v27, 0.0  ;;  %v1145_v57 = vsel %vm8863_vm8, %v8809_v62, 0.0 }
 0x170   : > { %7578 = vmatprep.mubr.msk.f32.mxu1 %vm875_vm1, %v1141_v2  ;;  %7676 = vmatprep.mubr.msk.f32.mxu0 %vm875_vm1, %v1883_v0  ;;  %v2435_v2 = vld [vmem:[#allocation6 + $0x68] sm:$0xff]  ;;  %v2434_v0 = vld [vmem:[#allocation6 + $0x60] sm:$0xff] }
 0x171   : > { %7680 = vmatpush3.msra.mxu1 %v8849_v25  ;;  %v9235_v25 = vld [vmem:[#allocation2 + $0x2f] sm:$0xff] }
 0x172   : > { %7681 = vmatprep.subr.mxu1 %v2436_v38 }
 0x173   : > { %7579 = vmatmul.mubr.msk.f32.gmra.mxu1 %vm875_vm1, %v9222_v3  ;;  %7677 = vmatmul.mubr.msk.f32.gmra.mxu0 %vm875_vm1, %v2012_v54  ;;  %v3667_v54 = vld [vmem:[#allocation6 + $0xd0] sm:$0xff] }
 0x174   : > { %7581 = vmatprep.mubr.msk.f32.mxu1 %vm875_vm1, %v1143_v53  ;;  %7743 = vmatprep.mubr.msk.f32.mxu0 %vm875_vm1, %v8736_v16  ;;  %v9248_v16 = vld [vmem:[#allocation2 + $0x3f] sm:$0xff]  ;;  %v9257_v53 = vld [vmem:[#allocation6 + $0xb8] sm:$0xff] }
 0x175   : > { %7682 = vmatpush3.msra.mxu1 %v2436_v38  ;;  %v3666_v38 = vld [vmem:[#allocation6 + $0xc8] sm:$0xff] }
 0x176   : > { %7683 = vmatprep.subr.mxu1 %v2435_v2 }
 0x177   : > { %7582 = vmatmul.mubr.msk.f32.gmra.mxu1 %vm875_vm1, %v9235_v25  ;;  %7744 = vmatmul.mubr.msk.f32.vlgmr.msra.gmra.mxu0 %vm875_vm1, %v8745_v21  ;;  %v1147_v21 = vsel %vm8907_vm10, %v8847_v23, 0.0 }
 0x178   : > { %7584 = vmatprep.mubr.msk.f32.mxu1 %vm875_vm1, %v1145_v57  ;;  %7746 = vmatprep.mubr.msk.f32.mxu0 %vm875_vm1, %v8760_v30  ;;  %v9262_v30 = vld [vmem:[#allocation2 + $0x4f] sm:$0xff] }
 0x179   : > { %7684 = vmatpush3.msra.mxu1 %v2435_v2  ;;  %7848 = vmatpush3.msra.mxu0 %v8897_v17  ;;  %v3665_v17 = vld [vmem:[#allocation6 + $0xc0] sm:$0xff]  ;;  %v9284_v2 = vld [vmem:[#allocation6 + $0x118] sm:$0xff] }
 0x17a   : > { %7685 = vmatprep.subr.mxu1 %v2434_v0  ;;  %7849 = vmatprep.subr.mxu0 %v3667_v54  ;;  %v9314_v57 = vld [vmem:[#allocation2 + $0x8f] sm:$0xff] }
 0x17b   : > { %7585 = vmatmul.mubr.msk.f32.gmra.mxu1 %vm875_vm1, %v9248_v16  ;;  %7747 = vmatmul.mubr.msk.f32.gmra.mxu0 %vm875_vm1, %v8770_v35  ;;  %v1149_v35 = vsel %vm8930_vm12, %v8878_v59, 0.0 }
 0x17c   : > { %7587 = vmatprep.mubr.msk.f32.mxu1 %vm875_vm1, %v1147_v21  ;;  %7749 = vmatprep.mubr.msk.f32.mxu0 %vm875_vm1, %v8789_v48  ;;  %v9275_v48 = vld [vmem:[#allocation2 + $0x5f] sm:$0xff]  ;;  %v12194_v21 = vld [vmem:[#allocation34_spill] sm:$0xff] }
 0x17d   : > { %7686 = vmatpush3.msra.mxu1 %v2434_v0  ;;  %7850 = vmatpush3.msra.mxu0 %v3667_v54  ;;  %v977_v0 = vadd.s32 240, %v8717_v61  ;;  %v9364_v54 = vld [vmem:[#allocation2 + $0xcf] sm:$0xff] }
 0x17e   : > { %7851 = vmatprep.subr.mxu0 %v3666_v38  ;;  %7791 = vmatprep.subr.mxu1 %v9257_v53 }
 0x17f   : > { %7588 = vmatmul.mubr.msk.f32.gmra.mxu1 %vm875_vm1, %v9262_v30  ;;  %7750 = vmatmul.mubr.msk.f32.gmra.mxu0 %vm875_vm1, %v8804_v58  ;;  %v1151_v58 = vsel %vm8961_vm14, %v8911_v33, 0.0 }
 0x180   : > { %7590 = vmatprep.mubr.msk.f32.mxu1 %vm875_vm1, %v1149_v35  ;;  %7752 = vmatprep.mubr.msk.f32.mxu0 %vm875_vm1, %v8825_v10  ;;  %v9289_v10 = vld [vmem:[#allocation2 + $0x6f] sm:$0xff]  ;;  %v9380_v35 = vld [vmem:[#allocation2 + $0xdf] sm:$0xff] }
 0x181   : > { %7852 = vmatpush3.msra.mxu0 %v3666_v38  ;;  %v1009_v38 = vand.u32 15, %v977_v0  ;;  %v2404_v0 = vsel %vm8791_vm4, %v9219_v27, 0.0 }
 0x182   : > { %7853 = vmatprep.subr.mxu0 %v3665_v17 }
 0x183   : > { %7591 = vmatmul.mubr.msk.f32.gmra.mxu1 %vm875_vm1, %v9275_v48  ;;  %7753 = vmatmul.mubr.msk.f32.gmra.mxu0 %vm875_vm1, %v8839_v19  ;;  %v1153_v19 = vsel %vm9001_vm0, %v8943_v14, 0.0  ;;  %vm9392_vm5 = vcmp.ge.s32.totalorder %v1009_v38, 1  ;;  %v3245_v38 = vld [vmem:[#allocation6 + $0xa8] sm:$0xff] }
 0x184   : > { %7593 = vmatprep.mubr.msk.f32.mxu1 %vm875_vm1, %v1151_v58  ;;  %7755 = vmatprep.mubr.msk.f32.mxu0 %vm875_vm1, %v8861_v42  ;;  %v9302_v42 = vld [vmem:[#allocation2 + $0x7f] sm:$0xff] }
 0x185   : > { %7854 = vmatpush3.msra.mxu0 %v3665_v17  ;;  %v3184_v58 = vld [vmem:[#allocation2 + $0x39] sm:$0xff] }
 0x186   : > { %7959 = vmatprep.subr.mxu0 %v9284_v2 }
 0x187   : > { %7594 = vmatmul.mubr.msk.f32.gmra.mxu1 %vm875_vm1, %v9289_v10  ;;  %7756 = vmatmul.mubr.msk.f32.gmra.mxu0 %vm875_vm1, %v8873_v49  ;;  %v1155_v49 = vsel %vm9023_vm15, %v8974_v63, 0.0 }
 0x188   : > { %7596 = vmatprep.mubr.msk.f32.mxu1 %vm875_vm1, %v1153_v19  ;;  %7758 = vmatprep.mubr.msk.f32.mxu0 %vm875_vm1, %v8894_v13  ;;  %v1157_v13 = vsel %vm9054_vm13, %v9005_v46, 0.0  ;;  %v9396_v19 = vld [vmem:[#allocation2 + $0xef] sm:$0xff] }
 0x18b   : > { %7597 = vmatmul.mubr.msk.f32.gmra.mxu1 %vm875_vm1, %v9302_v42  ;;  %7759 = vmatmul.mubr.msk.f32.gmra.mxu0 %vm875_vm1, %v8903_v28  ;;  %v9326_v28 = vld [vmem:[#allocation2 + $0x9f] sm:$0xff] }
 0x18c   : > { %7599 = vmatprep.mubr.msk.f32.mxu1 %vm875_vm1, %v1155_v49  ;;  %7761 = vmatprep.mubr.msk.f32.mxu0 %vm875_vm1, %v8928_v52  ;;  %v1159_v52 = vsel %vm9094_vm11, %v9036_v34, 0.0  ;;  %v12200_v49 = vld [vmem:[#allocation37_spill] sm:$0xff] }
 0x18f   : > { %7600 = vmatmul.mubr.msk.f32.gmra.mxu1 %vm875_vm1, %v9314_v57  ;;  %7762 = vmatmul.mubr.msk.f32.gmra.mxu0 %vm875_vm1, %v8938_v7  ;;  %v9338_v7 = vld [vmem:[#allocation2 + $0xaf] sm:$0xff] }
 0x190   : > { %7602 = vmatprep.mubr.msk.f32.mxu1 %vm875_vm1, %v1157_v13  ;;  %7764 = vmatprep.mubr.msk.f32.mxu0 %vm875_vm1, %v8959_v8  ;;  %v1161_v8 = vsel %vm9116_vm9, %v9067_v47, 0.0  ;;  %v1169_v13 = vsel %vm9392_vm5, %v9190_v18, 0.0 }
 0x193   : > { %7603 = vmatmul.mubr.msk.f32.gmra.mxu1 %vm875_vm1, %v9326_v28  ;;  %7765 = vmatmul.mubr.msk.f32.gmra.mxu0 %vm875_vm1, %v8970_v1  ;;  %v975_v1 = vadd.s32 224, %v8717_v61  ;;  %v4441_v61 = vld [vmem:[#allocation2 + $0x119] sm:$0xff] }
 0x194   : > { %7605 = vmatprep.mubr.msk.f32.mxu1 %vm875_vm1, %v1159_v52  ;;  %7767 = vmatprep.mubr.msk.f32.mxu0 %vm875_vm1, %v8990_v36  ;;  %v9351_v36 = vld [vmem:[#allocation2 + $0xbf] sm:$0xff]  ;;  %v12201_v52 = vld [vmem:[#allocation39_spill] sm:$0xff] }
 0x197   : > { %7606 = vmatmul.mubr.msk.f32.gmra.mxu1 %vm875_vm1, %v9338_v7  ;;  %7768 = vmatmul.mubr.msk.f32.gmra.mxu0 %vm875_vm1, %v8997_v40  ;;  %v1163_v40 = vsel %vm9154_vm7, %v9098_v20, 0.0 }
 0x198   : > { %7608 = vmatprep.mubr.msk.f32.mxu1 %vm875_vm1, %v1161_v8  ;;  %7770 = vmatprep.mubr.msk.f32.mxu0 %vm875_vm1, %v9021_v32  ;;  %v1007_v32 = vand.u32 15, %v975_v1  ;;  %v12202_v8 = vld [vmem:[#allocation40_spill] sm:$0xff]  ;;  %v12203_v1 = vld [vmem:[#allocation42_spill] sm:$0xff] }
 0x19a   : > { %vm9376_vm3 = vcmp.ge.s32.totalorder %v1007_v32, 1  ;;  %v12205_v32 = vld [vmem:[#allocation43_spill] sm:$0xff] }
 0x19b   : > { %7609 = vmatmul.mubr.msk.f32.gmra.mxu1 %vm875_vm1, %v9351_v36  ;;  %7771 = vmatmul.mubr.msk.f32.gmra.mxu0 %vm875_vm1, %v9031_v37  ;;  %v1165_v37 = vsel %vm9186_vm2, %v9129_v55, 0.0  ;;  %v1167_v17 = vsel %vm9376_vm3, %v9158_v24, 0.0 }
 0x19c   : > { %7611 = vmatprep.mubr.msk.f32.mxu1 %vm875_vm1, %v1163_v40  ;;  %7773 = vmatprep.mubr.msk.f32.mxu0 %vm875_vm1, %v9052_v51  ;;  %v12195_v51 = vmov 0 }
 0x19d   : > { %v12196_v51 = vsel %vm9376_vm3, 4294967295, %v12195_v51  ;;  %vm12204_vm3 = vnez %v12203_v1  ;;  %v4055_v1 = vld [vmem:[#allocation6 + $0xe8] sm:$0xff] }
 0x19e   : > { %v2402_v40 = vsel %vm12204_vm3, %v9204_v43, 0.0  ;;  %v2822_v43 = vld [vmem:[#allocation2 + $0x110] sm:$0xff] }
 0x19f   : > { %7612 = vmatmul.mubr.msk.f32.gmra.mxu1 %vm875_vm1, %v9364_v54  ;;  %7774 = vmatmul.mubr.msk.f32.gmra.mxu0 %vm875_vm1, %v9063_v12  ;;  %v12197_v12 = vld [vmem:[#allocation35_spill] sm:$0xff] }
 0x1a0   : > { %7614 = vmatprep.mubr.msk.f32.mxu1 %vm875_vm1, %v1165_v37  ;;  %7776 = vmatprep.mubr.msk.f32.mxu0 %vm875_vm1, %v12194_v21  ;;  %v2821_v37 = vld [vmem:[#allocation2 + $0x108] sm:$0xff]  ;;  %v3246_v21 = vld [vmem:[#allocation6 + $0xb0] sm:$0xff] }
 0x1a3   : > { %7615 = vmatmul.mubr.msk.f32.gmra.mxu1 %vm875_vm1, %v9380_v35  ;;  %7777 = vmatmul.mubr.msk.f32.gmra.mxu0 %vm875_vm1, %v12197_v12  ;;  %v3244_v12 = vld [vmem:[#allocation6 + $0xa0] sm:$0xff] }
 0x1a4   : > { %7617 = vmatprep.mubr.msk.f32.mxu1 %vm875_vm1, %v1167_v17  ;;  %7779 = vmatprep.mubr.msk.f32.mxu0 %vm875_vm1, %v9114_v29  ;;  %v9408_v29 = vld [vmem:[#allocation2 + $0xff] sm:$0xff] }
 0x1a5   : > { %v4477_v17 = vld [vmem:[#allocation6 + $0x110] sm:$0xff] }
 0x1a7   : > { %7618 = vmatmul.mubr.msk.f32.gmra.mxu1 %vm875_vm1, %v9396_v19  ;;  %7780 = vmatmul.mubr.msk.f32.gmra.mxu0 %vm875_vm1, %v12200_v49  ;;  %v9462_v49 = vld [vmem:[#allocation6 + $0xf8] sm:$0xff] }
 0x1a8   : > { %7620 = vmatprep.mubr.msk.f32.mxu1 %vm875_vm1, %v1169_v13  ;;  %7782 = vmatprep.mubr.msk.f32.mxu0 %vm875_vm1, %v12201_v52  ;;  %v12222_v13 = vld [vmem:[#allocation23_spill] sm:$0xff] }
 0x1ab   : > { %7621 = vmatmul.mubr.msk.f32.gmra.mxu1 %vm875_vm1, %v9408_v29  ;;  %7783 = vmatmul.mubr.msk.f32.gmra.mxu0 %vm875_vm1, %v12202_v8  ;;  %v3185_v8 = vld [vmem:[#allocation2 + $0x41] sm:$0xff] }
 0x1ac   : > { %7687 = vmatprep.mubr.msk.f32.mxu1 %vm875_vm1, %v2402_v40  ;;  %7785 = vmatprep.mubr.msk.f32.mxu0 %vm875_vm1, %v12205_v32  ;;  %v12224_v32 = vld [vmem:[#allocation25_spill] sm:$0xff] }
 0x1af   : > { %7688 = vmatmul.mubr.msk.f32.vlgmr.msra.gmra.mxu1 %vm875_vm1, %v9222_v3  ;;  %7786 = vmatmul.mubr.msk.f32.gmra.mxu0 %vm875_vm1, %v9182_v6  ;;  %v2406_v6 = vsel %vm8827_vm6, %v8809_v62, 0.0  ;;  %v3633_v3 = vsel %vm12204_vm3, %v9219_v27, 0.0  ;;  %v12206_v27 = vsel %vm8791_vm4, %v8809_v62, 0.0  ;;  %v12207_v62 = vsel %vm8827_vm6, %v8847_v23, 0.0 }
 0x1b0   : > { %7690 = vmatprep.mubr.msk.f32.mxu1 %vm875_vm1, %v2404_v0  ;;  %7788 = vmatprep.mubr.msk.f32.mxu0 %vm875_vm1, %v2821_v37  ;;  %vm12223_vm3 = vnez %v12222_v13  ;;  %vm12225_vm4 = vnez %v12224_v32  ;;  %v3197_v13 = vld [vmem:[#allocation2 + $0xa1] sm:$0xff] }
 0x1b1   : > { %7792 = vmatpush3.msra.mxu1 %v9257_v53  ;;  %v2408_v53 = vsel %vm8863_vm8, %v8847_v23, 0.0  ;;  %v12208_v23 = vsel %vm8863_vm8, %v8878_v59, 0.0  ;;  %v3217_v0 = vsel %vm12225_vm4, %v3185_v8, 0.0 }
 0x1b2   : > { %7793 = vmatprep.subr.mxu1 %v3246_v21 }
 0x1b3   : > { %7691 = vmatmul.mubr.msk.f32.gmra.mxu1 %vm875_vm1, %v9235_v25  ;;  %7789 = vmatmul.mubr.msk.f32.gmra.mxu0 %vm875_vm1, %v2822_v43 }
 0x1b4   : > { %7693 = vmatprep.mubr.msk.f32.mxu1 %vm875_vm1, %v2406_v6  ;;  %7855 = vmatprep.mubr.msk.f32.mxu0 %vm875_vm1, %v3633_v3  ;;  %v3186_v6 = vld [vmem:[#allocation2 + $0x49] sm:$0xff]  ;;  %v3187_v3 = vld [vmem:[#allocation2 + $0x51] sm:$0xff] }
 0x1b5   : > { %7794 = vmatpush3.msra.mxu1 %v3246_v21 }
 0x1b6   : > { %7795 = vmatprep.subr.mxu1 %v3245_v38 }
 0x1b7   : > { %7694 = vmatmul.mubr.msk.f32.gmra.mxu1 %vm875_vm1, %v9248_v16  ;;  %7856 = vmatmul.mubr.msk.f32.vlgmr.msra.gmra.mxu0 %vm875_vm1, %v9235_v25  ;;  %v2410_v25 = vsel %vm8907_vm10, %v8878_v59, 0.0  ;;  %v2416_v59 = vsel %vm9001_vm0, %v8974_v63, 0.0  ;;  %v2422_v63 = vsel %vm9094_vm11, %v9067_v47, 0.0  ;;  %v2428_v47 = vsel %vm9186_vm2, %v9158_v24, 0.0  ;;  %v2401_v24 = vld [vmem:[#allocation2 + $0x10f] sm:$0xff] }
 0x1b8   : > { %7696 = vmatprep.mubr.msk.f32.mxu1 %vm875_vm1, %v2408_v53  ;;  %7858 = vmatprep.mubr.msk.f32.mxu0 %vm875_vm1, %v12206_v27  ;;  %vm12217_vm0 = vnez %v12196_v51  ;;  %v3183_v51 = vld [vmem:[#allocation2 + $0x31] sm:$0xff] }
 0x1b9   : > { %7796 = vmatpush3.msra.mxu1 %v3245_v38  ;;  %7960 = vmatpush3.msra.mxu0 %v9284_v2  ;;  %v3180_v2 = vld [vmem:[#allocation2 + $0x19] sm:$0xff]  ;;  %v3215_v52 = vsel %vm12223_vm3, %v3183_v51, 0.0  ;;  %v4054_v38 = vld [vmem:[#allocation6 + $0xe0] sm:$0xff] }
 0x1ba   : > { %7797 = vmatprep.subr.mxu1 %v3244_v12  ;;  %7961 = vmatprep.subr.mxu0 %v4477_v17 }
 0x1bb   : > { %7697 = vmatmul.mubr.msk.f32.gmra.mxu1 %vm875_vm1, %v9262_v30  ;;  %7859 = vmatmul.mubr.msk.f32.gmra.mxu0 %vm875_vm1, %v9248_v16  ;;  %v2412_v16 = vsel %vm8930_vm12, %v8911_v33, 0.0  ;;  %v2418_v33 = vsel %vm9023_vm15, %v9005_v46, 0.0  ;;  %v2424_v46 = vsel %vm9116_vm9, %v9098_v20, 0.0  ;;  %v2430_v20 = vsel %vm12217_vm0, %v9190_v18, 0.0  ;;  %v12220_v18 = vld [vmem:[#allocation19_spill] sm:$0xff] }
 0x1bc   : > { %7699 = vmatprep.mubr.msk.f32.mxu1 %vm875_vm1, %v2410_v25  ;;  %7861 = vmatprep.mubr.msk.f32.mxu0 %vm875_vm1, %v12207_v62  ;;  %vm12221_vm2 = vnez %v12220_v18  ;;  %v4446_v25 = vsel %vm12223_vm3, %v3185_v8, 0.0  ;;  %v3188_v62 = vld [vmem:[#allocation2 + $0x59] sm:$0xff]  ;;  %v12236_v8 = vld [vmem:[#allocation31_spill] sm:$0xff] }
 0x1bd   : > { %7798 = vmatpush3.msra.mxu1 %v3244_v12  ;;  %7962 = vmatpush3.msra.mxu0 %v4477_v17  ;;  %v4444_v37 = vsel %vm12221_vm2, %v3183_v51, 0.0  ;;  %v12226_v17 = vld [vmem:[#allocation26_spill] sm:$0xff]  ;;  %vm12237_vm10 = vnez %v12236_v8 }
 0x1be   : > { %7963 = vmatprep.subr.mxu0 %v4476_v50  ;;  %7903 = vmatprep.subr.mxu1 %v9462_v49  ;;  %v3205_v8 = vld [vmem:[#allocation2 + $0xe1] sm:$0xff] }
 0x1bf   : > { %7700 = vmatmul.mubr.msk.f32.gmra.mxu1 %vm875_vm1, %v9275_v48  ;;  %7862 = vmatmul.mubr.msk.f32.gmra.mxu0 %vm875_vm1, %v9262_v30  ;;  %v2414_v30 = vsel %vm8961_vm14, %v8943_v14, 0.0  ;;  %v2420_v14 = vsel %vm9054_vm13, %v9036_v34, 0.0  ;;  %v2426_v34 = vsel %vm9154_vm7, %v9129_v55, 0.0  ;;  %v2400_v55 = vld [vmem:[#allocation2 + $0x107] sm:$0xff] }
 0x1c0   : > { %7702 = vmatprep.mubr.msk.f32.mxu1 %vm875_vm1, %v2412_v16  ;;  %7864 = vmatprep.mubr.msk.f32.mxu0 %vm875_vm1, %v12208_v23  ;;  %v3189_v16 = vld [vmem:[#allocation2 + $0x61] sm:$0xff] }
 0x1c1   : > { %7964 = vmatpush3.msra.mxu0 %v4476_v50 }
 0x1c2   : > { %7965 = vmatprep.subr.mxu0 %v4475_v11 }
 0x1c3   : > { %7703 = vmatmul.mubr.msk.f32.gmra.mxu1 %vm875_vm1, %v9289_v10  ;;  %7865 = vmatmul.mubr.msk.f32.gmra.mxu0 %vm875_vm1, %v9275_v48  ;;  %v2432_v48 = vsel %vm9392_vm5, %v2400_v55, 0.0 }
 0x1c4   : > { %7705 = vmatprep.mubr.msk.f32.mxu1 %vm875_vm1, %v2414_v30  ;;  %7867 = vmatprep.mubr.msk.f32.mxu0 %vm875_vm1, %v12209_v44  ;;  %v12228_v30 = vld [vmem:[#allocation27_spill] sm:$0xff] }
 0x1c5   : > { %7966 = vmatpush3.msra.mxu0 %v4475_v11  ;;  %vm12229_vm6 = vnez %v12228_v30 }
 0x1c6   : > { %v3221_v44 = vsel %vm12229_vm6, %v3189_v16, 0.0 }
 0x1c7   : > { %7706 = vmatmul.mubr.msk.f32.gmra.mxu1 %vm875_vm1, %v9302_v42  ;;  %7868 = vmatmul.mubr.msk.f32.gmra.mxu0 %vm875_vm1, %v9289_v10  ;;  %v3661_v10 = vsel %vm12217_vm0, %v2400_v55, 0.0  ;;  %v12232_v55 = vld [vmem:[#allocation29_spill] sm:$0xff]  ;;  %vm12258_vm0 = vnez %v12191_v5 }
 0x1c8   : > { %7708 = vmatprep.mubr.msk.f32.mxu1 %vm875_vm1, %v2416_v59  ;;  %7870 = vmatprep.mubr.msk.f32.mxu0 %vm875_vm1, %v12210_v31  ;;  %v4448_v59 = vsel %vm12225_vm4, %v3187_v3, 0.0  ;;  %vm12233_vm8 = vnez %v12232_v55  ;;  %v3202_v55 = vld [vmem:[#allocation2 + $0xc9] sm:$0xff] }
 0x1cb   : > { %7709 = vmatmul.mubr.msk.f32.gmra.mxu1 %vm875_vm1, %v9314_v57  ;;  %7871 = vmatmul.mubr.msk.f32.gmra.mxu0 %vm875_vm1, %v9302_v42  ;;  %v9618_v42 = vpop.f32.mrf.mxu0 }
 0x1cc   : > { %7711 = vmatprep.mubr.msk.f32.mxu1 %vm875_vm1, %v2418_v33  ;;  %7873 = vmatprep.mubr.msk.f32.mxu0 %vm875_vm1, %v12211_v60  ;;  %v3190_v60 = vld [vmem:[#allocation2 + $0x69] sm:$0xff] }
 0x1cf   : > { %7712 = vmatmul.mubr.msk.f32.gmra.mxu1 %vm875_vm1, %v9326_v28  ;;  %7874 = vmatmul.mubr.msk.f32.gmra.mxu0 %vm875_vm1, %v9314_v57  ;;  %v3181_v57 = vld [vmem:[#allocation2 + $0x21] sm:$0xff] }
 0x1d0   : > { %7714 = vmatprep.mubr.msk.f32.mxu1 %vm875_vm1, %v2420_v14  ;;  %7876 = vmatprep.mubr.msk.f32.mxu0 %vm875_vm1, %v12212_v45  ;;  %v3191_v14 = vld [vmem:[#allocation2 + $0x71] sm:$0xff] }
 0x1d3   : > { %7715 = vmatmul.mubr.msk.f32.gmra.mxu1 %vm875_vm1, %v9338_v7  ;;  %7877 = vmatmul.mubr.msk.f32.gmra.mxu0 %vm875_vm1, %v9326_v28  ;;  %v3213_v28 = vsel %vm12221_vm2, %v3181_v57, 0.0  ;;  %v3195_v57 = vld [vmem:[#allocation2 + $0x91] sm:$0xff]  ;;  %vm12260_vm2 = vnez %v12193_v56 }
 0x1d4   : > { %7717 = vmatprep.mubr.msk.f32.mxu1 %vm875_vm1, %v2422_v63  ;;  %7879 = vmatprep.mubr.msk.f32.mxu0 %vm875_vm1, %v12213_v15  ;;  %v12230_v15 = vld [vmem:[#allocation28_spill] sm:$0xff]  ;;  %v4456_v32 = vsel %vm12233_vm8, %v3195_v57, 0.0 }
 0x1d5   : > { %vm12231_vm7 = vnez %v12230_v15  ;;  %v12242_v15 = vld [vmem:[#allocation33_spill] sm:$0xff] }
 0x1d6   : > { %vm12243_vm12 = vnez %v12242_v15  ;;  %v12254_v15 = vld [vmem:[#allocation41_spill] sm:$0xff] }
 0x1d7   : > { %7718 = vmatmul.mubr.msk.f32.gmra.mxu1 %vm875_vm1, %v9351_v36  ;;  %7880 = vmatmul.mubr.msk.f32.gmra.mxu0 %vm875_vm1, %v9338_v7  ;;  %v3182_v7 = vld [vmem:[#allocation2 + $0x29] sm:$0xff]  ;;  %vm12255_vm15 = vnez %v12254_v15  ;;  %v4442_v15 = vld [vmem:[#allocation2 + $0x121] sm:$0xff] }
 0x1d8   : > { %7720 = vmatprep.mubr.msk.f32.mxu1 %vm875_vm1, %v2424_v46  ;;  %7882 = vmatprep.mubr.msk.f32.mxu0 %vm875_vm1, %v12214_v39  ;;  %v3223_v46 = vsel %vm12231_vm7, %v3191_v14, 0.0 }
 0x1db   : > { %7721 = vmatmul.mubr.msk.f32.gmra.mxu1 %vm875_vm1, %v9364_v54  ;;  %7883 = vmatmul.mubr.msk.f32.gmra.mxu0 %vm875_vm1, %v9351_v36  ;;  %v3663_v36 = vsel %vm9392_vm5, %v3631_v4, 0.0  ;;  %vm12227_vm5 = vnez %v12226_v17 }
 0x1dc   : > { %7723 = vmatprep.mubr.msk.f32.mxu1 %vm875_vm1, %v2426_v34  ;;  %7885 = vmatprep.mubr.msk.f32.mxu0 %vm875_vm1, %v12215_v9  ;;  %v3219_v27 = vsel %vm12227_vm5, %v3187_v3, 0.0  ;;  %v4450_v39 = vsel %vm12227_vm5, %v3189_v16, 0.0  ;;  %v3199_v3 = vld [vmem:[#allocation2 + $0xb1] sm:$0xff] }
 0x1df   : > { %7724 = vmatmul.mubr.msk.f32.gmra.mxu1 %vm875_vm1, %v9380_v35  ;;  %7886 = vmatmul.mubr.msk.f32.gmra.mxu0 %vm875_vm1, %v9364_v54  ;;  %v9628_v54 = vpop.f32.mrf.mxu0 }
 0x1e0   : > { %7726 = vmatprep.mubr.msk.f32.mxu1 %vm875_vm1, %v2428_v47  ;;  %7888 = vmatprep.mubr.msk.f32.mxu0 %vm875_vm1, %v12216_v26  ;;  %v3192_v47 = vld [vmem:[#allocation2 + $0x79] sm:$0xff]  ;;  %v3193_v26 = vld [vmem:[#allocation2 + $0x81] sm:$0xff] }
 0x1e3   : > { %7727 = vmatmul.mubr.msk.f32.gmra.mxu1 %vm875_vm1, %v9396_v19  ;;  %7889 = vmatmul.mubr.msk.f32.gmra.mxu0 %vm875_vm1, %v9380_v35  ;;  %v4056_v35 = vld [vmem:[#allocation6 + $0xf0] sm:$0xff] }
 0x1e4   : > { %7729 = vmatprep.mubr.msk.f32.mxu1 %vm875_vm1, %v2430_v20  ;;  %7891 = vmatprep.mubr.msk.f32.mxu0 %vm875_vm1, %v12218_v41 }
 0x1e7   : > { %7730 = vmatmul.mubr.msk.f32.gmra.mxu1 %vm875_vm1, %v9408_v29  ;;  %7892 = vmatmul.mubr.msk.f32.gmra.mxu0 %vm875_vm1, %v9396_v19  ;;  %v3632_v19 = vld [vmem:[#allocation2 + $0x11f] sm:$0xff] }
 0x1e8   : > { %7732 = vmatprep.mubr.msk.f32.mxu1 %vm875_vm1, %v2432_v48  ;;  %7894 = vmatprep.mubr.msk.f32.mxu0 %vm875_vm1, %v12219_v22  ;;  %v3225_v48 = vsel %vm12233_vm8, %v3193_v26, 0.0  ;;  %v4452_v22 = vsel %vm12229_vm6, %v3191_v14, 0.0 }
 0x1eb   : > { %7733 = vmatmul.mubr.msk.f32.gmra.mxu1 %vm875_vm1, %v2401_v24  ;;  %7895 = vmatmul.mubr.msk.f32.gmra.mxu0 %vm875_vm1, %v9408_v29 }
 0x1ec   : > { %7799 = vmatprep.mubr.msk.f32.mxu1 %vm875_vm1, %v3180_v2  ;;  %7897 = vmatprep.mubr.msk.f32.mxu0 %vm875_vm1, %v3661_v10  ;;  %v3194_v10 = vld [vmem:[#allocation2 + $0x89] sm:$0xff] }
 0x1ef   : > { %7800 = vmatmul.mubr.msk.f32.vlgmr.msra.gmra.mxu1 %vm875_vm1, %v3213_v28  ;;  %7898 = vmatmul.mubr.msk.f32.gmra.mxu0 %vm875_vm1, %v2401_v24  ;;  %v12234_v28 = vld [vmem:[#allocation30_spill] sm:$0xff] }
 0x1f0   : > { %7802 = vmatprep.mubr.msk.f32.mxu1 %vm875_vm1, %v3182_v7  ;;  %7900 = vmatprep.mubr.msk.f32.mxu0 %vm875_vm1, %v3663_v36  ;;  %vm12235_vm9 = vnez %v12234_v28  ;;  %v4454_v36 = vsel %vm12231_vm7, %v3193_v26, 0.0 }
 0x1f1   : > { %7904 = vmatpush3.msra.mxu1 %v9462_v49 }
 0x1f2   : > { %7905 = vmatprep.subr.mxu1 %v4056_v35 }
 0x1f3   : > { %v9635_v29 = vpop.f32.mrf.mxu0  ;;  %7803 = vmatmul.mubr.msk.f32.gmra.mxu1 %vm875_vm1, %v3215_v52  ;;  %7901 = vmatmul.mubr.msk.f32.gmra.mxu0 %vm875_vm1, %v3632_v19  ;;  %v3196_v19 = vld [vmem:[#allocation2 + $0x99] sm:$0xff] }
 0x1f4   : > { %7805 = vmatprep.mubr.msk.f32.mxu1 %vm875_vm1, %v3184_v58  ;;  %7967 = vmatprep.mubr.msk.f32.mxu0 %vm875_vm1, %v3182_v7  ;;  %v3227_v7 = vsel %vm12235_vm9, %v3195_v57, 0.0  ;;  %v12246_v57 = vld [vmem:[#allocation36_spill] sm:$0xff] }
 0x1f5   : > { %v9641_v40 = vpop.f32.mrf.mxu0  ;;  %7906 = vmatpush3.msra.mxu1 %v4056_v35  ;;  %vm12247_vm13 = vnez %v12246_v57 }
 0x1f6   : > { %7907 = vmatprep.subr.mxu1 %v4055_v1 }
 0x1f7   : > { %v9647_v21 = vpop.f32.mrf.mxu1  ;;  %v9649_v43 = vpop.f32.mrf.mxu0  ;;  %7806 = vmatmul.mubr.msk.f32.gmra.mxu1 %vm875_vm1, %v3217_v0  ;;  %7968 = vmatmul.mubr.msk.f32.vlgmr.msra.gmra.mxu0 %vm875_vm1, %v4444_v37 }
 0x1f8   : > { %7808 = vmatprep.mubr.msk.f32.mxu1 %vm875_vm1, %v3186_v6  ;;  %7970 = vmatprep.mubr.msk.f32.mxu0 %vm875_vm1, %v3184_v58 }
 0x1f9   : > { %v9655_v53 = vpop.f32.mrf.mxu1  ;;  %v9657_v12 = vpop.f32.mrf.mxu0  ;;  %7908 = vmatpush3.msra.mxu1 %v4055_v1  ;;  %v3229_v1 = vsel %vm12237_vm10, %v3197_v13, 0.0 }
 0x1fa   : > { %7909 = vmatprep.subr.mxu1 %v4054_v38 }
 0x1fb   : > { %v9663_v50 = vpop.f32.mrf.mxu1  ;;  %v9665_v49 = vpop.f32.mrf.mxu0  ;;  %7809 = vmatmul.mubr.msk.f32.gmra.mxu1 %vm875_vm1, %v3219_v27  ;;  %7971 = vmatmul.mubr.msk.f32.gmra.mxu0 %vm875_vm1, %v4446_v25  ;;  %v12239_v27 = vld [vmem:[#allocation32_spill] sm:$0xff] }
 0x1fc   : > { %7811 = vmatprep.mubr.msk.f32.mxu1 %vm875_vm1, %v3188_v62  ;;  %7973 = vmatprep.mubr.msk.f32.mxu0 %vm875_vm1, %v3186_v6  ;;  %v3198_v6 = vld [vmem:[#allocation2 + $0xa9] sm:$0xff]  ;;  %vm12240_vm11 = vnez %v12239_v27 }
 0x1fd   : > { %v9671_v11 = vpop.f32.mrf.mxu1  ;;  %v9673_v23 = vpop.f32.mrf.mxu0  ;;  %7910 = vmatpush3.msra.mxu1 %v4054_v38  ;;  %v3231_v25 = vsel %vm12240_vm11, %v3199_v3, 0.0 }
 0x1ff   : > { %v9679_v31 = vpop.f32.mrf.mxu1  ;;  %v9681_v33 = vpop.f32.mrf.mxu0  ;;  %7812 = vmatmul.mubr.msk.f32.gmra.mxu1 %vm875_vm1, %v3221_v44  ;;  %7974 = vmatmul.mubr.msk.f32.gmra.mxu0 %vm875_vm1, %v4448_v59  ;;  %v3200_v44 = vld [vmem:[#allocation2 + $0xb9] sm:$0xff]  ;;  %v3201_v59 = vld [vmem:[#allocation2 + $0xc1] sm:$0xff] }
 0x200   : > { %7814 = vmatprep.mubr.msk.f32.mxu1 %vm875_vm1, %v3190_v60  ;;  %7976 = vmatprep.mubr.msk.f32.mxu0 %vm875_vm1, %v3188_v62  ;;  %v4458_v62 = vsel %vm12235_vm9, %v3197_v13, 0.0  ;;  %v3204_v13 = vld [vmem:[#allocation2 + $0xd9] sm:$0xff] }
 0x201   : > { %v9687_v45 = vpop.f32.mrf.mxu1  ;;  %v9689_v63 = vpop.f32.mrf.mxu0 }
 0x203   : > { %v9695_v34 = vpop.f32.mrf.mxu1  ;;  %v9697_v9 = vpop.f32.mrf.mxu0  ;;  %7815 = vmatmul.mubr.msk.f32.gmra.mxu1 %vm875_vm1, %v3223_v46  ;;  %7977 = vmatmul.mubr.msk.f32.gmra.mxu0 %vm875_vm1, %v4450_v39  ;;  %v3233_v46 = vsel %vm12243_vm12, %v3201_v59, 0.0  ;;  %v4460_v39 = vsel %vm12237_vm10, %v3199_v3, 0.0 }
 0x204   : > { %7817 = vmatprep.mubr.msk.f32.mxu1 %vm875_vm1, %v3192_v47  ;;  %7979 = vmatprep.mubr.msk.f32.mxu0 %vm875_vm1, %v3190_v60 }
 0x205   : > { %v9703_v20 = vpop.f32.mrf.mxu1  ;;  %v9705_v41 = vpop.f32.mrf.mxu0 }
 0x207   : > { %v9711_v24 = vpop.f32.mrf.mxu1  ;;  %v9713_v2 = vpop.f32.mrf.mxu0  ;;  %7818 = vmatmul.mubr.msk.f32.gmra.mxu1 %vm875_vm1, %v3225_v48  ;;  %7980 = vmatmul.mubr.msk.f32.gmra.mxu0 %vm875_vm1, %v4452_v22  ;;  %v3203_v48 = vld [vmem:[#allocation2 + $0xd1] sm:$0xff] }
 0x208   : > { %7820 = vmatprep.mubr.msk.f32.mxu1 %vm875_vm1, %v3194_v10  ;;  %7982 = vmatprep.mubr.msk.f32.mxu0 %vm875_vm1, %v3192_v47  ;;  %v3235_v28 = vsel %vm12247_vm13, %v3203_v48, 0.0  ;;  %v4464_v27 = vsel %vm12243_vm12, %v3203_v48, 0.0  ;;  %v4466_v48 = vsel %vm12247_vm13, %v3205_v8, 0.0 }
 0x209   : > { %v9719_v4 = vpop.f32.mrf.mxu1  ;;  %v9721_v18 = vpop.f32.mrf.mxu0 }
 0x20b   : > { %v9727_v51 = vpop.f32.mrf.mxu1  ;;  %v9729_v35 = vpop.f32.mrf.mxu0  ;;  %7821 = vmatmul.mubr.msk.f32.gmra.mxu1 %vm875_vm1, %v3227_v7  ;;  %7983 = vmatmul.mubr.msk.f32.gmra.mxu0 %vm875_vm1, %v4454_v36  ;;  %v4462_v7 = vsel %vm12240_vm11, %v3201_v59, 0.0  ;;  %v3207_v59 = vld [vmem:[#allocation2 + $0xf1] sm:$0xff] }
 0x20c   : > { %7823 = vmatprep.mubr.msk.f32.mxu1 %vm875_vm1, %v3196_v19  ;;  %7985 = vmatprep.mubr.msk.f32.mxu0 %vm875_vm1, %v3194_v10 }
 0x20d   : > { %v9735_v52 = vpop.f32.mrf.mxu1  ;;  %v9737_v58 = vpop.f32.mrf.mxu0 }
 0x20f   : > { %v9743_v0 = vpop.f32.mrf.mxu1  ;;  %v9745_v37 = vpop.f32.mrf.mxu0  ;;  %7824 = vmatmul.mubr.msk.f32.gmra.mxu1 %vm875_vm1, %v3229_v1  ;;  %7986 = vmatmul.mubr.msk.f32.gmra.mxu0 %vm875_vm1, %v4456_v32 }
 0x210   : > { %7826 = vmatprep.mubr.msk.f32.mxu1 %vm875_vm1, %v3198_v6  ;;  %7988 = vmatprep.mubr.msk.f32.mxu0 %vm875_vm1, %v3196_v19 }
 0x211   : > { %v9751_v38 = vpop.f32.mrf.mxu1  ;;  %v9753_v17 = vpop.f32.mrf.mxu0 }
 0x212   : > { %12238 = vst [vmem:[#allocation34_spill] sm:$0xff] %v9751_v38 }
 0x213   : > { %v9759_v16 = vpop.f32.mrf.mxu1  ;;  %v9761_v30 = vpop.f32.mrf.mxu0  ;;  %7827 = vmatmul.mubr.msk.f32.gmra.mxu1 %vm875_vm1, %v3231_v25  ;;  %7989 = vmatmul.mubr.msk.f32.gmra.mxu0 %vm875_vm1, %v4458_v62 }
 0x214   : > { %7829 = vmatprep.mubr.msk.f32.mxu1 %vm875_vm1, %v3200_v44  ;;  %7991 = vmatprep.mubr.msk.f32.mxu0 %vm875_vm1, %v3198_v6  ;;  %v12250_v6 = vld [vmem:[#allocation38_spill] sm:$0xff] }
 0x215   : > { %v9767_v60 = vpop.f32.mrf.mxu1  ;;  %v9769_v14 = vpop.f32.mrf.mxu0  ;;  %vm12251_vm14 = vnez %v12250_v6 }
 0x216   : > { %12241 = vst [vmem:[#allocation35_spill] sm:$0xff] %v9767_v60  ;;  %v3237_v3 = vsel %vm12251_vm14, %v3205_v8, 0.0  ;;  %v4468_v8 = vsel %vm12251_vm14, %v3207_v59, 0.0 }
 0x217   : > { %v9775_v47 = vpop.f32.mrf.mxu1  ;;  %v9777_v26 = vpop.f32.mrf.mxu0  ;;  %7830 = vmatmul.mubr.msk.f32.gmra.mxu1 %vm875_vm1, %v3233_v46  ;;  %7992 = vmatmul.mubr.msk.f32.gmra.mxu0 %vm875_vm1, %v4460_v39 }
 0x218   : > { %7832 = vmatprep.mubr.msk.f32.mxu1 %vm875_vm1, %v3202_v55  ;;  %7994 = vmatprep.mubr.msk.f32.mxu0 %vm875_vm1, %v3200_v44  ;;  %v3206_v44 = vld [vmem:[#allocation2 + $0xe9] sm:$0xff] }
 0x219   : > { %v9783_v22 = vpop.f32.mrf.mxu1  ;;  %v9785_v10 = vpop.f32.mrf.mxu0 }
 0x21a   : > { %12244 = vst [vmem:[#allocation37_spill] sm:$0xff] %v9783_v22  ;;  %12245 = vst [vmem:[#allocation39_spill] sm:$0xff] %v9785_v10 }
 0x21b   : > { %v9791_v36 = vpop.f32.mrf.mxu1  ;;  %v9793_v19 = vpop.f32.mrf.mxu0  ;;  %7833 = vmatmul.mubr.msk.f32.gmra.mxu1 %vm875_vm1, %v3235_v28  ;;  %7995 = vmatmul.mubr.msk.f32.gmra.mxu0 %vm875_vm1, %v4462_v7 }
 0x21c   : > { %7835 = vmatprep.mubr.msk.f32.mxu1 %vm875_vm1, %v3204_v13  ;;  %7997 = vmatprep.mubr.msk.f32.mxu0 %vm875_vm1, %v3202_v55  ;;  %v3239_v55 = vsel %vm12255_vm15, %v3207_v59, 0.0 }
 0x21d   : > { %v9799_v1 = vpop.f32.mrf.mxu1  ;;  %v9801_v32 = vpop.f32.mrf.mxu0 }
 0x21e   : > { %12248 = vst [vmem:[#allocation40_spill] sm:$0xff] %v9799_v1  ;;  %12249 = vst [vmem:[#allocation42_spill] sm:$0xff] %v9801_v32 }
 0x21f   : > { %v9807_v25 = vpop.f32.mrf.mxu1  ;;  %v9809_v62 = vpop.f32.mrf.mxu0  ;;  %7836 = vmatmul.mubr.msk.f32.gmra.mxu1 %vm875_vm1, %v3237_v3  ;;  %7998 = vmatmul.mubr.msk.f32.gmra.mxu0 %vm875_vm1, %v4464_v27  ;;  %v3208_v3 = vld [vmem:[#allocation2 + $0xf9] sm:$0xff] }
 0x220   : > { %7838 = vmatprep.mubr.msk.f32.mxu1 %vm875_vm1, %v3206_v44  ;;  %8000 = vmatprep.mubr.msk.f32.mxu0 %vm875_vm1, %v3204_v13  ;;  %v3209_v13 = vld [vmem:[#allocation2 + $0x101] sm:$0xff] }
 0x221   : > { %v9815_v46 = vpop.f32.mrf.mxu1  ;;  %v9817_v39 = vpop.f32.mrf.mxu0  ;;  %v3241_v57 = vsel %vm12258_vm0, %v3209_v13, 0.0  ;;  %v4470_v59 = vsel %vm12255_vm15, %v3209_v13, 0.0  ;;  %v4023_v13 = vld [vmem:[#allocation2 + $0x30] sm:$0xff] }
 0x222   : > { %12252 = vst [vmem:[#allocation43_spill] sm:$0xff] %v9815_v46  ;;  %12253 = vst [vmem:[#allocation19_spill] sm:$0xff] %v9817_v39 }
 0x223   : > { %v9823_v28 = vpop.f32.mrf.mxu1  ;;  %v9825_v7 = vpop.f32.mrf.mxu0  ;;  %7839 = vmatmul.mubr.msk.f32.gmra.mxu1 %vm875_vm1, %v3239_v55  ;;  %8001 = vmatmul.mubr.msk.f32.gmra.mxu0 %vm875_vm1, %v4466_v48  ;;  %v3210_v48 = vld [vmem:[#allocation2 + $0x109] sm:$0xff] }
 0x224   : > { %7841 = vmatprep.mubr.msk.f32.mxu1 %vm875_vm1, %v3208_v3  ;;  %8003 = vmatprep.mubr.msk.f32.mxu0 %vm875_vm1, %v3206_v44  ;;  %v3211_v44 = vld [vmem:[#allocation2 + $0x111] sm:$0xff] }
 0x225   : > { %v9831_v27 = vpop.f32.mrf.mxu1  ;;  %v9833_v46 = vpop.f32.mrf.mxu0  ;;  %v3243_v6 = vsel %vm12260_vm2, %v3211_v44, 0.0  ;;  %v4472_v32 = vsel %vm12258_vm0, %v3211_v44, 0.0 }
 0x226   : > { %12256 = vst [vmem:[#allocation23_spill] sm:$0xff] %v9831_v27  ;;  %12257 = vst [vmem:[#allocation25_spill] sm:$0xff] %v9833_v46 }
 0x227   : > { %v9839_v39 = vpop.f32.mrf.mxu1  ;;  %v9841_v55 = vpop.f32.mrf.mxu0  ;;  %7842 = vmatmul.mubr.msk.f32.gmra.mxu1 %vm875_vm1, %v3241_v57  ;;  %8004 = vmatmul.mubr.msk.f32.gmra.mxu0 %vm875_vm1, %v4468_v8  ;;  %v4022_v8 = vld [vmem:[#allocation2 + $0x28] sm:$0xff] }
 0x228   : > { %7844 = vmatprep.mubr.msk.f32.mxu1 %vm875_vm1, %v3210_v48  ;;  %8006 = vmatprep.mubr.msk.f32.mxu0 %vm875_vm1, %v3208_v3 }
 0x229   : > { %v9847_v27 = vpop.f32.mrf.mxu1  ;;  %v9849_v46 = vpop.f32.mrf.mxu0 }
 0x22a   : > { %12259 = vst [vmem:[#allocation26_spill] sm:$0xff] %v9849_v46 }
 0x22b   : > { %v9855_v1 = vpop.f32.mrf.mxu1  ;;  %v9857_v57 = vpop.f32.mrf.mxu0  ;;  %7845 = vmatmul.mubr.msk.f32.gmra.mxu1 %vm875_vm1, %v3243_v6  ;;  %8007 = vmatmul.mubr.msk.f32.gmra.mxu0 %vm875_vm1, %v4470_v59  ;;  %v4024_v6 = vld [vmem:[#allocation2 + $0x38] sm:$0xff]  ;;  %v4474_v59 = vsel %vm12260_vm2, %v4442_v15, 0.0  ;;  %v4027_v15 = vld [vmem:[#allocation2 + $0x50] sm:$0xff] }
 0x22c   : > { %7911 = vmatprep.mubr.msk.f32.mxu1 %vm875_vm1, %v4022_v8  ;;  %8009 = vmatprep.mubr.msk.f32.mxu0 %vm875_vm1, %v3210_v48 }
 0x22d   : > { %v9863_v3 = vpop.f32.mrf.mxu1  ;;  %v9865_v46 = vpop.f32.mrf.mxu0 }
 0x22e   : > { %12261 = vst [vmem:[#allocation27_spill] sm:$0xff] %v9865_v46  ;;  %v4025_v46 = vld [vmem:[#allocation2 + $0x40] sm:$0xff] }
 0x22f   : > { %v7577_v22 = vpop.f32.mrf.mxu1  ;;  %v9869_v10 = vpop.f32.mrf.mxu0  ;;  %7912 = vmatmul.mubr.msk.f32.vlgmr.msra.gmra.mxu1 %vm875_vm1, %v4023_v13  ;;  %8010 = vmatmul.mubr.msk.f32.gmra.mxu0 %vm875_vm1, %v4472_v32 }
 0x230   : > { %v1700_v48 = vadd.f32 %v7577_v22, %v9618_v42  ;;  %7914 = vmatprep.mubr.msk.f32.mxu1 %vm875_vm1, %v4024_v6  ;;  %8012 = vmatprep.mubr.msk.f32.mxu0 %vm875_vm1, %v4441_v61  ;;  %v4026_v42 = vld [vmem:[#allocation2 + $0x48] sm:$0xff] }
 0x231   : > { %v1694_v8 = vpop.f32.mrf.mxu1  ;;  %v9878_v5 = vpop.f32.mrf.mxu0 }
 0x232   : > { %v1695_v44 = vadd.f32 %v1694_v8, %v9628_v54  ;;  %v9882_v13 = vadd.f32 %v9649_v43, %v1700_v48 }
 0x233   : > { %v7580_v32 = vpop.f32.mrf.mxu1  ;;  %v9884_v60 = vpop.f32.mrf.mxu0  ;;  %7915 = vmatmul.mubr.msk.f32.gmra.mxu1 %vm875_vm1, %v4025_v46  ;;  %8013 = vmatmul.mubr.msk.f32.gmra.mxu0 %vm875_vm1, %v4474_v59 }
 0x234   : > { %v1710_v61 = vadd.f32 %v7580_v32, %v9635_v29  ;;  %7917 = vmatprep.mubr.msk.f32.mxu1 %vm875_vm1, %v4026_v42  ;;  %v9891_v56 = vadd.f32 %v9657_v12, %v1695_v44  ;;  %v4028_v29 = vld [vmem:[#allocation2 + $0x58] sm:$0xff] }
 0x235   : > { %v1704_v54 = vpop.f32.mrf.mxu1  ;;  %v9893_v22 = vpop.f32.mrf.mxu0 }
 0x236   : > { %v1705_v43 = vadd.f32 %v1704_v54, %v9641_v40  ;;  %v9897_v6 = vadd.f32 %v9665_v49, %v1710_v61  ;;  %v4029_v49 = vld [vmem:[#allocation2 + $0x60] sm:$0xff] }
 0x237   : > { %v7583_v46 = vpop.f32.mrf.mxu1  ;;  %v9899_v48 = vpop.f32.mrf.mxu0  ;;  %7918 = vmatmul.mubr.msk.f32.gmra.mxu1 %vm875_vm1, %v4027_v15 }
 0x238   : > { %v1720_v59 = vadd.f32 %v7583_v46, %v9647_v21  ;;  %7920 = vmatprep.mubr.msk.f32.mxu1 %vm875_vm1, %v4028_v29  ;;  %v9905_v12 = vadd.f32 %v9673_v23, %v1705_v43  ;;  %v4030_v21 = vld [vmem:[#allocation2 + $0x68] sm:$0xff] }
 0x239   : > { %v1714_v8 = vpop.f32.mrf.mxu1  ;;  %v9907_v44 = vpop.f32.mrf.mxu0 }
 0x23a   : > { %v1715_v40 = vadd.f32 %v1714_v8, %v9655_v53  ;;  %v9911_v32 = vadd.f32 %v9681_v33, %v1720_v59  ;;  %v4031_v33 = vld [vmem:[#allocation2 + $0x70] sm:$0xff] }
 0x23b   : > { %v7586_v42 = vpop.f32.mrf.mxu1  ;;  %v9913_v61 = vpop.f32.mrf.mxu0  ;;  %7921 = vmatmul.mubr.msk.f32.gmra.mxu1 %vm875_vm1, %v4029_v49 }
 0x23c   : > { %v1730_v54 = vadd.f32 %v7586_v42, %v9663_v50  ;;  %7923 = vmatprep.mubr.msk.f32.mxu1 %vm875_vm1, %v4030_v21  ;;  %v9919_v23 = vadd.f32 %v9689_v63, %v1715_v40  ;;  %v4032_v50 = vld [vmem:[#allocation2 + $0x78] sm:$0xff] }
 0x23d   : > { %v1724_v43 = vpop.f32.mrf.mxu1  ;;  %v9921_v15 = vpop.f32.mrf.mxu0 }
 0x23e   : > { %v1725_v53 = vadd.f32 %v1724_v43, %v9671_v11  ;;  %v9925_v46 = vadd.f32 %v9697_v9, %v1730_v54  ;;  %v4033_v9 = vld [vmem:[#allocation2 + $0x80] sm:$0xff] }
 0x23f   : > { %v7589_v29 = vpop.f32.mrf.mxu1  ;;  %v9927_v59 = vpop.f32.mrf.mxu0  ;;  %7924 = vmatmul.mubr.msk.f32.gmra.mxu1 %vm875_vm1, %v4031_v33 }
 0x240   : > { %v1740_v8 = vadd.f32 %v7589_v29, %v9679_v31  ;;  %7926 = vmatprep.mubr.msk.f32.mxu1 %vm875_vm1, %v4032_v50  ;;  %v9933_v63 = vadd.f32 %v9705_v41, %v1725_v53  ;;  %v4034_v31 = vld [vmem:[#allocation2 + $0x88] sm:$0xff] }
 0x241   : > { %v1734_v40 = vpop.f32.mrf.mxu1  ;;  %v9935_v49 = vpop.f32.mrf.mxu0 }
 0x242   : > { %v1735_v11 = vadd.f32 %v1734_v40, %v9687_v45  ;;  %v9939_v42 = vadd.f32 %v9713_v2, %v1740_v8  ;;  %v4035_v2 = vld [vmem:[#allocation2 + $0x90] sm:$0xff] }
 0x243   : > { %v7592_v21 = vpop.f32.mrf.mxu1  ;;  %v9941_v54 = vpop.f32.mrf.mxu0  ;;  %7927 = vmatmul.mubr.msk.f32.gmra.mxu1 %vm875_vm1, %v4033_v9 }
 0x244   : > { %v1750_v43 = vadd.f32 %v7592_v21, %v9695_v34  ;;  %7929 = vmatprep.mubr.msk.f32.mxu1 %vm875_vm1, %v4034_v31  ;;  %v9947_v41 = vadd.f32 %v9721_v18, %v1735_v11  ;;  %v4036_v34 = vld [vmem:[#allocation2 + $0x98] sm:$0xff] }
 0x245   : > { %v1744_v53 = vpop.f32.mrf.mxu1  ;;  %v9949_v33 = vpop.f32.mrf.mxu0 }
 0x246   : > { %12262 = vst [vmem:[#allocation28_spill] sm:$0xff] %v9949_v33  ;;  %v1745_v45 = vadd.f32 %v1744_v53, %v9703_v20  ;;  %v9953_v29 = vadd.f32 %v9729_v35, %v1750_v43  ;;  %v4037_v35 = vld [vmem:[#allocation2 + $0xa0] sm:$0xff] }
 0x247   : > { %v7595_v50 = vpop.f32.mrf.mxu1  ;;  %v9955_v8 = vpop.f32.mrf.mxu0  ;;  %7930 = vmatmul.mubr.msk.f32.gmra.mxu1 %vm875_vm1, %v4035_v2 }
 0x248   : > { %v1760_v40 = vadd.f32 %v7595_v50, %v9711_v24  ;;  %7932 = vmatprep.mubr.msk.f32.mxu1 %vm875_vm1, %v4036_v34  ;;  %v9961_v18 = vadd.f32 %v9737_v58, %v1745_v45  ;;  %v4038_v24 = vld [vmem:[#allocation2 + $0xa8] sm:$0xff] }
 0x249   : > { %v1754_v11 = vpop.f32.mrf.mxu1  ;;  %v9963_v9 = vpop.f32.mrf.mxu0 }
 0x24a   : > { %12263 = vst [vmem:[#allocation29_spill] sm:$0xff] %v9961_v18  ;;  %12264 = vst [vmem:[#allocation30_spill] sm:$0xff] %v9963_v9  ;;  %v1755_v20 = vadd.f32 %v1754_v11, %v9719_v4  ;;  %v9967_v21 = vadd.f32 %v9745_v37, %v1760_v40  ;;  %v4039_v37 = vld [vmem:[#allocation2 + $0xb0] sm:$0xff] }
 0x24b   : > { %v7598_v31 = vpop.f32.mrf.mxu1  ;;  %v9969_v43 = vpop.f32.mrf.mxu0  ;;  %7933 = vmatmul.mubr.msk.f32.gmra.mxu1 %vm875_vm1, %v4037_v35  ;;  %v4041_v35 = vld [vmem:[#allocation2 + $0xc0] sm:$0xff] }
 0x24c   : > { %v1770_v53 = vadd.f32 %v7598_v31, %v9727_v51  ;;  %7935 = vmatprep.mubr.msk.f32.mxu1 %vm875_vm1, %v4038_v24  ;;  %v9975_v58 = vadd.f32 %v9753_v17, %v1755_v20  ;;  %v4040_v51 = vld [vmem:[#allocation2 + $0xb8] sm:$0xff] }
 0x24d   : > { %v1764_v45 = vpop.f32.mrf.mxu1  ;;  %v9977_v2 = vpop.f32.mrf.mxu0 }
 0x24e   : > { %12265 = vst [vmem:[#allocation31_spill] sm:$0xff] %v9975_v58  ;;  %12266 = vst [vmem:[#allocation32_spill] sm:$0xff] %v9977_v2  ;;  %v1765_v4 = vadd.f32 %v1764_v45, %v9735_v52  ;;  %v9981_v50 = vadd.f32 %v9761_v30, %v1770_v53  ;;  %v4042_v53 = vld [vmem:[#allocation2 + $0xc8] sm:$0xff] }
 0x24f   : > { %v7601_v34 = vpop.f32.mrf.mxu1  ;;  %v9983_v40 = vpop.f32.mrf.mxu0  ;;  %7936 = vmatmul.mubr.msk.f32.gmra.mxu1 %vm875_vm1, %v4039_v37 }
 0x250   : > { %v1780_v11 = vadd.f32 %v7601_v34, %v9743_v0  ;;  %7938 = vmatprep.mubr.msk.f32.mxu1 %vm875_vm1, %v4040_v51  ;;  %v9989_v17 = vadd.f32 %v9769_v14, %v1765_v4  ;;  %v4043_v4 = vld [vmem:[#allocation2 + $0xd0] sm:$0xff]  ;;  %v4044_v51 = vld [vmem:[#allocation2 + $0xd8] sm:$0xff] }
 0x251   : > { %v9991_v20 = vpop.f32.mrf.mxu1  ;;  %v9993_v52 = vpop.f32.mrf.mxu0 }
 0x252   : > { %12267 = vst [vmem:[#allocation33_spill] sm:$0xff] %v9989_v17  ;;  %12268 = vst [vmem:[#allocation36_spill] sm:$0xff] %v9991_v20  ;;  %v9996_v30 = vadd.f32 %v9777_v26, %v1780_v11 }
 0x253   : > { %12269 = vst [vmem:[#allocation38_spill] sm:$0xff] %v9993_v52  ;;  %v7604_v31 = vpop.f32.mrf.mxu1  ;;  %v9998_v24 = vpop.f32.mrf.mxu0  ;;  %7939 = vmatmul.mubr.msk.f32.gmra.mxu1 %vm875_vm1, %v4041_v35 }
 0x254   : > { %v1790_v0 = vadd.f32 %v7604_v31, %v9759_v16  ;;  %7941 = vmatprep.mubr.msk.f32.mxu1 %vm875_vm1, %v4042_v53  ;;  %v4045_v31 = vld [vmem:[#allocation2 + $0xe0] sm:$0xff] }
 0x255   : > { %v10003_v14 = vpop.f32.mrf.mxu1  ;;  %v10005_v45 = vpop.f32.mrf.mxu0 }
 0x256   : > { %12270 = vst [vmem:[#allocation41_spill] sm:$0xff] %v10003_v14  ;;  %12271 = vst [vmem:[#allocation44_spill] sm:$0xff] %v10005_v45  ;;  %v10008_v37 = vadd.f32 %v9793_v19, %v1790_v0  ;;  %v4046_v45 = vld [vmem:[#allocation2 + $0xe8] sm:$0xff] }
 0x257   : > { %v7607_v26 = vpop.f32.mrf.mxu1  ;;  %v10010_v34 = vpop.f32.mrf.mxu0  ;;  %7942 = vmatmul.mubr.msk.f32.gmra.mxu1 %vm875_vm1, %v4043_v4 }
 0x258   : > { %v1800_v11 = vadd.f32 %v7607_v26, %v9775_v47  ;;  %7944 = vmatprep.mubr.msk.f32.mxu1 %vm875_vm1, %v4044_v51  ;;  %v4047_v51 = vld [vmem:[#allocation2 + $0xf0] sm:$0xff] }
 0x259   : > { %v10015_v16 = vpop.f32.mrf.mxu1  ;;  %v10017_v35 = vpop.f32.mrf.mxu0 }
 0x25a   : > { %12272 = vst [vmem:[#allocation45_spill] sm:$0xff] %v10015_v16  ;;  %12273 = vst [vmem:[#allocation46_spill] sm:$0xff] %v10017_v35  ;;  %v10020_v53 = vadd.f32 %v9809_v62, %v1800_v11  ;;  %v4048_v16 = vld [vmem:[#allocation2 + $0xf8] sm:$0xff] }
 0x25b   : > { %v7610_v19 = vpop.f32.mrf.mxu1  ;;  %v10022_v0 = vpop.f32.mrf.mxu0  ;;  %7945 = vmatmul.mubr.msk.f32.gmra.mxu1 %vm875_vm1, %v4045_v31 }
 0x25c   : > { %v1810_v4 = vadd.f32 %v7610_v19, %v9791_v36  ;;  %7947 = vmatprep.mubr.msk.f32.mxu1 %vm875_vm1, %v4046_v45  ;;  %v4049_v19 = vld [vmem:[#allocation2 + $0x100] sm:$0xff] }
 0x25d   : > { %v10027_v47 = vpop.f32.mrf.mxu1  ;;  %v10029_v26 = vpop.f32.mrf.mxu0 }
 0x25e   : > { %12274 = vst [vmem:[#allocation47_spill] sm:$0xff] %v10027_v47  ;;  %12275 = vst [vmem:[#allocation48_spill] sm:$0xff] %v10029_v26  ;;  %v10032_v35 = vadd.f32 %v9825_v7, %v1810_v4  ;;  %v4050_v47 = vld [vmem:[#allocation2 + $0x108] sm:$0xff] }
 0x25f   : > { %v7613_v62 = vpop.f32.mrf.mxu1  ;;  %v10034_v11 = vpop.f32.mrf.mxu0  ;;  %7948 = vmatmul.mubr.msk.f32.gmra.mxu1 %vm875_vm1, %v4047_v51 }
 0x260   : > { %v1820_v31 = vadd.f32 %v7613_v62, %v9807_v25  ;;  %7950 = vmatprep.mubr.msk.f32.mxu1 %vm875_vm1, %v4048_v16  ;;  %v4052_v62 = vld [vmem:[#allocation2 + $0x118] sm:$0xff] }
 0x261   : > { %v10039_v36 = vpop.f32.mrf.mxu1  ;;  %v10041_v45 = vpop.f32.mrf.mxu0 }
 0x262   : > { %12276 = vst [vmem:[#allocation49_spill] sm:$0xff] %v10039_v36  ;;  %12277 = vst [vmem:[#allocation50_spill] sm:$0xff] %v10041_v45  ;;  %v10044_v26 = vadd.f32 %v9841_v55, %v1820_v31  ;;  %v4051_v45 = vld [vmem:[#allocation2 + $0x110] sm:$0xff] }
 0x263   : > { %v7616_v7 = vpop.f32.mrf.mxu1  ;;  %v10046_v4 = vpop.f32.mrf.mxu0  ;;  %7951 = vmatmul.mubr.msk.f32.gmra.mxu1 %vm875_vm1, %v4049_v19 }
 0x264   : > { %v1830_v51 = vadd.f32 %v7616_v7, %v9823_v28  ;;  %7953 = vmatprep.mubr.msk.f32.mxu1 %vm875_vm1, %v4050_v47  ;;  %v4053_v28 = vld [vmem:[#allocation2 + $0x120] sm:$0xff] }
 0x265   : > { %v10051_v25 = vpop.f32.mrf.mxu1  ;;  %v10053_v16 = vpop.f32.mrf.mxu0 }
 0x266   : > { %12278 = vst [vmem:[#allocation51_spill] sm:$0xff] %v10051_v25  ;;  %12279 = vst [vmem:[#allocation52_spill] sm:$0xff] %v10053_v16  ;;  %v10056_v36 = vadd.f32 %v9857_v57, %v1830_v51 }
 0x267   : > { %v7619_v55 = vpop.f32.mrf.mxu1  ;;  %v10058_v31 = vpop.f32.mrf.mxu0  ;;  %7954 = vmatmul.mubr.msk.f32.gmra.mxu1 %vm875_vm1, %v4051_v45 }
 0x268   : > { %v1840_v19 = vadd.f32 %v7619_v55, %v9839_v39  ;;  %7956 = vmatprep.mubr.msk.f32.mxu1 %vm875_vm1, %v4052_v62 }
 0x269   : > { %v10063_v47 = vpop.f32.mrf.mxu1  ;;  %v10065_v7 = vpop.f32.mrf.mxu0 }
 0x26a   : > { %12280 = vst [vmem:[#allocation53_spill] sm:$0xff] %v10065_v7  ;;  %v10068_v16 = vadd.f32 %v9869_v10, %v1840_v19 }
 0x26b   : > { %v7622_v25 = vpop.f32.mrf.mxu1  ;;  %v10070_v57 = vpop.f32.mrf.mxu0  ;;  %7957 = vmatmul.mubr.msk.f32.gmra.mxu1 %vm875_vm1, %v4053_v28 }
 0x26c   : > { %v1850_v51 = vadd.f32 %v7622_v25, %v9855_v1 }
 0x26d   : > { %v10074_v45 = vpop.f32.mrf.mxu1  ;;  %v10076_v39 = vpop.f32.mrf.mxu0 }
 0x26e   : > { %12281 = vst [vmem:[#allocation54_spill] sm:$0xff] %v10076_v39  ;;  %v10079_v62 = vadd.f32 %v9884_v60, %v1850_v51 }
 0x26f   : > { %v7689_v55 = vpop.f32.mrf.mxu1  ;;  %v10081_v14 = vpop.f32.mrf.mxu0 }
 0x270   : > { %v2760_v10 = vadd.f32 %v7689_v55, %v9882_v13 }
 0x271   : > { %v10084_v19 = vpop.f32.mrf.mxu1  ;;  %v10086_v7 = vpop.f32.mrf.mxu0 }
 0x272   : > { %v10089_v28 = vadd.f32 %v9899_v48, %v2760_v10 }
 0x273   : > { %v7692_v1 = vpop.f32.mrf.mxu1  ;;  %v10091_v25 = vpop.f32.mrf.mxu0 }
 0x274   : > { %v2762_v39 = vadd.f32 %v7692_v1, %v9897_v6 }
 0x275   : > { %v10094_v52 = vpop.f32.mrf.mxu1  ;;  %v10096_v60 = vpop.f32.mrf.mxu0 }
 0x276   : > { %v10099_v51 = vadd.f32 %v9913_v61, %v2762_v39 }
 0x277   : > { %v7695_v13 = vpop.f32.mrf.mxu1  ;;  %v10101_v55 = vpop.f32.mrf.mxu0 }
 0x278   : > { %v2764_v17 = vadd.f32 %v7695_v13, %v9911_v32 }
 0x279   : > { %v10104_v20 = vpop.f32.mrf.mxu1  ;;  %v10106_v48 = vpop.f32.mrf.mxu0 }
 0x27a   : > { %v10109_v10 = vadd.f32 %v9927_v59, %v2764_v17 }
 0x27b   : > { %v7698_v6 = vpop.f32.mrf.mxu1  ;;  %v10111_v1 = vpop.f32.mrf.mxu0 }
 0x27c   : > { %v2766_v38 = vadd.f32 %v7698_v6, %v9925_v46 }
 0x27d   : > { %v10114_v2 = vpop.f32.mrf.mxu1  ;;  %v10116_v61 = vpop.f32.mrf.mxu0 }
 0x27e   : > { %v10119_v39 = vadd.f32 %v9941_v54, %v2766_v38 }
 0x27f   : > { %v7701_v32 = vpop.f32.mrf.mxu1  ;;  %v10121_v13 = vpop.f32.mrf.mxu0 }
 0x280   : > { %12282 = vst [vmem:[#allocation55_spill] sm:$0xff] %v10119_v39  ;;  %v2768_v58 = vadd.f32 %v7701_v32, %v9939_v42 }
 0x281   : > { %v10124_v9 = vpop.f32.mrf.mxu1  ;;  %v10126_v59 = vpop.f32.mrf.mxu0 }
 0x282   : > { %12283 = vst [vmem:[#allocation56_spill] sm:$0xff] %v10126_v59  ;;  %v10129_v17 = vadd.f32 %v9955_v8, %v2768_v58 }
 0x283   : > { %v7704_v46 = vpop.f32.mrf.mxu1  ;;  %v10131_v6 = vpop.f32.mrf.mxu0 }
 0x284   : > { %12284 = vst [vmem:[#allocation57_spill] sm:$0xff] %v10129_v17  ;;  %v2770_v18 = vadd.f32 %v7704_v46, %v9953_v29 }
 0x285   : > { %v10134_v33 = vpop.f32.mrf.mxu1  ;;  %v10136_v38 = vpop.f32.mrf.mxu0 }
 0x286   : > { %12285 = vst [vmem:[#allocation58_spill] sm:$0xff] %v10136_v38  ;;  %v10139_v54 = vadd.f32 %v9969_v43, %v2770_v18 }
 0x287   : > { %v7707_v42 = vpop.f32.mrf.mxu1  ;;  %v10141_v32 = vpop.f32.mrf.mxu0 }
 0x288   : > { %12286 = vst [vmem:[#allocation59_spill] sm:$0xff] %v10139_v54  ;;  %v2772_v59 = vadd.f32 %v7707_v42, %v9967_v21 }
 0x289   : > { %v10144_v39 = vpop.f32.mrf.mxu1  ;;  %v10146_v8 = vpop.f32.mrf.mxu0 }
 0x28a   : > { %12287 = vst [vmem:[#allocation60_spill] sm:$0xff] %v10146_v8  ;;  %v10149_v58 = vadd.f32 %v9983_v40, %v2772_v59 }
 0x28b   : > { %v7710_v29 = vpop.f32.mrf.mxu1  ;;  %v10151_v46 = vpop.f32.mrf.mxu0 }
 0x28c   : > { %12288 = vst [vmem:[#allocation61_spill] sm:$0xff] %v10149_v58  ;;  %v2774_v38 = vadd.f32 %v7710_v29, %v9981_v50 }
 0x28d   : > { %v10154_v17 = vpop.f32.mrf.mxu1  ;;  %v10156_v18 = vpop.f32.mrf.mxu0 }
 0x28e   : > { %12289 = vst [vmem:[#allocation62_spill] sm:$0xff] %v10156_v18  ;;  %v10159_v43 = vadd.f32 %v9998_v24, %v2774_v38 }
 0x28f   : > { %v7713_v21 = vpop.f32.mrf.mxu1  ;;  %v10161_v42 = vpop.f32.mrf.mxu0 }
 0x290   : > { %12290 = vst [vmem:[#allocation63_spill] sm:$0xff] %v10159_v43  ;;  %v2776_v8 = vadd.f32 %v7713_v21, %v9996_v30 }
 0x291   : > { %v10164_v54 = vpop.f32.mrf.mxu1  ;;  %v10166_v40 = vpop.f32.mrf.mxu0 }
 0x292   : > { %12291 = vst [vmem:[#allocation64_spill] sm:$0xff] %v10166_v40  ;;  %v10169_v59 = vadd.f32 %v10010_v34, %v2776_v8 }
 0x293   : > { %v7716_v50 = vpop.f32.mrf.mxu1  ;;  %v10171_v29 = vpop.f32.mrf.mxu0 }
 0x294   : > { %12292 = vst [vmem:[#allocation65_spill] sm:$0xff] %v10169_v59  ;;  %v2778_v18 = vadd.f32 %v7716_v50, %v10008_v37 }
 0x295   : > { %v10174_v58 = vpop.f32.mrf.mxu1  ;;  %v10176_v24 = vpop.f32.mrf.mxu0 }
 0x296   : > { %12293 = vst [vmem:[#allocation66_spill] sm:$0xff] %v10176_v24  ;;  %v10179_v38 = vadd.f32 %v10022_v0, %v2778_v18 }
 0x297   : > { %v7719_v30 = vpop.f32.mrf.mxu1  ;;  %v10181_v21 = vpop.f32.mrf.mxu0 }
 0x298   : > { %12294 = vst [vmem:[#allocation67_spill] sm:$0xff] %v10179_v38  ;;  %v2780_v40 = vadd.f32 %v7719_v30, %v10020_v53 }
 0x299   : > { %v10184_v43 = vpop.f32.mrf.mxu1  ;;  %v10186_v34 = vpop.f32.mrf.mxu0 }
 0x29a   : > { %12295 = vst [vmem:[#allocation68_spill] sm:$0xff] %v10186_v34  ;;  %v10189_v8 = vadd.f32 %v10034_v11, %v2780_v40 }
 0x29b   : > { %v7722_v37 = vpop.f32.mrf.mxu1  ;;  %v10191_v50 = vpop.f32.mrf.mxu0 }
 0x29c   : > { %v2782_v24 = vadd.f32 %v7722_v37, %v10032_v35 }
 0x29d   : > { %v10194_v59 = vpop.f32.mrf.mxu1  ;;  %v10196_v0 = vpop.f32.mrf.mxu0 }
 0x29e   : > { %12296 = vst [vmem:[#allocation69_spill] sm:$0xff] %v10196_v0  ;;  %v10199_v18 = vadd.f32 %v10046_v4, %v2782_v24  ;;  %v1835_v0 = vadd.f32 %v10063_v47, %v9847_v27 }
 0x29f   : > { %v7725_v53 = vpop.f32.mrf.mxu1  ;;  %v10201_v30 = vpop.f32.mrf.mxu0 }
 0x2a0   : > { %12297 = vst [vmem:[#allocation70_spill] sm:$0xff] %v10199_v18  ;;  %v2784_v34 = vadd.f32 %v7725_v53, %v10044_v26 }
 0x2a1   : > { %v10204_v38 = vpop.f32.mrf.mxu1  ;;  %v10206_v11 = vpop.f32.mrf.mxu0 }
 0x2a2   : > { %12298 = vst [vmem:[#allocation71_spill] sm:$0xff] %v10206_v11  ;;  %v10209_v40 = vadd.f32 %v10058_v31, %v2784_v34  ;;  %v1845_v31 = vadd.f32 %v10074_v45, %v9863_v3 }
 0x2a3   : > { %v7728_v35 = vpop.f32.mrf.mxu1  ;;  %v10211_v37 = vpop.f32.mrf.mxu0 }
 0x2a4   : > { %12299 = vst [vmem:[#allocation72_spill] sm:$0xff] %v10209_v40  ;;  %v2786_v4 = vadd.f32 %v7728_v35, %v10056_v36  ;;  %v2366_v40 = vadd.f32 %v9878_v5, %v1835_v0  ;;  %v2368_v3 = vadd.f32 %v9893_v22, %v1845_v31 }
 0x2a5   : > { %v10216_v24 = vpop.f32.mrf.mxu1  ;;  %v10218_v18 = vpop.f32.mrf.mxu0 }
 0x2a6   : > { %12300 = vst [vmem:[#allocation73_spill] sm:$0xff] %v10218_v18  ;;  %v10221_v26 = vadd.f32 %v10070_v57, %v2786_v4  ;;  %v2759_v4 = vadd.f32 %v10084_v19, %v9891_v56  ;;  %v2761_v56 = vadd.f32 %v10094_v52, %v9905_v12  ;;  %v2763_v12 = vadd.f32 %v10104_v20, %v9919_v23 }
 0x2a7   : > { %v7731_v53 = vpop.f32.mrf.mxu1  ;;  %v10223_v11 = vpop.f32.mrf.mxu0  ;;  %v2765_v23 = vadd.f32 %v10114_v2, %v9933_v63  ;;  %v12303_v2 = vld [vmem:[#allocation28_spill] sm:$0xff] }
 0x2a8   : > { %12301 = vst [vmem:[#allocation74_spill] sm:$0xff] %v10221_v26  ;;  %v2788_v34 = vadd.f32 %v7731_v53, %v10068_v16  ;;  %v3148_v22 = vadd.f32 %v9907_v44, %v2759_v4  ;;  %v3150_v44 = vadd.f32 %v9921_v15, %v2761_v56  ;;  %v3152_v15 = vadd.f32 %v9935_v49, %v2763_v12  ;;  %v12305_v12 = vld [vmem:[#allocation29_spill] sm:$0xff] }
 0x2a9   : > { %v2740_v27 = vpop.f32.mrf.mxu1  ;;  %v10229_v47 = vpop.f32.mrf.mxu0  ;;  %v2767_v56 = vadd.f32 %v10124_v9, %v9947_v41  ;;  %v12307_v9 = vld [vmem:[#allocation30_spill] sm:$0xff] }
 0x2aa   : > { %v2787_v36 = vadd.f32 %v2740_v27, %v2366_v40  ;;  %v10232_v35 = vadd.f32 %v10081_v14, %v2788_v34 }
 0x2ab   : > { %v7734_v18 = vpop.f32.mrf.mxu1  ;;  %v10234_v57 = vpop.f32.mrf.mxu0 }
 0x2ac   : > { %v2790_v26 = vadd.f32 %v7734_v18, %v10079_v62  ;;  %v10241_v16 = vadd.f32 %v10086_v7, %v2787_v36 }
 0x2ad   : > { %v2750_v5 = vpop.f32.mrf.mxu1  ;;  %v10243_v45 = vpop.f32.mrf.mxu0 }
 0x2ae   : > { %v2789_v0 = vadd.f32 %v2750_v5, %v2368_v3  ;;  %v10246_v14 = vadd.f32 %v10091_v25, %v2790_v26 }
 0x2af   : > { %v7801_v40 = vpop.f32.mrf.mxu1  ;;  %v10248_v53 = vpop.f32.mrf.mxu0 }
 0x2b0   : > { %v3570_v62 = vadd.f32 %v7801_v40, %v10089_v28  ;;  %v10255_v7 = vadd.f32 %v10096_v60, %v2789_v0 }
 0x2b1   : > { %v3410_v19 = vpop.f32.mrf.mxu1  ;;  %v10257_v18 = vpop.f32.mrf.mxu0 }
 0x2b2   : > { %v3569_v31 = vadd.f32 %v3410_v19, %v3148_v22  ;;  %v10260_v25 = vadd.f32 %v10101_v55, %v3570_v62  ;;  %v12302_v62 = vld [vmem:[#allocation55_spill] sm:$0xff]  ;;  %v12304_v22 = vld [vmem:[#allocation56_spill] sm:$0xff] }
 0x2b3   : > { %v7804_v26 = vpop.f32.mrf.mxu1  ;;  %v10262_v34 = vpop.f32.mrf.mxu0 }
 0x2b4   : > { %v3572_v52 = vadd.f32 %v7804_v26, %v10099_v51  ;;  %v10269_v28 = vadd.f32 %v10106_v48, %v3569_v31 }
 0x2b5   : > { %v3420_v60 = vpop.f32.mrf.mxu1  ;;  %v10271_v27 = vpop.f32.mrf.mxu0 }
 0x2b6   : > { %v3571_v36 = vadd.f32 %v3420_v60, %v3150_v44  ;;  %v10274_v55 = vadd.f32 %v10111_v1, %v3572_v52  ;;  %v2769_v52 = vadd.f32 %v10134_v33, %v12305_v12  ;;  %v12306_v44 = vld [vmem:[#allocation57_spill] sm:$0xff]  ;;  %v3156_v60 = vadd.f32 %v12307_v9, %v2767_v56 }
 0x2b7   : > { %v7807_v4 = vpop.f32.mrf.mxu1  ;;  %v10276_v3 = vpop.f32.mrf.mxu0  ;;  %v12318_v9 = vld [vmem:[#allocation33_spill] sm:$0xff] }
 0x2b8   : > { %v3574_v20 = vadd.f32 %v7807_v4, %v10109_v10  ;;  %v10283_v51 = vadd.f32 %v10116_v61, %v3571_v36  ;;  %v3154_v10 = vadd.f32 %v12303_v2, %v2765_v23  ;;  %v12308_v36 = vld [vmem:[#allocation58_spill] sm:$0xff] }
 0x2b9   : > { %v3430_v48 = vpop.f32.mrf.mxu1  ;;  %v10285_v5 = vpop.f32.mrf.mxu0 }
 0x2ba   : > { %v3573_v0 = vadd.f32 %v3430_v48, %v3152_v15  ;;  %v10288_v1 = vadd.f32 %v10121_v13, %v3574_v20 }
 0x2bb   : > { %v7810_v40 = vpop.f32.mrf.mxu1  ;;  %v10297_v61 = vpop.f32.mrf.mxu0 }
 0x2bc   : > { %v3576_v63 = vadd.f32 %v7810_v40, %v12302_v62  ;;  %v10295_v49 = vadd.f32 %v12304_v22, %v3573_v0  ;;  %v12310_v0 = vld [vmem:[#allocation31_spill] sm:$0xff]  ;;  %v12315_v22 = vld [vmem:[#allocation34_spill] sm:$0xff] }
 0x2bd   : > { %v3440_v19 = vpop.f32.mrf.mxu1  ;;  %v10309_v23 = vpop.f32.mrf.mxu0  ;;  %v2771_v40 = vadd.f32 %v10144_v39, %v12310_v0  ;;  %v12311_v62 = vld [vmem:[#allocation59_spill] sm:$0xff]  ;;  %v2773_v39 = vadd.f32 %v10154_v17, %v12318_v9  ;;  %v12327_v9 = vld [vmem:[#allocation44_spill] sm:$0xff] }
 0x2be   : > { %v3575_v31 = vadd.f32 %v3440_v19, %v3154_v10  ;;  %v10300_v26 = vadd.f32 %v10131_v6, %v3576_v63  ;;  %v12312_v63 = vld [vmem:[#allocation32_spill] sm:$0xff]  ;;  %v12323_v0 = vld [vmem:[#allocation35_spill] sm:$0xff] }
 0x2bf   : > { %v7813_v13 = vpop.f32.mrf.mxu1  ;;  %v3158_v2 = vadd.f32 %v12312_v63, %v2769_v52  ;;  %v12313_v10 = vld [vmem:[#allocation60_spill] sm:$0xff]  ;;  %v12320_v52 = vld [vmem:[#allocation38_spill] sm:$0xff] }
 0x2c0   : > { %v3578_v41 = vadd.f32 %v7813_v13, %v12306_v44  ;;  %v10307_v4 = vadd.f32 %v12308_v36, %v3575_v31  ;;  %v12316_v19 = vld [vmem:[#allocation36_spill] sm:$0xff]  ;;  %v10323_v13 = vpop.f32.mrf.mxu0 }
 0x2c1   : > { %v3450_v20 = vpop.f32.mrf.mxu1  ;;  %v1775_v31 = vadd.f32 %v12316_v19, %v12315_v22 }
 0x2c2   : > { %v3577_v15 = vadd.f32 %v3450_v20, %v3156_v60  ;;  %v10312_v48 = vadd.f32 %v10141_v32, %v3578_v41  ;;  %v12319_v60 = vld [vmem:[#allocation61_spill] sm:$0xff]  ;;  %v3160_v20 = vadd.f32 %v12320_v52, %v2771_v40 }
 0x2c3   : > { %v7816_v6 = vpop.f32.mrf.mxu1 }
 0x2c4   : > { %12309 = vst [vmem:[#allocation55_spill] sm:$0xff] %v10312_v48  ;;  %v3580_v33 = vadd.f32 %v7816_v6, %v12311_v62  ;;  %v10319_v56 = vadd.f32 %v12313_v10, %v3577_v15  ;;  %v12321_v15 = vld [vmem:[#allocation62_spill] sm:$0xff]  ;;  %v12324_v62 = vld [vmem:[#allocation41_spill] sm:$0xff]  ;;  %v12325_v10 = vld [vmem:[#allocation39_spill] sm:$0xff] }
 0x2c5   : > { %v3460_v12 = vpop.f32.mrf.mxu1  ;;  %v1785_v63 = vadd.f32 %v12324_v62, %v12323_v0  ;;  %v2354_v22 = vadd.f32 %v12325_v10, %v1775_v31  ;;  %v12330_v0 = vld [vmem:[#allocation45_spill] sm:$0xff]  ;;  %v12331_v62 = vld [vmem:[#allocation42_spill] sm:$0xff]  ;;  %v12340_v48 = vld [vmem:[#allocation19_spill] sm:$0xff] }
 0x2c6   : > { %12314 = vst [vmem:[#allocation28_spill] sm:$0xff] %v10319_v56  ;;  %v3579_v44 = vadd.f32 %v3460_v12, %v3158_v2  ;;  %v10326_v32 = vadd.f32 %v10151_v46, %v3580_v33  ;;  %v10338_v2 = vpop.f32.mrf.mxu0 }
 0x2c7   : > { %v7819_v41 = vpop.f32.mrf.mxu1  ;;  %v2775_v17 = vadd.f32 %v10164_v54, %v2354_v22  ;;  %v2356_v10 = vadd.f32 %v12331_v62, %v1785_v63  ;;  %v12332_v54 = vld [vmem:[#allocation15_spill] sm:$0xff]  ;;  %v12337_v63 = vld [vmem:[#allocation66_spill] sm:$0xff] }
 0x2c8   : > { %12317 = vst [vmem:[#allocation56_spill] sm:$0xff] %v10326_v32  ;;  %v3582_v36 = vadd.f32 %v7819_v41, %v12319_v60  ;;  %v10333_v6 = vadd.f32 %v12321_v15, %v3579_v44  ;;  %v12326_v41 = vld [vmem:[#allocation63_spill] sm:$0xff]  ;;  %v3162_v44 = vadd.f32 %v12327_v9, %v2773_v39  ;;  %v12328_v60 = vld [vmem:[#allocation64_spill] sm:$0xff]  ;;  %v12329_v15 = vld [vmem:[#allocation37_spill] sm:$0xff]  ;;  %v10352_v56 = vpop.f32.mrf.mxu0  ;;  %v4906_v22 = vshra.s32 %v12332_v54, 3 }
 0x2c9   : > { %v3470_v46 = vpop.f32.mrf.mxu1  ;;  %v1795_v31 = vadd.f32 %v12330_v0, %v12329_v15  ;;  %v2777_v39 = vadd.f32 %v10174_v58, %v2356_v10 }
 0x2ca   : > { %12322 = vst [vmem:[#allocation29_spill] sm:$0xff] %v10333_v6  ;;  %v3581_v33 = vadd.f32 %v3470_v46, %v3160_v20  ;;  %v10341_v19 = vadd.f32 %v10161_v42, %v3582_v36  ;;  %v12333_v46 = vlaneseq  ;;  %v4922_v62 = vmul.u32 2, %v4906_v22 }
 0x2cb   : > { %v7822_v12 = vpop.f32.mrf.mxu1  ;;  %v2358_v6 = vadd.f32 %v12340_v48, %v1795_v31  ;;  %v12345_v48 = vld [vmem:[#allocation68_spill] sm:$0xff] }
 0x2cc   : > { %v3584_v40 = vadd.f32 %v7822_v12, %v12326_v41  ;;  %v10347_v52 = vadd.f32 %v12328_v60, %v3581_v33  ;;  %v10359_v12 = vand.u32 127, %v12333_v46  ;;  %v12335_v41 = vld [vmem:[#allocation46_spill] sm:$0xff]  ;;  %v12336_v60 = vld [vmem:[#allocation65_spill] sm:$0xff]  ;;  %v10371_v46 = vpop.f32.mrf.mxu0 }
 0x2cd   : > { %v3480_v20 = vpop.f32.mrf.mxu1  ;;  %v3164_v9 = vadd.f32 %v12335_v41, %v2775_v17  ;;  %v4930_v17 = vmul.u32 16, %v4922_v62 }
 0x2ce   : > { %v3583_v42 = vadd.f32 %v3480_v20, %v3162_v44  ;;  %v10355_v36 = vadd.f32 %v10171_v29, %v3584_v40  ;;  %12334 = vst [vmem:[#allocation57_spill] sm:$0xff] %v10359_v12  ;;  %v4914_v44 = vand.u32 7, %v12332_v54  ;;  %v12338_v29 = vld [vmem:[#allocation40_spill] sm:$0xff]  ;;  %v12339_v40 = vld [vmem:[#allocation47_spill] sm:$0xff]  ;;  %v10379_v22 = vadd.s32 128, %v10359_v12 }
 0x2cf   : > { %v7825_v33 = vpop.f32.mrf.mxu1  ;;  %v1805_v20 = vadd.f32 %v12339_v40, %v12338_v29  ;;  %v12344_v29 = vld [vmem:[#allocation67_spill] sm:$0xff] }
 0x2d0   : > { %v3586_v15 = vadd.f32 %v7825_v33, %v12336_v60  ;;  %v10365_v0 = vadd.f32 %v12337_v63, %v3583_v42  ;;  %v4938_v33 = vmul.u32 2, %v4914_v44  ;;  %v2779_v42 = vadd.f32 %v10184_v43, %v2358_v6  ;;  %v12342_v60 = vld [vmem:[#allocation48_spill] sm:$0xff]  ;;  %12343 = vst [vmem:[#allocation58_spill] sm:$0xff] %v10379_v22  ;;  %v12349_v44 = vld [vmem:[#allocation43_spill] sm:$0xff]  ;;  %v12350_v43 = vld [vmem:[#allocation49_spill] sm:$0xff] }
 0x2d1   : > { %v3490_v32 = vpop.f32.mrf.mxu1  ;;  %v3166_v63 = vadd.f32 %v12342_v60, %v2777_v39  ;;  %v1815_v6 = vadd.f32 %v12350_v43, %v12349_v44  ;;  %v12353_v60 = vld [vmem:[#allocation50_spill] sm:$0xff] }
 0x2d2   : > { %v3585_v58 = vadd.f32 %v3490_v32, %v3164_v9  ;;  %v10374_v10 = vadd.f32 %v10181_v21, %v3586_v15  ;;  %v10385_v54 = vadd.s32 %v4938_v33, %v4930_v17  ;;  %v12348_v32 = vld [vmem:[#allocation25_spill] sm:$0xff]  ;;  %v10388_v9 = vpop.f32.mrf.mxu0  ;;  %v12358_v43 = vld [vmem:[#allocation26_spill] sm:$0xff] }
 0x2d3   : > { %v7828_v41 = vpop.f32.mrf.mxu1  ;;  %v2360_v21 = vadd.f32 %v12348_v32, %v1805_v20  ;;  %v12356_v32 = vld [vmem:[#allocation23_spill] sm:$0xff] }
 0x2d4   : > { %12341 = vst [vmem:[#allocation30_spill] sm:$0xff] %v10374_v10  ;;  %v3588_v40 = vadd.f32 %v7828_v41, %v12344_v29  ;;  %v10383_v31 = vadd.f32 %v12345_v48, %v3585_v58  ;;  %12347 = vst [vmem:[#allocation59_spill] sm:$0xff] %v10385_v54  ;;  %vm4955_vm3 = vcmp.eq.s32.totalorder %v10379_v22, %v10385_v54  ;;  %v11972_v58 = vmov 1.0  }
 0x2d5   : > { %v3500_v15 = vpop.f32.mrf.mxu1  ;;  %6656 = vmatprep.mubr.msk.f32.mxu1 %vm4955_vm3, %v11972_v58  ;;  %v10402_v20 = vadd.s32 1, %v10385_v54  ;;  %v2781_v17 = vadd.f32 %v10194_v59, %v2360_v21  ;;  %v2362_v58 = vadd.f32 %v12358_v43, %v1815_v6  ;;  %v12360_v21 = vmov 0 }
 0x2d6   : > { %12346 = vst [vmem:[#allocation31_spill] sm:$0xff] %v10383_v31  ;;  %v3587_v62 = vadd.f32 %v3500_v15, %v3166_v63  ;;  %v10393_v39 = vadd.f32 %v10191_v50, %v3588_v40  ;;  %v3168_v50 = vadd.f32 %v12353_v60, %v2779_v42  ;;  %v12354_v63 = vld [vmem:[#allocation69_spill] sm:$0xff]  ;;  %v10410_v40 = vpop.f32.mrf.mxu0  ;;  %v12357_v15 = vld [vmem:[#allocation51_spill] sm:$0xff] }
 0x2d7   : > { %v7831_v41 = vpop.f32.mrf.mxu1  ;;  %12352 = vst [vmem:[#allocation60_spill] sm:$0xff] %v10402_v20  ;;  %vm5100_vm4 = vcmp.eq.s32.totalorder %v10379_v22, %v10402_v20  ;;  %v1825_v44 = vadd.f32 %v12357_v15, %v12356_v32  ;;  %v12366_v32 = vld [vmem:[#allocation27_spill] sm:$0xff] }
 0x2d8   : > { %12351 = vst [vmem:[#allocation32_spill] sm:$0xff] %v10393_v39  ;;  %v3590_v33 = vadd.f32 %v7831_v41, %v10189_v8  ;;  %v10408_v29 = vadd.f32 %v12354_v63, %v3587_v62  ;;  %v12359_v8 = vmov 1.0   ;;  %vm10424_vm5 = vmor %vm4955_vm3, %vm5100_vm4  ;;  %v2783_v62 = vadd.f32 %v10204_v38, %v2362_v58  ;;  %v12363_v41 = vld [vmem:[#allocation70_spill] sm:$0xff]  ;;  %v12364_v63 = vld [vmem:[#allocation52_spill] sm:$0xff] }
 0x2d9   : > { %v3510_v48 = vpop.f32.mrf.mxu1  ;;  %6672 = vmatprep.mubr.msk.f32.mxu0 %vm5100_vm4, %v12359_v8  ;;  %v12361_v21 = vsel %vm10424_vm5, 4294967295, %v12360_v21  ;;  %v3170_v6 = vadd.f32 %v12364_v63, %v2781_v17  ;;  %v2364_v15 = vadd.f32 %v12366_v32, %v1825_v44  ;;  %v12367_v38 = vld [vmem:[#allocation72_spill] sm:$0xff]  ;;  %v12369_v17 = vld [vmem:[#allocation73_spill] sm:$0xff] }
 0x2da   : > { %12355 = vst [vmem:[#allocation34_spill] sm:$0xff] %v10408_v29  ;;  %v3589_v12 = vadd.f32 %v3510_v48, %v3168_v50  ;;  %v10418_v59 = vadd.f32 %v10201_v30, %v3590_v33  ;;  %12362 = vst [vmem:[#allocation36_spill] sm:$0xff] %v12361_v21  ;;  %v12365_v50 = vld [vmem:[#allocation71_spill] sm:$0xff]  ;;  %v10434_v30 = vpop.f32.mrf.mxu0 }
 0x2db   : > { %v7834_v42 = vpop.f32.mrf.mxu1  ;;  %v2785_v21 = vadd.f32 %v10216_v24, %v2364_v15 }
 0x2dc   : > { %v3592_v60 = vadd.f32 %v7834_v42, %v12363_v41  ;;  %v10432_v48 = vadd.f32 %v12365_v50, %v3589_v12  ;;  %v12368_v42 = vld [vmem:[#allocation53_spill] sm:$0xff]  ;;  %v10446_v12 = vpop.f32.mrf.mxu0 }
 0x2dd   : > { %v3520_v33 = vpop.f32.mrf.mxu1  ;;  %v3172_v41 = vadd.f32 %v12368_v42, %v2783_v62 }
 0x2de   : > { %v3591_v43 = vadd.f32 %v3520_v33, %v3170_v6  ;;  %v10438_v22 = vadd.f32 %v10211_v37, %v3592_v60  ;;  %v12370_v37 = vld [vmem:[#allocation74_spill] sm:$0xff] }
 0x2df   : > { %v7837_v8 = vpop.f32.mrf.mxu1  ;;  %v12371_v33 = vld [vmem:[#allocation54_spill] sm:$0xff] }
 0x2e0   : > { %v3594_v58 = vadd.f32 %v7837_v8, %v12367_v38  ;;  %v10444_v63 = vadd.f32 %v12369_v17, %v3591_v43  ;;  %v3174_v32 = vadd.f32 %v12371_v33, %v2785_v21  ;;  %v10456_v8 = vpop.f32.mrf.mxu0 }
 0x2e1   : > { %v3530_v50 = vpop.f32.mrf.mxu1 }
 0x2e2   : > { %v3593_v20 = vadd.f32 %v3530_v50, %v3172_v41  ;;  %v10449_v44 = vadd.f32 %v10223_v11, %v3594_v58  ;;  %v10465_v58 = vpop.f32.mrf.mxu0 }
 0x2e3   : > { %v7840_v6 = vpop.f32.mrf.mxu1 }
 0x2e4   : > { %v3596_v60 = vadd.f32 %v7840_v6, %v12370_v37  ;;  %v10454_v24 = vadd.f32 %v10229_v47, %v3593_v20 }
 0x2e5   : > { %v3540_v62 = vpop.f32.mrf.mxu1 }
 0x2e6   : > { %v3595_v15 = vadd.f32 %v3540_v62, %v3174_v32  ;;  %v10459_v43 = vadd.f32 %v10234_v57, %v3596_v60  ;;  %v10474_v57 = vpop.f32.mrf.mxu0 }
 0x2e7   : > { %v7843_v38 = vpop.f32.mrf.mxu1 }
 0x2e8   : > { %v3598_v42 = vadd.f32 %v7843_v38, %v10232_v35  ;;  %v10463_v11 = vadd.f32 %v10243_v45, %v3595_v15  ;;  %v10477_v45 = vpop.f32.mrf.mxu0 }
 0x2e9   : > { %v3550_v41 = vpop.f32.mrf.mxu1 }
 0x2ea   : > { %v3597_v21 = vadd.f32 %v3550_v41, %v10241_v16  ;;  %v10469_v47 = vadd.f32 %v10248_v53, %v3598_v42  ;;  %v10487_v32 = vpop.f32.mrf.mxu0 }
 0x2eb   : > { %v7846_v20 = vpop.f32.mrf.mxu1  ;;  %12374 = vst [vmem:[#allocation38_spill] sm:$0xff] %v10487_v32 }
 0x2ec   : > { %v10472_v17 = vadd.f32 %v10257_v18, %v3597_v21  ;;  %v10497_v42 = vpop.f32.mrf.mxu0  ;;  %v3600_v31 = vadd.f32 %v7846_v20, %v10246_v14 }
 0x2ed   : > { %v3560_v50 = vpop.f32.mrf.mxu1  ;;  %12377 = vst [vmem:[#allocation41_spill] sm:$0xff] %v10497_v42 }
 0x2ee   : > { %v4021_v29 = vadd.f32 %v10262_v34, %v3600_v31  ;;  %v10565_v34 = vld [vmem:[%s11858_s4] ss:$0 sm:$0xff] }
 0x2ef   : > { %v7913_v6 = vpop.f32.mrf.mxu1 }
 0x2f0   : > { %v4380_v35 = vadd.f32 %v7913_v6, %v10260_v25  ;;  %v10507_v6 = vpop.f32.mrf.mxu0 }
 0x2f1   : > { %v4220_v37 = vpop.f32.mrf.mxu1  ;;  %12380 = vst [vmem:[#allocation44_spill] sm:$0xff] %v10507_v6 }
 0x2f2   : > { %v10480_v60 = vadd.f32 %v10276_v3, %v4380_v35  ;;  %v4379_v16 = vadd.f32 %v4220_v37, %v10269_v28 }
 0x2f3   : > { %v7916_v53 = vpop.f32.mrf.mxu1 }
 0x2f4   : > { %12372 = vst [vmem:[#allocation33_spill] sm:$0xff] %v10480_v60  ;;  %v10484_v33 = vadd.f32 %v10285_v5, %v4379_v16  ;;  %v4382_v18 = vadd.f32 %v7916_v53, %v10274_v55 }
 0x2f5   : > { %v4230_v62 = vpop.f32.mrf.mxu1 }
 0x2f6   : > { %12373 = vst [vmem:[#allocation61_spill] sm:$0xff] %v10484_v33  ;;  %v10490_v15 = vadd.f32 %v10297_v61, %v4382_v18  ;;  %v4381_v25 = vadd.f32 %v4230_v62, %v10283_v51 }
 0x2f7   : > { %v7919_v38 = vpop.f32.mrf.mxu1 }
 0x2f8   : > { %12375 = vst [vmem:[#allocation62_spill] sm:$0xff] %v10490_v15  ;;  %v10494_v3 = vadd.f32 %v10309_v23, %v4381_v25  ;;  %v4384_v28 = vadd.f32 %v7919_v38, %v10288_v1 }
 0x2f9   : > { %v4240_v5 = vpop.f32.mrf.mxu1 }
 0x2fa   : > { %12376 = vst [vmem:[#allocation35_spill] sm:$0xff] %v10494_v3  ;;  %v10500_v41 = vadd.f32 %v10323_v13, %v4384_v28  ;;  %v4383_v55 = vadd.f32 %v4240_v5, %v10295_v49  ;;  %v10518_v49 = vpop.f32.mrf.mxu0 }
 0x2fb   : > { %v7922_v21 = vpop.f32.mrf.mxu1  ;;  %12383 = vst [vmem:[#allocation45_spill] sm:$0xff] %v10518_v49 }
 0x2fc   : > { %12378 = vst [vmem:[#allocation39_spill] sm:$0xff] %v10500_v41  ;;  %v10504_v61 = vadd.f32 %v10338_v2, %v4383_v55  ;;  %v4386_v51 = vadd.f32 %v7922_v21, %v10300_v26  ;;  %v10522_v53 = vpop.f32.mrf.mxu0 }
 0x2fd   : > { %v4250_v23 = vpop.f32.mrf.mxu1  ;;  %12384 = vst [vmem:[#allocation42_spill] sm:$0xff] %v10522_v53 }
 0x2fe   : > { %12379 = vst [vmem:[#allocation63_spill] sm:$0xff] %v10504_v61  ;;  %v10510_v35 = vadd.f32 %v10352_v56, %v4386_v51  ;;  %v4385_v1 = vadd.f32 %v4250_v23, %v10307_v4  ;;  %v10524_v62 = vpop.f32.mrf.mxu0 }
 0x2ff   : > { %v10513_v37 = vpop.f32.mrf.mxu1  ;;  %12385 = vst [vmem:[#allocation46_spill] sm:$0xff] %v10524_v62 }
 0x300   : > { %12381 = vst [vmem:[#allocation64_spill] sm:$0xff] %v10510_v35  ;;  %v10516_v13 = vadd.f32 %v10371_v46, %v4385_v1  ;;  %v10526_v38 = vpop.f32.mrf.mxu0 }
 0x301   : > { %v10520_v16 = vpop.f32.mrf.mxu1 }
 0x302   : > { %12382 = vst [vmem:[#allocation37_spill] sm:$0xff] %v10516_v13  ;;  %v10530_v46 = vpop.f32.mrf.mxu0 }
 0x303   : > { %v7928_v2 = vpop.f32.mrf.mxu1 }
 0x304   : > { %v10536_v21 = vpop.f32.mrf.mxu0 }
 0x305   : > { %v4270_v26 = vpop.f32.mrf.mxu1 }
 0x306   : > { %v10542_v1 = vpop.f32.mrf.mxu0 }
 0x307   : > { %v7931_v18 = vpop.f32.mrf.mxu1 }
 0x308   : > { %v8008_v60 = vpop.f32.mrf.mxu0  ;;  %v4392_v35 = vadd.f32 %v7931_v18, %v10341_v19 }
 0x309   : > { %v4280_v56 = vpop.f32.mrf.mxu1 }
 0x30a   : > { %v4771_v15 = vpop.f32.mrf.mxu0 }
 0x30b   : > { %v7934_v25 = vpop.f32.mrf.mxu1 }
 0x30c   : > { %v8011_v49 = vpop.f32.mrf.mxu0  ;;  %v4394_v41 = vadd.f32 %v7934_v25, %v10355_v36 }
 0x30d   : > { %v4290_v4 = vpop.f32.mrf.mxu1 }
 0x30e   : > { %v4781_v10 = vpop.f32.mrf.mxu0  ;;  %v4393_v13 = vadd.f32 %v4290_v4, %v10365_v0  ;;  %v4815_v53 = vadd.f32 %v10474_v57, %v4394_v41  ;;  %v12390_v41 = vld [vmem:[#allocation56_spill] sm:$0xff] }
 0x30f   : > { %v10528_v28 = vpop.f32.mrf.mxu1 }
 0x310   : > { %12386 = vst [vmem:[#allocation65_spill] sm:$0xff] %v10528_v28  ;;  %v3599_v28 = vadd.f32 %v3560_v50, %v10255_v7  ;;  %v8014_v39 = vpop.f32.mrf.mxu0  ;;  %v4391_v7 = vadd.f32 %v4280_v56, %v10347_v52  ;;  %v4814_v0 = vadd.f32 %v10477_v45, %v4393_v13 }
 0x311   : > { %v10532_v5 = vpop.f32.mrf.mxu1 }
 0x312   : > { %12387 = vst [vmem:[#allocation66_spill] sm:$0xff] %v10532_v5  ;;  %v4020_v20 = vadd.f32 %v10271_v27, %v3599_v28  ;;  %v4854_v27 = vadd.f32 %v10565_v34, %v4815_v53  ;;  %v4791_v52 = vpop.f32.mrf.mxu0 }
 0x313   : > { %v10534_v55 = vpop.f32.mrf.mxu1 }
 0x314   : > { %12388 = vst [vmem:[#allocation40_spill] sm:$0xff] %v10534_v55  ;;  %v10585_v25 = vmax.f32 %v4854_v27, 0.0 }
 0x315   : > { %v10538_v51 = vpop.f32.mrf.mxu1 }
 0x316   : > { %12389 = vst [vmem:[#allocation47_spill] sm:$0xff] %v10538_v51 }
 0x317   : > { %v10540_v23 = vpop.f32.mrf.mxu1 }
 0x319   : > { %v10544_v54 = vpop.f32.mrf.mxu1 }
 0x31b   : > { %v10546_v33 = vpop.f32.mrf.mxu1 }
 0x31d   : > { %v10548_v3 = vpop.f32.mrf.mxu1 }
 0x31f   : > { %v7949_v42 = vpop.f32.mrf.mxu1 }
 0x321   : > { %v4340_v32 = vpop.f32.mrf.mxu1 }
 0x323   : > { %v7952_v61 = vpop.f32.mrf.mxu1 }
 0x324   : > { %v4406_v19 = vadd.f32 %v7952_v61, %v10459_v43  ;;  %v4812_v43 = vadd.f32 %v10465_v58, %v4391_v7  ;;  %v4404_v61 = vadd.f32 %v7949_v42, %v10449_v44  ;;  %v4403_v58 = vadd.f32 %v4340_v32, %v10454_v24  ;;  %v12393_v42 = vld [vmem:[#allocation28_spill] sm:$0xff] }
 0x325   : > { %v4350_v5 = vpop.f32.mrf.mxu1  ;;  %v4402_v24 = vadd.f32 %v10546_v33, %v10438_v22  ;;  %v4401_v22 = vadd.f32 %v10548_v3, %v10444_v63  ;;  %v4400_v63 = vadd.f32 %v10540_v23, %v10418_v59  ;;  %v4399_v59 = vadd.f32 %v10544_v54, %v10432_v48  ;;  %v12395_v54 = vld [vmem:[#allocation40_spill] sm:$0xff] }
 0x326   : > { %v4405_v45 = vadd.f32 %v4350_v5, %v10463_v11  ;;  %v12392_v11 = vld [vmem:[#allocation55_spill] sm:$0xff]  ;;  %v4851_v28 = vadd.f32 %v10565_v34, %v4812_v43  ;;  %v4825_v32 = vadd.f32 %v10536_v21, %v4404_v61  ;;  %v4824_v33 = vadd.f32 %v10542_v1, %v4403_v58 }
 0x327   : > { %v7955_v6 = vpop.f32.mrf.mxu1  ;;  %v4823_v3 = vadd.f32 %v10526_v38, %v4402_v24  ;;  %v4822_v38 = vadd.f32 %v10530_v46, %v4401_v22  ;;  %v12396_v46 = vld [vmem:[#allocation42_spill] sm:$0xff] }
 0x328   : > { %v4408_v51 = vadd.f32 %v7955_v6, %v10469_v47  ;;  %v4826_v4 = vadd.f32 %v4771_v15, %v4405_v45  ;;  %v4864_v1 = vadd.f32 %v10565_v34, %v4825_v32  ;;  %v4863_v23 = vadd.f32 %v10565_v34, %v4824_v33  ;;  %v12398_v45 = vld [vmem:[#allocation34_spill] sm:$0xff]  ;;  %v12410_v33 = vld [vmem:[#allocation63_spill] sm:$0xff] }
 0x329   : > { %v4360_v62 = vpop.f32.mrf.mxu1  ;;  %v12408_v24 = vld [vmem:[#allocation66_spill] sm:$0xff] }
 0x32a   : > { %v4407_v14 = vadd.f32 %v4360_v62, %v10472_v17  ;;  %v4829_v31 = vadd.f32 %v8011_v49, %v4408_v51  ;;  %v4390_v17 = vadd.f32 %v7928_v2, %v12390_v41  ;;  %v12391_v62 = vld [vmem:[#allocation29_spill] sm:$0xff]  ;;  %v4827_v49 = vadd.f32 %v8008_v60, %v4406_v19 }
 0x32b   : > { %v7958_v55 = vpop.f32.mrf.mxu1  ;;  %v4389_v56 = vadd.f32 %v4270_v26, %v12391_v62  ;;  %v4865_v21 = vadd.f32 %v10565_v34, %v4826_v4  ;;  %v4862_v41 = vadd.f32 %v10565_v34, %v4823_v3  ;;  %v10673_v43 = vmax.f32 %v4863_v23, 0.0  ;;  %v12405_v4 = vld [vmem:[#allocation39_spill] sm:$0xff] }
 0x32c   : > { %v4410_v36 = vadd.f32 %v7958_v55, %v4021_v29  ;;  %v4813_v29 = vadd.f32 %v10456_v8, %v4392_v35  ;;  %v4828_v6 = vadd.f32 %v4781_v10, %v4407_v14  ;;  %v4868_v8 = vadd.f32 %v10565_v34, %v4829_v31 }
 0x32d   : > { %v4370_v50 = vpop.f32.mrf.mxu1  ;;  %v4388_v10 = vadd.f32 %v10513_v37, %v12392_v11  ;;  %v4811_v53 = vadd.f32 %v10434_v30, %v4390_v17  ;;  %v4387_v37 = vadd.f32 %v10520_v16, %v12393_v42  ;;  %v4810_v30 = vadd.f32 %v10446_v12, %v4389_v56 }
 0x32e   : > { %v4831_v47 = vadd.f32 %v8014_v39, %v4410_v36  ;;  %v4409_v57 = vadd.f32 %v4370_v50, %v4020_v20  ;;  %v4853_v39 = vadd.f32 %v10565_v34, %v4814_v0  ;;  %v4852_v26 = vadd.f32 %v10565_v34, %v4813_v29  ;;  %v12397_v29 = vld [vmem:[#allocation64_spill] sm:$0xff] }
 0x32f   : > { %v4867_v44 = vadd.f32 %v10565_v34, %v4828_v6  ;;  %v4866_v15 = vadd.f32 %v10565_v34, %v4827_v49  ;;  %v10605_v55 = vmax.f32 %v4868_v8, 0.0  ;;  %v4809_v12 = vadd.f32 %v10388_v9, %v4388_v10  ;;  %v12399_v6 = vld [vmem:[#allocation47_spill] sm:$0xff]  ;;  %v12402_v8 = vld [vmem:[#allocation30_spill] sm:$0xff]  ;;  %v12404_v10 = vld [vmem:[#allocation44_spill] sm:$0xff] }
 0x330   : > { %v4870_v13 = vadd.f32 %v10565_v34, %v4831_v47  ;;  %v4830_v18 = vadd.f32 %v4791_v52, %v4409_v57  ;;  %v10597_v5 = vmax.f32 %v4853_v39, 0.0  ;;  %v4850_v16 = vadd.f32 %v10565_v34, %v4811_v53  ;;  %v12394_v47 = vld [vmem:[#allocation32_spill] sm:$0xff]  ;;  %v12401_v39 = vld [vmem:[#allocation37_spill] sm:$0xff] }
 0x331   : > { %v10611_v51 = vmax.f32 %v4852_v26, 0.0  ;;  %v10619_v14 = vmax.f32 %v4867_v44, 0.0  ;;  %v4808_v9 = vadd.f32 %v10410_v40, %v4387_v37  ;;  %v4849_v36 = vadd.f32 %v10565_v34, %v4810_v30  ;;  %v12406_v37 = vld [vmem:[#allocation16_spill] sm:$0xff] }
 0x332   : > { %v10578_v35 = vmax.f32 %v4870_v13, 0.0  ;;  %v4869_v2 = vadd.f32 %v10565_v34, %v4830_v18  ;;  %v10625_v20 = vmax.f32 %v4851_v28, 0.0  ;;  %v10633_v7 = vmax.f32 %v4866_v15, 0.0  ;;  %v12400_v18 = vld [vmem:[#allocation46_spill] sm:$0xff]  ;;  %v12407_v28 = vld [vmem:[#allocation31_spill] sm:$0xff]  ;;  %v12409_v15 = vld [vmem:[#allocation45_spill] sm:$0xff] }
 0x333   : > { %v4848_v40 = vadd.f32 %v10565_v34, %v4809_v12  ;;  %v10638_v0 = vmax.f32 %v4850_v16, 0.0  ;;  %v10646_v50 = vmax.f32 %v4865_v21, 0.0  ;;  %v4847_v19 = vadd.f32 %v10565_v34, %v4808_v9 }
 0x334   : > { %v10589_v60 = vmax.f32 %v4869_v2, 0.0  ;;  %7128 = vmatprep.subr.mxu1 %v10578_v35  ;;  %7184 = vmatprep.subr.mxu0 %v10578_v35  ;;  %v10651_v31 = vmax.f32 %v4849_v36, 0.0  ;;  %v4398_v48 = vadd.f32 %v12395_v54, %v12394_v47  ;;  %v4821_v57 = vadd.f32 %v12396_v46, %v4400_v63  ;;  %v12403_v2 = vld [vmem:[#allocation65_spill] sm:$0xff]  ;;  %v12411_v36 = vld [vmem:[#allocation38_spill] sm:$0xff] }
 0x335   : > { %7129 = vmatpush3.msra.mxu1 %v10585_v25  ;;  %7185 = vmatpush3.msra.mxu0 %v10585_v25  ;;  %v10659_v17 = vmax.f32 %v4864_v1, 0.0  ;;  %v4846_v27 = vadd.f32 %v10565_v34, %v12397_v29  ;;  %v10665_v52 = vmax.f32 %v4848_v40, 0.0  ;;  %v4397_v13 = vadd.f32 %v12399_v6, %v12398_v45  ;;  %v12412_v40 = vld [vmem:[#allocation62_spill] sm:$0xff] }
 0x336   : > { %7130 = vmatprep.subr.mxu1 %v10589_v60  ;;  %7186 = vmatprep.subr.mxu0 %v10589_v60  ;;  %v4820_v62 = vadd.f32 %v12400_v18, %v4399_v59  ;;  %v4861_v56 = vadd.f32 %v10565_v34, %v4822_v38  ;;  %v4845_v61 = vadd.f32 %v10565_v34, %v12401_v39  ;;  %v10679_v49 = vmax.f32 %v4847_v19, 0.0  ;;  %v12413_v19 = vld [vmem:[#allocation41_spill] sm:$0xff]  ;;  %v12415_v6 = vld [vmem:[#allocation18_spill] sm:$0xff] }
 0x337   : > { %7131 = vmatpush3.msra.mxu1 %v10597_v5  ;;  %7187 = vmatpush3.msra.mxu0 %v10597_v5  ;;  %v4396_v11 = vadd.f32 %v12403_v2, %v12402_v8  ;;  %v4819_v53 = vadd.f32 %v12404_v10, %v4398_v48  ;;  %v4860_v26 = vadd.f32 %v10565_v34, %v4821_v57  ;;  %v10687_v58 = vmax.f32 %v4862_v41, 0.0  ;;  %v12414_v57 = vld [vmem:[#allocation35_spill] sm:$0xff]  ;;  %v12416_v18 = vld [vmem:[#allocation33_spill] sm:$0xff] }
 0x338   : > { %7132 = vmatprep.subr.mxu1 %v10605_v55  ;;  %7188 = vmatprep.subr.mxu0 %v10605_v55  ;;  %v4844_v44 = vadd.f32 %v10565_v34, %v12405_v4  ;;  %v10693_v42 = vmax.f32 %v4846_v27, 0.0  ;;  %v4907_v30 = vshra.s32 %v12406_v37, 3  ;;  %v4395_v32 = vadd.f32 %v12408_v24, %v12407_v28  ;;  %v12418_v28 = vld [vmem:[#allocation17_spill] sm:$0xff] }
 0x339   : > { %7133 = vmatpush3.msra.mxu1 %v10611_v51  ;;  %7189 = vmatpush3.msra.mxu0 %v10611_v51  ;;  %v4818_v12 = vadd.f32 %v12409_v15, %v4397_v13  ;;  %v4859_v16 = vadd.f32 %v10565_v34, %v4820_v62  ;;  %v10702_v22 = vmax.f32 %v4861_v56, 0.0  ;;  %v4843_v21 = vadd.f32 %v10565_v34, %v12410_v33  ;;  %v12419_v15 = vld [vmem:[#allocation59_spill] sm:$0xff] }
 0x33a   : > { %7134 = vmatprep.subr.mxu1 %v10619_v14  ;;  %7190 = vmatprep.subr.mxu0 %v10619_v14  ;;  %v10708_v9 = vmax.f32 %v4845_v61, 0.0  ;;  %v4817_v63 = vadd.f32 %v12411_v36, %v4396_v11  ;;  %v4858_v3 = vadd.f32 %v10565_v34, %v4819_v53  ;;  %v10714_v1 = vmax.f32 %v4860_v26, 0.0  ;;  %v12417_v11 = vld [vmem:[#allocation61_spill] sm:$0xff] }
 0x33b   : > { %7135 = vmatpush3.msra.mxu1 %v10625_v20  ;;  %7191 = vmatpush3.msra.mxu0 %v10625_v20  ;;  %v4842_v59 = vadd.f32 %v10565_v34, %v12412_v40  ;;  %v10720_v38 = vmax.f32 %v4844_v44, 0.0  ;;  %v4915_v23 = vand.u32 7, %v12406_v37  ;;  %v4816_v47 = vadd.f32 %v12413_v19, %v4395_v32  ;;  %v12424_v19 = vld [vmem:[#allocation21_spill] sm:$0xff] }
 0x33c   : > { %7136 = vmatprep.subr.mxu1 %v10633_v7  ;;  %7192 = vmatprep.subr.mxu0 %v10633_v7  ;;  %v4857_v54 = vadd.f32 %v10565_v34, %v4818_v12  ;;  %v10727_v48 = vmax.f32 %v4859_v16, 0.0  ;;  %v4923_v46 = vmul.u32 2, %v4907_v30  ;;  %v4841_v41 = vadd.f32 %v10565_v34, %v12414_v57  ;;  %v12420_v12 = vld [vmem:[#allocation57_spill] sm:$0xff]  ;;  %v12421_v16 = vld [vmem:[#allocation60_spill] sm:$0xff] }
 0x33d   : > { %7137 = vmatpush3.msra.mxu1 %v10638_v0  ;;  %7193 = vmatpush3.msra.mxu0 %v10638_v0  ;;  %v10733_v29 = vmax.f32 %v4843_v21, 0.0  ;;  %v4856_v27 = vadd.f32 %v10565_v34, %v4817_v63  ;;  %v10738_v45 = vmax.f32 %v4858_v3, 0.0  ;;  %v4908_v13 = vshra.s32 %v12415_v6, 3 }
 0x33e   : > { %7138 = vmatprep.subr.mxu1 %v10646_v50  ;;  %7194 = vmatprep.subr.mxu0 %v10646_v50  ;;  %v4840_v62 = vadd.f32 %v10565_v34, %v12416_v18  ;;  %v10745_v56 = vmax.f32 %v4842_v59, 0.0  ;;  %v4855_v39 = vadd.f32 %v10565_v34, %v4816_v47  ;;  %v10750_v61 = vmax.f32 %v4857_v54, 0.0  ;;  %v12423_v59 = vld [vmem:[#allocation58_spill] sm:$0xff] }
 0x33f   : > { %7139 = vmatpush3.msra.mxu1 %v10651_v31  ;;  %7195 = vmatpush3.msra.mxu0 %v10651_v31  ;;  %v4931_v8 = vmul.u32 16, %v4923_v46  ;;  %v4939_v2 = vmul.u32 2, %v4915_v23  ;;  %v4839_v10 = vadd.f32 %v10565_v34, %v12417_v11  ;;  %v10756_v53 = vmax.f32 %v4841_v41, 0.0 }
 0x340   : > { %7140 = vmatprep.subr.mxu1 %v10659_v17  ;;  %7196 = vmatprep.subr.mxu0 %v10659_v17  ;;  %v10760_v26 = vmax.f32 %v4856_v27, 0.0  ;;  %v4916_v4 = vand.u32 7, %v12415_v6  ;;  %v4924_v44 = vmul.u32 2, %v4908_v13  ;;  %v10765_v37 = vmax.f32 %v4840_v62, 0.0 }
 0x341   : > { %7141 = vmatpush3.msra.mxu1 %v10665_v52  ;;  %7197 = vmatpush3.msra.mxu0 %v10665_v52  ;;  %v10769_v34 = vmax.f32 %v4855_v39, 0.0  ;;  %v10773_v30 = vadd.s32 %v4939_v2, %v4931_v8  ;;  %v4909_v24 = vshra.s32 %v12418_v28, 3  ;;  %v10776_v32 = vmax.f32 %v4839_v10, 0.0 }
 0x342   : > { %7142 = vmatprep.subr.mxu1 %v10673_v43  ;;  %7198 = vmatprep.subr.mxu0 %v10673_v43  ;;  %vm4954_vm6 = vcmp.eq.s32.totalorder %v12420_v12, %v12419_v15  ;;  %vm5099_vm7 = vcmp.eq.s32.totalorder %v12420_v12, %v12421_v16  ;;  %v4932_v33 = vmul.u32 16, %v4924_v44  ;;  %v4940_v21 = vmul.u32 2, %v4916_v4  ;;  %v5715_v16 = vld [vmem:[%s11863_s9 + $0x18] sm:$0xff] }
 0x343   : > { %7143 = vmatpush3.msra.mxu1 %v10679_v49  ;;  %7199 = vmatpush3.msra.mxu0 %v10679_v49  ;;  %v12422_v36 = vmov 1.0   ;;  %v10794_v63 = vadd.s32 1, %v10773_v30  ;;  %v4917_v3 = vand.u32 7, %v12418_v28  ;;  %v4925_v40 = vmul.u32 2, %v4909_v24 }
 0x344   : > { %7144 = vmatprep.subr.mxu1 %v10687_v58  ;;  %7200 = vmatprep.subr.mxu0 %v10687_v58  ;;  %vm4957_vm8 = vcmp.eq.s32.totalorder %v12423_v59, %v10773_v30  ;;  %vm4956_vm9 = vcmp.eq.s32.totalorder %v12420_v12, %v10773_v30  ;;  %v10808_v23 = vadd.s32 %v4940_v21, %v4932_v33  ;;  %v4910_v47 = vshra.s32 %v12424_v19, 3 }
 0x345   : > { %7145 = vmatpush3.msra.mxu1 %v10693_v42  ;;  %7201 = vmatpush3.msra.mxu0 %v10693_v42  ;;  %vm5102_vm10 = vcmp.eq.s32.totalorder %v12423_v59, %v10794_v63  ;;  %vm5101_vm11 = vcmp.eq.s32.totalorder %v12420_v12, %v10794_v63  ;;  %v4918_v54 = vand.u32 7, %v12424_v19  ;;  %v5551_v19 = vld [vmem:[%s11859_s5 + $0x8] sm:$0xff] }
 0x346   : > { %7146 = vmatprep.subr.mxu1 %v10702_v22  ;;  %7202 = vmatprep.subr.mxu0 %v10702_v22  ;;  %v4926_v46 = vmul.u32 2, %v4910_v47  ;;  %vm12006_vm12 = vcmp.eq.s32.totalorder %v12423_v59, %v10808_v23  ;;  %vm12002_vm13 = vcmp.eq.s32.totalorder %v12420_v12, %v10808_v23  ;;  %v8164_v47 = vld [vmem:[%s8527_s25 + $0xf8] sm:$0xff] }
 0x347   : > { %7147 = vmatpush3.msra.mxu1 %v10708_v9  ;;  %7203 = vmatpush3.msra.mxu0 %v10708_v9  ;;  %v4942_v41 = vmul.u32 2, %v4918_v54 }
 0x348   : > { %7148 = vmatprep.subr.mxu1 %v10714_v1  ;;  %7204 = vmatprep.subr.mxu0 %v10714_v1 }
 0x349   : > { %7149 = vmatpush3.msra.mxu1 %v10720_v38  ;;  %7205 = vmatpush3.msra.mxu0 %v10720_v38 }
 0x34a   : > { %7150 = vmatprep.subr.mxu1 %v10727_v48  ;;  %7206 = vmatprep.subr.mxu0 %v10727_v48 }
 0x34b   : > { %7151 = vmatpush3.msra.mxu1 %v10733_v29  ;;  %7207 = vmatpush3.msra.mxu0 %v10733_v29 }
 0x34c   : > { %7152 = vmatprep.subr.mxu1 %v10738_v45  ;;  %7208 = vmatprep.subr.mxu0 %v10738_v45 }
 0x34d   : > { %7153 = vmatpush3.msra.mxu1 %v10745_v56  ;;  %7209 = vmatpush3.msra.mxu0 %v10745_v56 }
 0x34e   : > { %7154 = vmatprep.subr.mxu1 %v10750_v61  ;;  %7210 = vmatprep.subr.mxu0 %v10750_v61 }
 0x34f   : > { %7155 = vmatpush3.msra.mxu1 %v10756_v53  ;;  %7211 = vmatpush3.msra.mxu0 %v10756_v53 }
 0x350   : > { %7156 = vmatprep.subr.mxu1 %v10760_v26  ;;  %7212 = vmatprep.subr.mxu0 %v10760_v26 }
 0x351   : > { %7157 = vmatpush3.msra.mxu1 %v10765_v37  ;;  %7213 = vmatpush3.msra.mxu0 %v10765_v37 }
 0x352   : > { %7158 = vmatprep.subr.mxu1 %v10769_v34  ;;  %7214 = vmatprep.subr.mxu0 %v10769_v34 }
 0x353   : > { %7159 = vmatpush3.msra.mxu1 %v10776_v32  ;;  %7215 = vmatpush3.msra.mxu0 %v10776_v32 }
 0x354   : > { %6657 = vmatmul.mubr.msk.f32.vlgmr.msra.gmra.mxu1 %vm4954_vm6, %v12422_v36  ;;  %7240 = vmatprep.subr.mxu1 %v10578_v35 }
 0x355   : > { %7296 = vmatprep.subr.mxu0 %v10578_v35  ;;  %6673 = vmatmul.mubr.msk.f32.vlgmr.msra.gmra.mxu0 %vm5099_vm7, %v12422_v36  ;;  %v4933_v35 = vmul.u32 16, %v4925_v40  ;;  %v5552_v40 = vld [vmem:[%s11859_s5 + $0x10] sm:$0xff] }
 0x356   : > { %7241 = vmatpush3.msra.mxu1 %v10585_v25  ;;  %7297 = vmatpush3.msra.mxu0 %v10585_v25  ;;  %v4941_v25 = vmul.u32 2, %v4917_v3  ;;  %v5553_v3 = vld [vmem:[%s11859_s5 + $0x18] sm:$0xff] }
 0x357   : > { %7242 = vmatprep.subr.mxu1 %v10589_v60  ;;  %7298 = vmatprep.subr.mxu0 %v10589_v60  ;;  %v10830_v60 = vadd.s32 1, %v10808_v23 }
 0x358   : > { %6658 = vmatprep.mubr.msk.f32.mxu1 %vm4957_vm8, %v12422_v36  ;;  %7243 = vmatpush3.msra.mxu1 %v10597_v5 }
 0x359   : > { %7299 = vmatpush3.msra.mxu0 %v10597_v5  ;;  %6659 = vmatmul.mubr.msk.f32.gmra.mxu1 %vm4956_vm9, %v12422_v36  ;;  %v10844_v5 = vadd.s32 %v4941_v25, %v4933_v35  ;;  %vm5104_vm14 = vcmp.eq.s32.totalorder %v12423_v59, %v10830_v60  ;;  %vm12003_vm15 = vcmp.eq.s32.totalorder %v12420_v12, %v10830_v60 }
 0x35a   : > { %7244 = vmatprep.subr.mxu1 %v10605_v55  ;;  %7300 = vmatprep.subr.mxu0 %v10605_v55  ;;  %v12425_v55 = vld [vmem:[#allocation20_spill] sm:$0xff] }
 0x35b   : > { %6674 = vmatprep.mubr.msk.f32.mxu0 %vm5102_vm10, %v12422_v36  ;;  %7245 = vmatpush3.msra.mxu1 %v10611_v51  ;;  %v4911_v57 = vshra.s32 %v12425_v55, 3  ;;  %v4919_v27 = vand.u32 7, %v12425_v55  ;;  %vm11984_vm0 = vcmp.eq.s32.totalorder %v12423_v59, %v10844_v5  ;;  %vm11983_vm2 = vcmp.eq.s32.totalorder %v12420_v12, %v10844_v5 }
 0x35c   : > { %7301 = vmatpush3.msra.mxu0 %v10611_v51  ;;  %7246 = vmatprep.subr.mxu1 %v10619_v14  ;;  %v4934_v51 = vmul.u32 16, %v4926_v46 }
 0x35d   : > { %6675 = vmatmul.mubr.msk.f32.gmra.mxu0 %vm5101_vm11, %v12422_v36  ;;  %7302 = vmatprep.subr.mxu0 %v10619_v14  ;;  %v10869_v14 = vadd.s32 1, %v10844_v5  ;;  %v4927_v6 = vmul.u32 2, %v4911_v57  ;;  %v4943_v18 = vmul.u32 2, %v4919_v27 }
 0x35e   : > { %6660 = vmatprep.mubr.msk.f32.mxu1 %vm12006_vm12, %v12422_v36  ;;  %7247 = vmatpush3.msra.mxu1 %v10625_v20 }
 0x35f   : > { %7303 = vmatpush3.msra.mxu0 %v10625_v20  ;;  %6661 = vmatmul.mubr.msk.f32.gmra.mxu1 %vm12002_vm13, %v12422_v36  ;;  %v10883_v20 = vadd.s32 %v4942_v41, %v4934_v51  ;;  %vm11985_vm3 = vcmp.eq.s32.totalorder %v12423_v59, %v10869_v14  ;;  %vm11988_vm4 = vcmp.eq.s32.totalorder %v12420_v12, %v10869_v14 }
 0x360   : > { %7248 = vmatprep.subr.mxu1 %v10633_v7  ;;  %7304 = vmatprep.subr.mxu0 %v10633_v7  ;;  %v12427_v7 = vld [vmem:[#allocation24_spill] sm:$0xff] }
 0x361   : > { %6676 = vmatprep.mubr.msk.f32.mxu0 %vm5104_vm14, %v12422_v36  ;;  %7249 = vmatpush3.msra.mxu1 %v10638_v0  ;;  %12426 = vst [vmem:[#allocation19_spill] sm:$0xff] %v10883_v20  ;;  %v4912_v13 = vshra.s32 %v12427_v7, 3  ;;  %v4920_v62 = vand.u32 7, %v12427_v7  ;;  %v11144_v44 = vadd.s32 16, %v10883_v20 }
 0x362   : > { %7305 = vmatpush3.msra.mxu0 %v10638_v0  ;;  %7250 = vmatprep.subr.mxu1 %v10646_v50  ;;  %v4935_v0 = vmul.u32 16, %v4927_v6 }
 0x363   : > { %6677 = vmatmul.mubr.msk.f32.gmra.mxu0 %vm12003_vm15, %v12422_v36  ;;  %7306 = vmatprep.subr.mxu0 %v10646_v50  ;;  %v10908_v50 = vadd.s32 1, %v10883_v20  ;;  %v4928_v39 = vmul.u32 2, %v4912_v13  ;;  %v4944_v2 = vmul.u32 2, %v4920_v62  ;;  %12444 = vst [vmem:[#allocation27_spill] sm:$0xff] %v11144_v44 }
 0x364   : > { %6662 = vmatprep.mubr.msk.f32.mxu1 %vm11984_vm0, %v12422_v36  ;;  %7251 = vmatpush3.msra.mxu1 %v10651_v31  ;;  %vm11987_vm0 = vcmp.eq.s32.totalorder %v12420_v12, %v10883_v20 }
 0x365   : > { %7307 = vmatpush3.msra.mxu0 %v10651_v31  ;;  %6663 = vmatmul.mubr.msk.f32.gmra.mxu1 %vm11983_vm2, %v12422_v36  ;;  %12428 = vst [vmem:[#allocation48_spill] sm:$0xff] %v10908_v50  ;;  %vm11986_vm2 = vcmp.eq.s32.totalorder %v12423_v59, %v10883_v20  ;;  %v10922_v31 = vadd.s32 %v4943_v18, %v4935_v0 }
 0x366   : > { %7252 = vmatprep.subr.mxu1 %v10659_v17  ;;  %7308 = vmatprep.subr.mxu0 %v10659_v17  ;;  %v12430_v17 = vld [vmem:[#allocation22_spill] sm:$0xff] }
 0x367   : > { %6678 = vmatprep.mubr.msk.f32.mxu0 %vm11985_vm3, %v12422_v36  ;;  %7253 = vmatpush3.msra.mxu1 %v10665_v52  ;;  %12429 = vst [vmem:[#allocation67_spill] sm:$0xff] %v10922_v31  ;;  %v4913_v8 = vshra.s32 %v12430_v17, 3  ;;  %vm11989_vm3 = vcmp.eq.s32.totalorder %v12423_v59, %v10908_v50  ;;  %v4921_v11 = vand.u32 7, %v12430_v17 }
 0x368   : > { %7309 = vmatpush3.msra.mxu0 %v10665_v52  ;;  %7254 = vmatprep.subr.mxu1 %v10673_v43  ;;  %v4936_v52 = vmul.u32 16, %v4928_v39 }
 0x369   : > { %6679 = vmatmul.mubr.msk.f32.gmra.mxu0 %vm11988_vm4, %v12422_v36  ;;  %7310 = vmatprep.subr.mxu0 %v10673_v43  ;;  %v10947_v43 = vadd.s32 1, %v10922_v31  ;;  %v4929_v10 = vmul.u32 2, %v4913_v8  ;;  %vm11991_vm4 = vcmp.eq.s32.totalorder %v12420_v12, %v10922_v31 }
 0x36a   : > { %6664 = vmatprep.mubr.msk.f32.mxu1 %vm11986_vm2, %v12422_v36  ;;  %7255 = vmatpush3.msra.mxu1 %v10679_v49  ;;  %vm11992_vm2 = vcmp.eq.s32.totalorder %v12420_v12, %v10908_v50 }
 0x36b   : > { %7311 = vmatpush3.msra.mxu0 %v10679_v49  ;;  %6665 = vmatmul.mubr.msk.f32.gmra.mxu1 %vm11987_vm0, %v12422_v36  ;;  %12431 = vst [vmem:[#allocation68_spill] sm:$0xff] %v10947_v43  ;;  %vm11990_vm0 = vcmp.eq.s32.totalorder %v12423_v59, %v10922_v31  ;;  %v10961_v49 = vadd.s32 %v4944_v2, %v4936_v52 }
 0x36c   : > { %7256 = vmatprep.subr.mxu1 %v10687_v58  ;;  %7312 = vmatprep.subr.mxu0 %v10687_v58  ;;  %v4937_v58 = vmul.u32 16, %v4929_v10 }
 0x36d   : > { %6680 = vmatprep.mubr.msk.f32.mxu0 %vm11989_vm3, %v12422_v36  ;;  %7257 = vmatpush3.msra.mxu1 %v10693_v42  ;;  %12432 = vst [vmem:[#allocation25_spill] sm:$0xff] %v10961_v49  ;;  %vm11993_vm3 = vcmp.eq.s32.totalorder %v12423_v59, %v10947_v43  ;;  %v11204_v24 = vadd.s32 16, %v10961_v49 }
 0x36e   : > { %7313 = vmatpush3.msra.mxu0 %v10693_v42  ;;  %7258 = vmatprep.subr.mxu1 %v10702_v22  ;;  %v4945_v42 = vmul.u32 2, %v4921_v11 }
 0x36f   : > { %6681 = vmatmul.mubr.msk.f32.gmra.mxu0 %vm11992_vm2, %v12422_v36  ;;  %7314 = vmatprep.subr.mxu0 %v10702_v22  ;;  %v10985_v22 = vadd.s32 1, %v10961_v49  ;;  %vm11995_vm2 = vcmp.eq.s32.totalorder %v12420_v12, %v10961_v49  ;;  %12448 = vst [vmem:[#allocation74_spill] sm:$0xff] %v11204_v24 }
 0x370   : > { %6666 = vmatprep.mubr.msk.f32.mxu1 %vm11990_vm0, %v12422_v36  ;;  %7259 = vmatpush3.msra.mxu1 %v10708_v9  ;;  %vm11994_vm0 = vcmp.eq.s32.totalorder %v12420_v12, %v10947_v43 }
 0x371   : > { %7315 = vmatpush3.msra.mxu0 %v10708_v9  ;;  %6667 = vmatmul.mubr.msk.f32.gmra.mxu1 %vm11991_vm4, %v12422_v36  ;;  %12433 = vst [vmem:[#allocation43_spill] sm:$0xff] %v10985_v22  ;;  %vm11996_vm4 = vcmp.eq.s32.totalorder %v12423_v59, %v10961_v49  ;;  %v10998_v9 = vadd.s32 %v4945_v42, %v4937_v58 }
 0x372   : > { %7260 = vmatprep.subr.mxu1 %v10714_v1  ;;  %7316 = vmatprep.subr.mxu0 %v10714_v1 }
 0x373   : > { %6682 = vmatprep.mubr.msk.f32.mxu0 %vm11993_vm3, %v12422_v36  ;;  %7261 = vmatpush3.msra.mxu1 %v10720_v38  ;;  %12434 = vst [vmem:[#allocation49_spill] sm:$0xff] %v10998_v9  ;;  %vm11997_vm3 = vcmp.eq.s32.totalorder %v12423_v59, %v10985_v22  ;;  %v11022_v1 = vadd.s32 1, %v10998_v9  ;;  %v11234_v33 = vadd.s32 16, %v10998_v9 }
 0x374   : > { %7317 = vmatpush3.msra.mxu0 %v10720_v38  ;;  %7262 = vmatprep.subr.mxu1 %v10727_v48  ;;  %v11032_v38 = vadd.s32 16, %v12419_v15 }
 0x375   : > { %6683 = vmatmul.mubr.msk.f32.gmra.mxu0 %vm11994_vm0, %v12422_v36  ;;  %7318 = vmatprep.subr.mxu0 %v10727_v48  ;;  %vm12000_vm0 = vcmp.eq.s32.totalorder %v12420_v12, %v10985_v22  ;;  %12435 = vst [vmem:[#allocation50_spill] sm:$0xff] %v11022_v1  ;;  %v11044_v48 = vadd.s32 16, %v10773_v30  ;;  %12450 = vst [vmem:[#allocation56_spill] sm:$0xff] %v11234_v33  ;;  %v11261_v21 = vadd.s32 1, %v11234_v33 }
 0x376   : > { %6668 = vmatprep.mubr.msk.f32.mxu1 %vm11996_vm4, %v12422_v36  ;;  %7263 = vmatpush3.msra.mxu1 %v10733_v29  ;;  %vm11999_vm4 = vcmp.eq.s32.totalorder %v12420_v12, %v10998_v9 }
 0x377   : > { %7319 = vmatpush3.msra.mxu0 %v10733_v29  ;;  %6669 = vmatmul.mubr.msk.f32.gmra.mxu1 %vm11995_vm2, %v12422_v36  ;;  %vm11998_vm2 = vcmp.eq.s32.totalorder %v12423_v59, %v10998_v9  ;;  %12436 = vst [vmem:[#allocation69_spill] sm:$0xff] %v11044_v48  ;;  %v11059_v29 = vadd.s32 1, %v11032_v38  ;;  %vm12007_vm13 = vcmp.eq.s32.totalorder %v12423_v59, %v11044_v48  ;;  %12451 = vst [vmem:[#allocation29_spill] sm:$0xff] %v11261_v21 }
 0x378   : > { %7264 = vmatprep.subr.mxu1 %v10738_v45  ;;  %7320 = vmatprep.subr.mxu0 %v10738_v45  ;;  %v11073_v45 = vadd.s32 1, %v11044_v48 }
 0x379   : > { %6684 = vmatprep.mubr.msk.f32.mxu0 %vm11997_vm3, %v12422_v36  ;;  %7265 = vmatpush3.msra.mxu1 %v10745_v56  ;;  %vm12001_vm3 = vcmp.eq.s32.totalorder %v12423_v59, %v11022_v1  ;;  %12437 = vst [vmem:[#allocation23_spill] sm:$0xff] %v11059_v29  ;;  %vm12011_vm15 = vcmp.eq.s32.totalorder %v12420_v12, %v11059_v29 }
 0x37a   : > { %7321 = vmatpush3.msra.mxu0 %v10745_v56  ;;  %7266 = vmatprep.subr.mxu1 %v10750_v61  ;;  %12438 = vst [vmem:[#allocation51_spill] sm:$0xff] %v11073_v45  ;;  %v11076_v56 = vadd.s32 16, %v10808_v23 }
 0x37b   : > { %6685 = vmatmul.mubr.msk.f32.gmra.mxu0 %vm12000_vm0, %v12422_v36  ;;  %7322 = vmatprep.subr.mxu0 %v10750_v61  ;;  %vm5252_vm0 = vcmp.eq.s32.totalorder %v12420_v12, %v11032_v38 }
 0x37c   : > { %6670 = vmatprep.mubr.msk.f32.mxu1 %vm11998_vm2, %v12422_v36  ;;  %7267 = vmatpush3.msra.mxu1 %v10756_v53  ;;  %vm12004_vm2 = vcmp.eq.s32.totalorder %v12420_v12, %v11022_v1  ;;  %12439 = vst [vmem:[#allocation26_spill] sm:$0xff] %v11076_v56  ;;  %v11106_v61 = vadd.s32 1, %v11076_v56  ;;  %vm12012_vm12 = vcmp.eq.s32.totalorder %v12423_v59, %v11076_v56 }
 0x37d   : > { %7323 = vmatpush3.msra.mxu0 %v10756_v53  ;;  %6671 = vmatmul.mubr.msk.f32.gmra.mxu1 %vm11999_vm4, %v12422_v36  ;;  %vm12005_vm4 = vcmp.eq.s32.totalorder %v12423_v59, %v11032_v38  ;;  %v11109_v53 = vadd.s32 16, %v10844_v5 }
 0x37e   : > { %7268 = vmatprep.subr.mxu1 %v10760_v26  ;;  %7324 = vmatprep.subr.mxu0 %v10760_v26  ;;  %12440 = vst [vmem:[#allocation70_spill] sm:$0xff] %v11106_v61  ;;  %v12442_v26 = vmov 0.0  }
 0x37f   : > { %6686 = vmatprep.mubr.msk.f32.mxu0 %vm12001_vm3, %v12422_v36  ;;  %7269 = vmatpush3.msra.mxu1 %v10765_v37  ;;  %vm12008_vm3 = vcmp.eq.s32.totalorder %v12423_v59, %v11059_v29  ;;  %12441 = vst [vmem:[#allocation52_spill] sm:$0xff] %v11109_v53  ;;  %v11141_v4 = vadd.s32 1, %v11109_v53 }
 0x380   : > { %7325 = vmatpush3.msra.mxu0 %v10765_v37  ;;  %7270 = vmatprep.subr.mxu1 %v10769_v34  ;;  %v11171_v37 = vadd.s32 1, %v11144_v44 }
 0x381   : > { %6687 = vmatmul.mubr.msk.f32.gmra.mxu0 %vm12004_vm2, %v12422_v36  ;;  %7326 = vmatprep.subr.mxu0 %v10769_v34  ;;  %vm12009_vm2 = vcmp.eq.s32.totalorder %v12423_v59, %v11073_v45  ;;  %12443 = vst [vmem:[#allocation71_spill] sm:$0xff] %v11141_v4  ;;  %v11174_v34 = vadd.s32 16, %v10922_v31 }
 0x382   : > { %7271 = vmatpush3.msra.mxu1 %v10776_v32  ;;  %6688 = vmatprep.mubr.msk.f32.mxu1 %vm12005_vm4, %v12422_v36  ;;  %vm12010_vm4 = vcmp.eq.s32.totalorder %v12420_v12, %v11044_v48  ;;  %12445 = vst [vmem:[#allocation72_spill] sm:$0xff] %v11171_v37 }
 0x383   : > { %7327 = vmatpush3.msra.mxu0 %v10776_v32  ;;  %6689 = vmatmul.mubr.msk.f32.vlgmr.msra.gmra.mxu1 %vm5252_vm0, %v12422_v36  ;;  %12446 = vst [vmem:[#allocation53_spill] sm:$0xff] %v11174_v34  ;;  %v11201_v28 = vadd.s32 1, %v11174_v34  ;;  %v11231_v32 = vadd.s32 1, %v11204_v24 }
 0x384   : > { %6704 = vmatprep.mubr.msk.f32.mxu0 %vm12008_vm3, %v12422_v36  ;;  %6690 = vmatprep.mubr.msk.f32.mxu1 %vm12007_vm13, %v12422_v36  ;;  %vm12015_vm13 = vcmp.eq.s32.totalorder %v12420_v12, %v11073_v45  ;;  %vm12013_vm3 = vcmp.eq.s32.totalorder %v12423_v59, %v11106_v61 }
 0x385   : > { %6705 = vmatmul.mubr.msk.f32.vlgmr.msra.gmra.mxu0 %vm12011_vm15, %v12422_v36  ;;  %8035 = vmatprep.subr.mxu0 %v12442_v26  ;;  %vm12019_vm15 = vcmp.eq.s32.totalorder %v12420_v12, %v11106_v61  ;;  %12447 = vst [vmem:[#allocation73_spill] sm:$0xff] %v11201_v28  ;;  %12449 = vst [vmem:[#allocation54_spill] sm:$0xff] %v11231_v32 }
 0x386   : > { %6706 = vmatprep.mubr.msk.f32.mxu0 %vm12009_vm2, %v12422_v36  ;;  %vm12014_vm2 = vcmp.eq.s32.totalorder %v12420_v12, %v11076_v56  ;;  %8015 = vmatprep.subr.mxu1 %v5553_v3 }
 0x387   : > { %6691 = vmatmul.mubr.msk.f32.gmra.mxu1 %vm12010_vm4, %v12422_v36  ;;  %vm12016_vm4 = vcmp.eq.s32.totalorder %v12423_v59, %v11109_v53 }
 0x388   : > { %6692 = vmatprep.mubr.msk.f32.mxu1 %vm12012_vm12, %v12422_v36  ;;  %vm12017_vm12 = vcmp.eq.s32.totalorder %v12423_v59, %v11141_v4  ;;  %8016 = vmatpush3.msra.mxu1 %v5553_v3 }
 0x389   : > { %6707 = vmatmul.mubr.msk.f32.gmra.mxu0 %vm12015_vm13, %v12422_v36  ;;  %vm12023_vm13 = vcmp.eq.s32.totalorder %v12420_v12, %v11141_v4  ;;  %8017 = vmatprep.subr.mxu1 %v5552_v40 }
 0x38a   : > { %6708 = vmatprep.mubr.msk.f32.mxu0 %vm12013_vm3, %v12422_v36  ;;  %vm12018_vm3 = vcmp.eq.s32.totalorder %v12420_v12, %v11109_v53  ;;  %8018 = vmatpush3.msra.mxu1 %v5552_v40 }
 0x38b   : > { %6693 = vmatmul.mubr.msk.f32.gmra.mxu1 %vm12014_vm2, %v12422_v36  ;;  %vm12020_vm2 = vcmp.eq.s32.totalorder %v12423_v59, %v11144_v44  ;;  %8019 = vmatprep.subr.mxu1 %v5551_v19 }
 0x38c   : > { %6694 = vmatprep.mubr.msk.f32.mxu1 %vm12016_vm4, %v12422_v36  ;;  %vm12021_vm4 = vcmp.eq.s32.totalorder %v12423_v59, %v11171_v37  ;;  %8020 = vmatpush3.msra.mxu1 %v5551_v19 }
 0x38d   : > { %6709 = vmatmul.mubr.msk.f32.gmra.mxu0 %vm12019_vm15, %v12422_v36  ;;  %vm12027_vm15 = vcmp.eq.s32.totalorder %v12420_v12, %v11171_v37 }
 0x38e   : > { %6710 = vmatprep.mubr.msk.f32.mxu0 %vm12017_vm12, %v12422_v36  ;;  %vm12022_vm12 = vcmp.eq.s32.totalorder %v12420_v12, %v11144_v44 }
 0x38f   : > { %6695 = vmatmul.mubr.msk.f32.gmra.mxu1 %vm12018_vm3, %v12422_v36  ;;  %vm12024_vm3 = vcmp.eq.s32.totalorder %v12423_v59, %v11174_v34 }
 0x390   : > { %6696 = vmatprep.mubr.msk.f32.mxu1 %vm12020_vm2, %v12422_v36  ;;  %vm12025_vm2 = vcmp.eq.s32.totalorder %v12423_v59, %v11201_v28 }
 0x391   : > { %6711 = vmatmul.mubr.msk.f32.gmra.mxu0 %vm12023_vm13, %v12422_v36  ;;  %vm12029_vm13 = vcmp.eq.s32.totalorder %v12420_v12, %v11201_v28 }
 0x392   : > { %6712 = vmatprep.mubr.msk.f32.mxu0 %vm12021_vm4, %v12422_v36  ;;  %vm12026_vm4 = vcmp.eq.s32.totalorder %v12420_v12, %v11174_v34 }
 0x393   : > { %6697 = vmatmul.mubr.msk.f32.gmra.mxu1 %vm12022_vm12, %v12422_v36  ;;  %vm12028_vm12 = vcmp.eq.s32.totalorder %v12423_v59, %v11204_v24 }
 0x394   : > { %6698 = vmatprep.mubr.msk.f32.mxu1 %vm12024_vm3, %v12422_v36  ;;  %vm12083_vm3 = vcmp.eq.s32.totalorder %v12423_v59, %v11231_v32 }
 0x395   : > { %6713 = vmatmul.mubr.msk.f32.gmra.mxu0 %vm12027_vm15, %v12422_v36  ;;  %vm12082_vm15 = vcmp.eq.s32.totalorder %v12420_v12, %v11231_v32 }
 0x396   : > { %6714 = vmatprep.mubr.msk.f32.mxu0 %vm12025_vm2, %v12422_v36  ;;  %vm12030_vm2 = vcmp.eq.s32.totalorder %v12420_v12, %v11204_v24 }
 0x397   : > { %6699 = vmatmul.mubr.msk.f32.gmra.mxu1 %vm12026_vm4, %v12422_v36  ;;  %vm12080_vm4 = vcmp.eq.s32.totalorder %v12423_v59, %v11234_v33 }
 0x398   : > { %6700 = vmatprep.mubr.msk.f32.mxu1 %vm12028_vm12, %v12422_v36  ;;  %vm12079_vm12 = vcmp.eq.s32.totalorder %v12423_v59, %v11261_v21 }
 0x399   : > { %6715 = vmatmul.mubr.msk.f32.gmra.mxu0 %vm12029_vm13, %v12422_v36  ;;  %vm12078_vm13 = vcmp.eq.s32.totalorder %v12420_v12, %v11234_v33 }
 0x39a   : > { %6716 = vmatprep.mubr.msk.f32.mxu0 %vm12083_vm3, %v12422_v36 }
 0x39b   : > { %6701 = vmatmul.mubr.msk.f32.gmra.mxu1 %vm12030_vm2, %v12422_v36  ;;  %vm12077_vm2 = vcmp.eq.s32.totalorder %v12420_v12, %v11261_v21 }
 0x39c   : > { %6702 = vmatprep.mubr.msk.f32.mxu1 %vm12080_vm4, %v12422_v36  ;;  %vm12472_vm4 = vcmp.eq.s32.totalorder %v12420_v12, %v10844_v5 }
 0x39d   : > { %6717 = vmatmul.mubr.msk.f32.gmra.mxu0 %vm12082_vm15, %v12422_v36 }
 0x39e   : > { %6718 = vmatprep.mubr.msk.f32.mxu0 %vm12079_vm12, %v12422_v36  ;;  %vm12469_vm12 = vcmp.eq.s32.totalorder %v12423_v59, %v11032_v38  ;;  %v12476_v38 = vld [vmem:[#allocation69_spill] sm:$0xff] }
 0x39f   : > { %6703 = vmatmul.mubr.msk.f32.gmra.mxu1 %vm12078_vm13, %v12422_v36  ;;  %vm12081_vm13 = vmmov 0  }
 0x3a1   : > { %6719 = vmatmul.mubr.msk.f32.gmra.mxu0 %vm12077_vm2, %v12422_v36  ;;  %v5550_v36 = vld [vmem:[%s11859_s5] sm:$0xff]  ;;  %vm11426_vm2 = vmor %vm4957_vm8, %vm5102_vm10  ;;  %vm12456_vm8 = vcmp.eq.s32.totalorder %v12423_v59, %v10808_v23  ;;  %vm12459_vm10 = vcmp.eq.s32.totalorder %v12420_v12, %v10830_v60  ;;  %v12467_v60 = vld [vmem:[#allocation23_spill] sm:$0xff] }
 0x3a2   : > { %8021 = vmatprep.subr.mxu1 %v5550_v36  ;;  %8051 = vmatprep.mubr.msk.f32.mxu0 %vm12081_vm13, %v12442_v26 }
 0x3a3   : > { %8022 = vmatpush3.msra.mxu1 %v5550_v36 }
 0x3a4   : > { %7375 = vmatprep.subr.mxu1 %v8164_v47 }
 0x414   : > { %v7160_v35 = vpop.f32.mrf.mxu1 }
 0x415   : > { %v7216_v25 = vpop.f32.mrf.mxu0 }
 0x416   : > { %v7161_v54 = vpop.f32.mrf.mxu1 }
 0x417   : > { %v7217_v55 = vpop.f32.mrf.mxu0  ;;  %v7162_v32 = vadd.f32 %v7161_v54, %v7160_v35 }
 0x418   : > { %v7218_v24 = vadd.f32 %v7217_v55, %v7216_v25 }
 0x419   : > { %v7163_v46 = vpop.f32.mrf.mxu1 }
 0x41a   : > { %v5236_v1 = vmax.f32 %v7162_v32, %v7218_v24 }
 0x41b   : > { %v7164_v57 = vpop.f32.mrf.mxu1 }
 0x41c   : > { %v7165_v44 = vadd.f32 %v7164_v57, %v7163_v46 }
 0x41d   : > { %v7219_v51 = vpop.f32.mrf.mxu0 }
 0x41f   : > { %v7166_v41 = vpop.f32.mrf.mxu1  ;;  %v7220_v27 = vpop.f32.mrf.mxu0 }
 0x420   : > { %v7221_v4 = vadd.f32 %v7220_v27, %v7219_v51  ;;  %v8167_v51 = vld [vmem:[%s8527_s25 + $0x70] sm:$0xff] }
 0x421   : > { %v7167_v6 = vpop.f32.mrf.mxu1 }
 0x422   : > { %v7168_v43 = vadd.f32 %v7167_v6, %v7166_v41  ;;  %v5237_v50 = vmax.f32 %v7165_v44, %v7221_v4  ;;  %v8168_v6 = vld [vmem:[%s8527_s25 + $0xe8] sm:$0xff] }
 0x423   : > { %v7222_v7 = vpop.f32.mrf.mxu0 }
 0x425   : > { %v7169_v13 = vpop.f32.mrf.mxu1  ;;  %v7223_v0 = vpop.f32.mrf.mxu0 }
 0x426   : > { %v7224_v56 = vadd.f32 %v7223_v0, %v7222_v7 }
 0x427   : > { %v7170_v18 = vpop.f32.mrf.mxu1 }
 0x428   : > { %v5238_v24 = vmax.f32 %v7168_v43, %v7224_v56  ;;  %v7171_v32 = vadd.f32 %v7170_v18, %v7169_v13  ;;  %v8169_v18 = vld [vmem:[%s8527_s25 + $0x68] sm:$0xff] }
 0x429   : > { %v7225_v62 = vpop.f32.mrf.mxu0 }
 0x42b   : > { %v7172_v39 = vpop.f32.mrf.mxu1  ;;  %v7226_v17 = vpop.f32.mrf.mxu0 }
 0x42d   : > { %v7173_v8 = vpop.f32.mrf.mxu1 }
 0x42f   : > { %v7228_v52 = vpop.f32.mrf.mxu0 }
 0x431   : > { %v11324_v2 = vpop.f32.mrf.mxu1  ;;  %v7229_v11 = vpop.f32.mrf.mxu0 }
 0x433   : > { %v11326_v10 = vpop.f32.mrf.mxu1 }
 0x435   : > { %v11328_v58 = vpop.f32.mrf.mxu0 }
 0x437   : > { %v11330_v42 = vpop.f32.mrf.mxu1  ;;  %v11332_v3 = vpop.f32.mrf.mxu0 }
 0x439   : > { %v11334_v40 = vpop.f32.mrf.mxu1 }
 0x43b   : > { %v11336_v19 = vpop.f32.mrf.mxu0 }
 0x43d   : > { %v11338_v36 = vpop.f32.mrf.mxu1  ;;  %v11340_v47 = vpop.f32.mrf.mxu0 }
 0x43f   : > { %v11342_v21 = vpop.f32.mrf.mxu1 }
 0x441   : > { %v11344_v33 = vpop.f32.mrf.mxu0 }
 0x443   : > { %v11346_v28 = vpop.f32.mrf.mxu0  ;;  %v7272_v34 = vpop.f32.mrf.mxu1 }
 0x445   : > { %v7273_v37 = vpop.f32.mrf.mxu1  ;;  %v7328_v9 = vpop.f32.mrf.mxu0 }
 0x446   : > { %v7274_v49 = vadd.f32 %v7273_v37, %v7272_v34 }
 0x447   : > { %v7275_v22 = vpop.f32.mrf.mxu1  ;;  %v7329_v53 = vpop.f32.mrf.mxu0 }
 0x448   : > { %v5389_v61 = vmax.f32 %v5236_v1, %v7274_v49  ;;  %v7330_v31 = vadd.f32 %v7329_v53, %v7328_v9  ;;  %v7227_v49 = vadd.f32 %v7226_v17, %v7225_v62  ;;  %v7177_v62 = vadd.f32 %v11326_v10, %v11324_v2 }
 0x449   : > { %v7276_v45 = vpop.f32.mrf.mxu1  ;;  %v7331_v20 = vpop.f32.mrf.mxu0  ;;  %v7180_v2 = vadd.f32 %v11334_v40, %v11330_v42  ;;  %v7236_v10 = vadd.f32 %v11340_v47, %v11336_v19  ;;  %v8176_v19 = vld [vmem:[%s8527_s25 + $0xc8] sm:$0xff] }
 0x44a   : > { %v5542_v35 = vmax.f32 %v5389_v61, %v7330_v31  ;;  %v7277_v25 = vadd.f32 %v7276_v45, %v7275_v22  ;;  %v8165_v45 = vld [vmem:[%s8527_s25 + $0x78] sm:$0xff]  ;;  %v5239_v56 = vmax.f32 %v7171_v32, %v7227_v49 }
 0x44b   : > { %v7278_v54 = vpop.f32.mrf.mxu1  ;;  %v7332_v55 = vpop.f32.mrf.mxu0  ;;  %v5242_v47 = vmax.f32 %v7180_v2, %v7236_v10  ;;  %v8194_v2 = vld [vmem:[%s8527_s25 + $0x80] sm:$0xff] }
 0x44c   : > { %v5390_v48 = vmax.f32 %v5237_v50, %v7277_v25  ;;  %v7333_v29 = vadd.f32 %v7332_v55, %v7331_v20  ;;  %8023 = vmatprep.mubr.msk.f32.mxu1 %vm875_vm1, %v5542_v35  ;;  %v7174_v50 = vadd.f32 %v7173_v8, %v7172_v39  ;;  %v7230_v20 = vadd.f32 %v7229_v11, %v7228_v52  ;;  %v8170_v52 = vld [vmem:[%s8527_s25 + $0xe0] sm:$0xff] }
 0x44d   : > { %v7279_v37 = vpop.f32.mrf.mxu1  ;;  %v7334_v34 = vpop.f32.mrf.mxu0  ;;  %v7233_v39 = vadd.f32 %v11332_v3, %v11328_v58  ;;  %v8171_v25 = vld [vmem:[%s8527_s25 + $0x60] sm:$0xff] }
 0x44e   : > { %v5543_v9 = vmax.f32 %v5390_v48, %v7333_v29  ;;  %v7280_v1 = vadd.f32 %v7279_v37, %v7278_v54  ;;  %v8166_v29 = vld [vmem:[%s8527_s25 + $0xf0] sm:$0xff]  ;;  %v5240_v7 = vmax.f32 %v7174_v50, %v7230_v20  ;;  %v8173_v37 = vld [vmem:[%s8527_s25 + $0x58] sm:$0xff]  ;;  %v8177_v50 = vld [vmem:[%s8527_s25 + $0x48] sm:$0xff]  ;;  %v7183_v20 = vadd.f32 %v11342_v21, %v11338_v36 }
 0x44f   : > { %v7281_v53 = vpop.f32.mrf.mxu1  ;;  %v7335_v46 = vpop.f32.mrf.mxu0  ;;  %v8195_v10 = vld [vmem:[%s8527_s25] sm:$0xff] }
 0x450   : > { %v5391_v4 = vmax.f32 %v5238_v24, %v7280_v1  ;;  %v7336_v31 = vadd.f32 %v7335_v46, %v7334_v34  ;;  %8024 = vmatmul.mubr.msk.f32.vlgmr.msra.gmra.mxu1 %vm875_vm1, %v5543_v9  ;;  %v8172_v24 = vld [vmem:[%s8527_s25 + $0xd8] sm:$0xff]  ;;  %v5241_v34 = vmax.f32 %v7177_v62, %v7233_v39  ;;  %v8174_v9 = vld [vmem:[%s8527_s25 + $0xd0] sm:$0xff]  ;;  %v8184_v62 = vld [vmem:[%s8527_s25 + $0xa8] sm:$0xff] }
 0x451   : > { %v7282_v22 = vpop.f32.mrf.mxu1  ;;  %v7337_v43 = vpop.f32.mrf.mxu0  ;;  %7376 = vmatpush3.msra.mxu1 %v8165_v45  ;;  %v8175_v46 = vld [vmem:[%s8527_s25 + $0x50] sm:$0xff]  ;;  %v8185_v39 = vld [vmem:[%s8527_s25 + $0x28] sm:$0xff] }
 0x452   : > { %v5544_v61 = vmax.f32 %v5391_v4, %v7336_v31  ;;  %v7283_v48 = vadd.f32 %v7282_v22, %v7281_v53  ;;  %7377 = vmatprep.subr.mxu1 %v8166_v29  ;;  %v7239_v22 = vadd.f32 %v11346_v28, %v11344_v33  ;;  %v8179_v29 = vld [vmem:[%s8527_s25 + $0x40] sm:$0xff]  ;;  %v8181_v33 = vld [vmem:[%s8527_s25 + $0x38] sm:$0xff] }
 0x453   : > { %v7284_v44 = vpop.f32.mrf.mxu1  ;;  %v7338_v57 = vpop.f32.mrf.mxu0  ;;  %7378 = vmatpush3.msra.mxu1 %v8167_v51  ;;  %v8180_v51 = vld [vmem:[%s8527_s25 + $0xb8] sm:$0xff] }
 0x454   : > { %v5392_v41 = vmax.f32 %v5239_v56, %v7283_v48  ;;  %v7339_v27 = vadd.f32 %v7338_v57, %v7337_v43  ;;  %8026 = vmatprep.mubr.msk.f32.mxu1 %vm875_vm1, %v5544_v61  ;;  %7379 = vmatprep.subr.mxu1 %v8168_v6  ;;  %v8178_v56 = vld [vmem:[%s8527_s25 + $0xc0] sm:$0xff]  ;;  %v5243_v36 = vmax.f32 %v7183_v20, %v7239_v22  ;;  %v8182_v6 = vld [vmem:[%s8527_s25 + $0xb0] sm:$0xff]  ;;  %v12500_v22 = vld [vmem:[#allocation70_spill] sm:$0xff] }
 0x455   : > { %v7285_v13 = vpop.f32.mrf.mxu1  ;;  %v7340_v0 = vpop.f32.mrf.mxu0  ;;  %7380 = vmatpush3.msra.mxu1 %v8169_v18 }
 0x456   : > { %v5545_v17 = vmax.f32 %v5392_v41, %v7339_v27  ;;  %v7286_v8 = vadd.f32 %v7285_v13, %v7284_v44  ;;  %7381 = vmatprep.subr.mxu1 %v8170_v52  ;;  %v8183_v13 = vld [vmem:[%s8527_s25 + $0x30] sm:$0xff]  ;;  %v8187_v52 = vld [vmem:[%s8527_s25 + $0x20] sm:$0xff] }
 0x457   : > { %v7287_v11 = vpop.f32.mrf.mxu1  ;;  %v7341_v35 = vpop.f32.mrf.mxu0  ;;  %7382 = vmatpush3.msra.mxu1 %v8171_v25  ;;  %v8190_v25 = vld [vmem:[%s8527_s25 + $0x90] sm:$0xff] }
 0x458   : > { %v5393_v54 = vmax.f32 %v5240_v7, %v7286_v8  ;;  %v7342_v55 = vadd.f32 %v7341_v35, %v7340_v0  ;;  %8027 = vmatmul.mubr.msk.f32.gmra.mxu1 %vm875_vm1, %v5545_v17  ;;  %7383 = vmatprep.subr.mxu1 %v8172_v24  ;;  %v8186_v8 = vld [vmem:[%s8527_s25 + $0xa0] sm:$0xff]  ;;  %v8189_v35 = vld [vmem:[%s8527_s25 + $0x18] sm:$0xff]  ;;  %v8193_v24 = vld [vmem:[%s8527_s25 + $0x8] sm:$0xff] }
 0x459   : > { %v7288_v58 = vpop.f32.mrf.mxu1  ;;  %v7343_v3 = vpop.f32.mrf.mxu0  ;;  %7384 = vmatpush3.msra.mxu1 %v8173_v37  ;;  %v5717_v37 = vld [vmem:[%s11863_s9 + $0x28] sm:$0xff] }
 0x45a   : > { %v5546_v32 = vmax.f32 %v5393_v54, %v7342_v55  ;;  %v7289_v49 = vadd.f32 %v7288_v58, %v7287_v11  ;;  %7385 = vmatprep.subr.mxu1 %v8174_v9  ;;  %v8188_v11 = vld [vmem:[%s8527_s25 + $0x98] sm:$0xff]  ;;  %v8191_v54 = vld [vmem:[%s8527_s25 + $0x10] sm:$0xff]  ;;  %v8192_v55 = vld [vmem:[%s8527_s25 + $0x88] sm:$0xff] }
 0x45b   : > { %v7290_v1 = vpop.f32.mrf.mxu1  ;;  %v7344_v53 = vpop.f32.mrf.mxu0  ;;  %7386 = vmatpush3.msra.mxu1 %v8175_v46  ;;  %v5719_v58 = vld [vmem:[%s11863_s9 + $0x38] sm:$0xff]  ;;  %v5713_v9 = vld [vmem:[%s11863_s9 + $0x8] sm:$0xff] }
 0x45c   : > { %v5394_v42 = vmax.f32 %v5241_v34, %v7289_v49  ;;  %v7345_v40 = vadd.f32 %v7344_v53, %v7343_v3  ;;  %8029 = vmatprep.mubr.msk.f32.mxu1 %vm875_vm1, %v5546_v32  ;;  %7387 = vmatprep.subr.mxu1 %v8176_v19  ;;  %v5718_v3 = vld [vmem:[%s11863_s9 + $0x30] sm:$0xff]  ;;  %v5716_v34 = vld [vmem:[%s11863_s9 + $0x20] sm:$0xff] }
 0x45d   : > { %v7291_v4 = vpop.f32.mrf.mxu1  ;;  %v7346_v31 = vpop.f32.mrf.mxu0  ;;  %7388 = vmatpush3.msra.mxu1 %v8177_v50  ;;  %8036 = vmatpush3.msra.mxu0 %v5719_v58  ;;  %v5714_v49 = vld [vmem:[%s11863_s9 + $0x10] sm:$0xff] }
 0x45e   : > { %v5547_v43 = vmax.f32 %v5394_v42, %v7345_v40  ;;  %v7292_v45 = vadd.f32 %v7291_v4, %v7290_v1  ;;  %7389 = vmatprep.subr.mxu1 %v8178_v56  ;;  %8037 = vmatprep.subr.mxu0 %v12442_v26  ;;  %v5712_v1 = vld [vmem:[%s11863_s9] sm:$0xff]  ;;  %v8327_v42 = vmov 0.25   ;;  %v12484_v19 = vld [vmem:[#allocation51_spill] sm:$0xff]  ;;  %v12492_v4 = vld [vmem:[#allocation26_spill] sm:$0xff] }
 0x45f   : > { %v7293_v61 = vpop.f32.mrf.mxu1  ;;  %v7347_v48 = vpop.f32.mrf.mxu0  ;;  %7390 = vmatpush3.msra.mxu1 %v8179_v29  ;;  %8038 = vmatpush3.msra.mxu0 %v5718_v3  ;;  %v12496_v50 = vld [vmem:[#allocation67_spill] sm:$0xff] }
 0x460   : > { %v5395_v44 = vmax.f32 %v5242_v47, %v7292_v45  ;;  %v7348_v57 = vadd.f32 %v7347_v48, %v7346_v31  ;;  %8030 = vmatmul.mubr.msk.f32.gmra.mxu1 %vm875_vm1, %v5547_v43  ;;  %7391 = vmatprep.subr.mxu1 %v8180_v51  ;;  %v12494_v31 = vld [vmem:[#allocation68_spill] sm:$0xff]  ;;  %v12510_v56 = vld [vmem:[#allocation43_spill] sm:$0xff]  ;;  %v12526_v51 = vld [vmem:[#allocation50_spill] sm:$0xff] }
 0x461   : > { %v7294_v21 = vpop.f32.mrf.mxu1  ;;  %v7349_v28 = vpop.f32.mrf.mxu0  ;;  %7392 = vmatpush3.msra.mxu1 %v8181_v33  ;;  %8039 = vmatprep.subr.mxu0 %v12442_v26  ;;  %v12508_v45 = vld [vmem:[#allocation52_spill] sm:$0xff]  ;;  %v12516_v29 = vld [vmem:[#allocation71_spill] sm:$0xff] }
 0x462   : > { %v5548_v41 = vmax.f32 %v5395_v44, %v7348_v57  ;;  %v7295_v27 = vadd.f32 %v7294_v21, %v7293_v61  ;;  %7393 = vmatprep.subr.mxu1 %v8182_v6  ;;  %8040 = vmatpush3.msra.mxu0 %v5717_v37  ;;  %v12512_v61 = vld [vmem:[#allocation25_spill] sm:$0xff]  ;;  %v12524_v57 = vld [vmem:[#allocation27_spill] sm:$0xff]  ;;  %v12532_v33 = vld [vmem:[#allocation72_spill] sm:$0xff] }
 0x463   : > { %v7350_v7 = vpop.f32.mrf.mxu0  ;;  %7394 = vmatpush3.msra.mxu1 %v8183_v13  ;;  %8041 = vmatprep.subr.mxu0 %v12442_v26  ;;  %v12528_v21 = vld [vmem:[#allocation49_spill] sm:$0xff]  ;;  %v12546_v6 = vld [vmem:[#allocation74_spill] sm:$0xff]  ;;  %v12552_v13 = vld [vmem:[#allocation56_spill] sm:$0xff] }
 0x464   : > { %v5396_v0 = vmax.f32 %v5243_v36, %v7295_v27  ;;  %v7351_v18 = vadd.f32 %v7350_v7, %v7349_v28  ;;  %8032 = vmatprep.mubr.msk.f32.mxu1 %vm875_vm1, %v5548_v41  ;;  %7395 = vmatprep.subr.mxu1 %v8184_v62  ;;  %v12540_v41 = vld [vmem:[#allocation53_spill] sm:$0xff]  ;;  %vm12547_vm3 = vcmp.eq.s32.totalorder %v12423_v59, %v12546_v6  ;;  %v12548_v7 = vld [vmem:[#allocation54_spill] sm:$0xff]  ;;  %v6052_v36 = vld [vmem:[%s11861_s7 + $0x30] sm:$0xff] }
 0x465   : > { %7396 = vmatpush3.msra.mxu1 %v8185_v39  ;;  %8042 = vmatpush3.msra.mxu0 %v5716_v34  ;;  %v12542_v27 = vld [vmem:[#allocation73_spill] sm:$0xff] }
 0x466   : > { %v5549_v17 = vmax.f32 %v5396_v0, %v7351_v18  ;;  %7397 = vmatprep.subr.mxu1 %v8186_v8  ;;  %8043 = vmatprep.subr.mxu0 %v12442_v26  ;;  %v12554_v0 = vld [vmem:[#allocation29_spill] sm:$0xff] }
 0x467   : > { %7398 = vmatpush3.msra.mxu1 %v8187_v52  ;;  %8044 = vmatpush3.msra.mxu0 %v5715_v16  ;;  %v6720_v39 = vld [vmem:[%s11860_s6] ss:$0 sm:$0xff] }
 0x468   : > { %8033 = vmatmul.mubr.msk.f32.gmra.mxu1 %vm875_vm1, %v5549_v17  ;;  %7399 = vmatprep.subr.mxu1 %v8188_v11  ;;  %vm5877_vm1 = vmor %vm4954_vm6, %vm5099_vm7 }
 0x469   : > { %7400 = vmatpush3.msra.mxu1 %v8189_v35  ;;  %vm11440_vm6 = vmor %vm4956_vm9, %vm5101_vm11  ;;  %8045 = vmatprep.subr.mxu0 %v12442_v26  ;;  %vm12460_vm11 = vcmp.eq.s32.totalorder %v12420_v12, %v10808_v23 }
 0x46a   : > { %7401 = vmatprep.subr.mxu1 %v8190_v25  ;;  %vm5893_vm7 = vmor %vm5877_vm1, %vm5252_vm0  ;;  %8046 = vmatpush3.msra.mxu0 %v5714_v49  ;;  %vm12464_vm1 = vcmp.eq.s32.totalorder %v12423_v59, %v10844_v5  ;;  %v12478_v5 = vld [vmem:[#allocation48_spill] sm:$0xff] }
 0x46b   : > { %7402 = vmatpush3.msra.mxu1 %v8191_v54  ;;  %vm11457_vm9 = vmor %vm12456_vm8, %vm5104_vm14  ;;  %8047 = vmatprep.subr.mxu0 %v12442_v26  ;;  %vm12463_vm14 = vcmp.eq.s32.totalorder %v12423_v59, %v10869_v14 }
 0x46c   : > { %7403 = vmatprep.subr.mxu1 %v8192_v55  ;;  %vm11467_vm0 = vmor %vm12460_vm11, %vm12459_vm10  ;;  %vm12468_vm10 = vcmp.eq.s32.totalorder %v12420_v12, %v12467_v60  ;;  %8048 = vmatpush3.msra.mxu0 %v5713_v9 }
 0x46d   : > { %7404 = vmatpush3.msra.mxu1 %v8193_v24  ;;  %vm11484_vm8 = vmor %vm12464_vm1, %vm12463_vm14  ;;  %8049 = vmatprep.subr.mxu0 %v12442_v26  ;;  %vm12471_vm1 = vcmp.eq.s32.totalorder %v12420_v12, %v10869_v14  ;;  %v12480_v14 = vld [vmem:[#allocation19_spill] sm:$0xff] }
 0x46e   : > { %7405 = vmatprep.subr.mxu1 %v8194_v2  ;;  %vm5909_vm11 = vmor %vm5893_vm7, %vm12468_vm10  ;;  %8050 = vmatpush3.msra.mxu0 %v5712_v1  ;;  %vm12475_vm10 = vcmp.eq.s32.totalorder %v12423_v59, %v12467_v60 }
 0x46f   : > { %7406 = vmatpush3.msra.mxu1 %v8195_v10  ;;  %vm5894_vm14 = vmor %vm10424_vm5, %vm12469_vm12  ;;  %vm12477_vm5 = vcmp.eq.s32.totalorder %v12423_v59, %v12476_v38  ;;  %8054 = vmatprep.subr.mxu0 %v12442_v26 }
 0x470   : > { %vm11505_vm7 = vmor %vm12472_vm4, %vm12471_vm1  ;;  %vm12479_vm4 = vcmp.eq.s32.totalorder %v12423_v59, %v12478_v5  ;;  %vm12481_vm1 = vcmp.eq.s32.totalorder %v12423_v59, %v12480_v14 }
 0x471   : > { %vm5910_vm13 = vmor %vm5894_vm14, %vm12475_vm10 }
 0x472   : > { %6732 = vmatprep.mubr.msk.f32.mxu1 %vm5910_vm13, %v8327_v42  ;;  %vm5896_vm12 = vmor %vm11426_vm2, %vm12477_vm5  ;;  %vm12485_vm13 = vcmp.eq.s32.totalorder %v12423_v59, %v12484_v19  ;;  %vm12486_vm2 = vcmp.eq.s32.totalorder %v12420_v12, %v12476_v38  ;;  %vm12487_vm5 = vcmp.eq.s32.totalorder %v12420_v12, %v12478_v5 }
 0x473   : > { %vm11524_vm15 = vmor %vm12481_vm1, %vm12479_vm4  ;;  %6733 = vmatmul.mubr.msk.f32.vlgmr.msra.gmra.mxu1 %vm5909_vm11, %v8327_v42  ;;  %vm12488_vm4 = vcmp.eq.s32.totalorder %v12420_v12, %v12480_v14  ;;  %vm12491_vm11 = vcmp.eq.s32.totalorder %v12420_v12, %v12484_v19 }
 0x474   : > { %vm5912_vm14 = vmor %vm5896_vm12, %vm12485_vm13  ;;  %vm12493_vm13 = vcmp.eq.s32.totalorder %v12423_v59, %v12492_v4 }
 0x475   : > { %6734 = vmatprep.mubr.msk.f32.mxu1 %vm5912_vm14, %v8327_v42  ;;  %vm5895_vm10 = vmor %vm11440_vm6, %vm12486_vm2  ;;  %vm12495_vm14 = vcmp.eq.s32.totalorder %v12423_v59, %v12494_v31  ;;  %vm12497_vm2 = vcmp.eq.s32.totalorder %v12423_v59, %v12496_v50 }
 0x476   : > { %vm11542_vm1 = vmor %vm12488_vm4, %vm12487_vm5 }
 0x477   : > { %vm5911_vm12 = vmor %vm5895_vm10, %vm12491_vm11  ;;  %vm12501_vm10 = vcmp.eq.s32.totalorder %v12423_v59, %v12500_v22  ;;  %vm12502_vm11 = vcmp.eq.s32.totalorder %v12420_v12, %v12492_v4  ;;  %v5795_v4 = vld [vmem:[%s11865_s11] sm:$0xff] }
 0x478   : > { %vm5898_vm6 = vmor %vm11457_vm9, %vm12493_vm13  ;;  %6735 = vmatmul.mubr.msk.f32.gmra.mxu1 %vm5911_vm12, %v8327_v42  ;;  %vm12503_vm13 = vcmp.eq.s32.totalorder %v12420_v12, %v12494_v31  ;;  %vm12507_vm12 = vcmp.eq.s32.totalorder %v12420_v12, %v12500_v22  ;;  %v6053_v31 = vld [vmem:[%s11861_s7 + $0x38] sm:$0xff] }
 0x479   : > { %vm11560_vm5 = vmor %vm12497_vm2, %vm12495_vm14  ;;  %vm12504_vm14 = vcmp.eq.s32.totalorder %v12420_v12, %v12496_v50 }
 0x47a   : > { %vm5914_vm4 = vmor %vm5898_vm6, %vm12501_vm10  ;;  %vm12509_vm10 = vcmp.eq.s32.totalorder %v12423_v59, %v12508_v45 }
 0x47b   : > { %6736 = vmatprep.mubr.msk.f32.mxu1 %vm5914_vm4, %v8327_v42  ;;  %vm5897_vm9 = vmor %vm11467_vm0, %vm12502_vm11  ;;  %vm12511_vm4 = vcmp.eq.s32.totalorder %v12423_v59, %v12510_v56  ;;  %vm12513_vm11 = vcmp.eq.s32.totalorder %v12423_v59, %v12512_v61 }
 0x47c   : > { %vm11578_vm2 = vmor %vm12504_vm14, %vm12503_vm13 }
 0x47d   : > { %vm5913_vm6 = vmor %vm5897_vm9, %vm12507_vm12  ;;  %vm12517_vm9 = vcmp.eq.s32.totalorder %v12423_v59, %v12516_v29  ;;  %vm12518_vm12 = vcmp.eq.s32.totalorder %v12420_v12, %v12508_v45 }
 0x47e   : > { %vm5900_vm0 = vmor %vm11484_vm8, %vm12509_vm10  ;;  %6737 = vmatmul.mubr.msk.f32.gmra.mxu1 %vm5913_vm6, %v8327_v42  ;;  %vm12519_vm10 = vcmp.eq.s32.totalorder %v12420_v12, %v12510_v56  ;;  %vm12523_vm6 = vcmp.eq.s32.totalorder %v12420_v12, %v12516_v29 }
 0x47f   : > { %vm11596_vm13 = vmor %vm12513_vm11, %vm12511_vm4  ;;  %vm12520_vm4 = vcmp.eq.s32.totalorder %v12420_v12, %v12512_v61 }
 0x480   : > { %vm5916_vm14 = vmor %vm5900_vm0, %vm12517_vm9  ;;  %vm12525_vm9 = vcmp.eq.s32.totalorder %v12423_v59, %v12524_v57 }
 0x481   : > { %6738 = vmatprep.mubr.msk.f32.mxu1 %vm5916_vm14, %v8327_v42  ;;  %vm5899_vm8 = vmor %vm11505_vm7, %vm12518_vm12  ;;  %vm12527_vm14 = vcmp.eq.s32.totalorder %v12423_v59, %v12526_v51  ;;  %vm12529_vm12 = vcmp.eq.s32.totalorder %v12423_v59, %v12528_v21 }
 0x482   : > { %vm11614_vm11 = vmor %vm12520_vm4, %vm12519_vm10 }
 0x483   : > { %vm5915_vm0 = vmor %vm5899_vm8, %vm12523_vm6  ;;  %vm12533_vm8 = vcmp.eq.s32.totalorder %v12423_v59, %v12532_v33  ;;  %vm12534_vm6 = vcmp.eq.s32.totalorder %v12420_v12, %v12524_v57 }
 0x484   : > { %vm5902_vm7 = vmor %vm11524_vm15, %vm12525_vm9  ;;  %6739 = vmatmul.mubr.msk.f32.gmra.mxu1 %vm5915_vm0, %v8327_v42  ;;  %vm12535_vm9 = vcmp.eq.s32.totalorder %v12420_v12, %v12526_v51  ;;  %vm12539_vm0 = vcmp.eq.s32.totalorder %v12420_v12, %v12532_v33 }
 0x485   : > { %vm11632_vm10 = vmor %vm12529_vm12, %vm12527_vm14  ;;  %vm12536_vm14 = vcmp.eq.s32.totalorder %v12420_v12, %v12528_v21 }
 0x486   : > { %vm5918_vm4 = vmor %vm5902_vm7, %vm12533_vm8  ;;  %vm12541_vm8 = vcmp.eq.s32.totalorder %v12423_v59, %v12540_v41 }
 0x487   : > { %6740 = vmatprep.mubr.msk.f32.mxu1 %vm5918_vm4, %v8327_v42  ;;  %vm5901_vm15 = vmor %vm11542_vm1, %vm12534_vm6  ;;  %vm12543_vm4 = vcmp.eq.s32.totalorder %v12423_v59, %v12542_v27 }
 0x488   : > { %vm11650_vm12 = vmor %vm12536_vm14, %vm12535_vm9  ;;  %vm12544_vm9 = vcmp.eq.s32.totalorder %v12420_v12, %v12540_v41  ;;  %v6051_v41 = vld [vmem:[%s11861_s7 + $0x28] sm:$0xff] }
 0x489   : > { %vm5917_vm7 = vmor %vm5901_vm15, %vm12539_vm0  ;;  %vm12545_vm15 = vcmp.eq.s32.totalorder %v12420_v12, %v12542_v27 }
 0x48a   : > { %vm5904_vm1 = vmor %vm11560_vm5, %vm12541_vm8  ;;  %6741 = vmatmul.mubr.msk.f32.gmra.mxu1 %vm5917_vm7, %v8327_v42  ;;  %vm12549_vm7 = vcmp.eq.s32.totalorder %v12423_v59, %v12548_v7 }
 0x48b   : > { %vm5920_vm6 = vmor %vm5904_vm1, %vm12543_vm4  ;;  %vm12550_vm1 = vcmp.eq.s32.totalorder %v12420_v12, %v12546_v6  ;;  %vm12551_vm4 = vcmp.eq.s32.totalorder %v12420_v12, %v12548_v7  ;;  %v6050_v6 = vld [vmem:[%s11861_s7 + $0x20] sm:$0xff]  ;;  %v6049_v7 = vld [vmem:[%s11861_s7 + $0x18] sm:$0xff] }
 0x48c   : > { %6742 = vmatprep.mubr.msk.f32.mxu1 %vm5920_vm6, %v8327_v42  ;;  %vm5903_vm14 = vmor %vm11578_vm2, %vm12544_vm9  ;;  %vm12553_vm9 = vcmp.eq.s32.totalorder %v12423_v59, %v12552_v13 }
 0x48d   : > { %vm5919_vm0 = vmor %vm5903_vm14, %vm12545_vm15  ;;  %vm12556_vm15 = vcmp.eq.s32.totalorder %v12420_v12, %v12552_v13 }
 0x48e   : > { %vm5906_vm5 = vmor %vm11596_vm13, %vm12547_vm3  ;;  %6743 = vmatmul.mubr.msk.f32.gmra.mxu1 %vm5919_vm0, %v8327_v42  ;;  %vm12555_vm13 = vcmp.eq.s32.totalorder %v12423_v59, %v12554_v0  ;;  %vm12557_vm0 = vcmp.eq.s32.totalorder %v12420_v12, %v12554_v0  ;;  %v6048_v0 = vld [vmem:[%s11861_s7 + $0x10] sm:$0xff] }
 0x48f   : > { %vm5922_vm8 = vmor %vm5906_vm5, %vm12549_vm7 }
 0x490   : > { %6744 = vmatprep.mubr.msk.f32.mxu1 %vm5922_vm8, %v8327_v42  ;;  %vm5905_vm2 = vmor %vm11614_vm11, %vm12550_vm1 }
 0x491   : > { %vm5921_vm6 = vmor %vm5905_vm2, %vm12551_vm4 }
 0x492   : > { %vm5908_vm3 = vmor %vm11632_vm10, %vm12553_vm9  ;;  %6745 = vmatmul.mubr.msk.f32.gmra.mxu1 %vm5921_vm6, %v8327_v42  ;;  %vm12558_vm10 = vcmask 523264  }
 0x493   : > { %vm5924_vm14 = vmor %vm5908_vm3, %vm12555_vm13  ;;  %vm12567_vm3 = vmmov 0   ;;  %vm5797_vm13 = vcmask 64512  }
 0x494   : > { %6746 = vmatprep.mubr.msk.f32.mxu1 %vm5924_vm14, %v8327_v42  ;;  %vm5907_vm11 = vmor %vm11650_vm12, %vm12556_vm15 }
 0x495   : > { %vm5923_vm5 = vmor %vm5907_vm11, %vm12557_vm0 }
 0x496   : > { %6747 = vmatmul.mubr.msk.f32.gmra.mxu1 %vm5923_vm5, %v8327_v42  ;;  %vm12559_vm12 = vmmov %vm12558_vm10 }
 0x497   : > { %vm12560_vm7 = vmmov %vm12558_vm10 }
 0x498   : > { %vm12561_vm8 = vmmov %vm12560_vm7 }
 0x499   : > { %vm12562_vm1 = vmmov %vm12560_vm7 }
 0x49a   : > { %vm12563_vm2 = vmmov %vm12562_vm1 }
 0x49b   : > { %vm12564_vm4 = vmmov %vm12562_vm1 }
 0x49c   : > { %vm12565_vm6 = vmmov %vm12562_vm1 }
 0x49d   : > { %vm12566_vm9 = vmmov %vm12562_vm1 }
 0x49e   : > { %vm12568_vm14 = vmmov %vm12562_vm1 }
 0x49f   : > { %vm12569_vm15 = vmmov %vm12562_vm1 }
 0x4a0   : > { %vm12570_vm11 = vmmov %vm12562_vm1 }
 0x4a1   : > { %vm12571_vm0 = vmmov %vm12562_vm1 }
 0x4a2   : > { %vm12572_vm5 = vmmov %vm12571_vm0 }
 0x510   : > { %v8025_v18 = vpop.f32.mrf.mxu1 }
 0x511   : > { %v11710_v52 = vadd.f32 %v8025_v18, %v6720_v39  ;;  %v6047_v18 = vld [vmem:[%s11861_s7 + $0x8] sm:$0xff] }
 0x512   : > { %v5651_v62 = vpop.f32.mrf.mxu1 }
 0x513   : > { %v11708_v17 = vadd.f32 %v6720_v39, %v5651_v62  ;;  %v5691_v12 = vsel %vm12559_vm12, %v11710_v52, 0.0  ;;  %vm12574_vm12 = vmmov %vm12571_vm0 }
 0x515   : > { %v5690_v35 = vsel %vm12558_vm10, %v11708_v17, 0.0  ;;  %vm12573_vm10 = vmmov %vm12571_vm0 }
 0x516   : > { %v5692_v54 = vadd.f32 %v5691_v12, %v5690_v35 }
 0x518   : > { %v8028_v59 = vpop.f32.mrf.mxu1 }
 0x519   : > { %v11720_v24 = vadd.f32 %v8028_v59, %v6720_v39 }
 0x51a   : > { %v5661_v8 = vpop.f32.mrf.mxu1 }
 0x51b   : > { %v11712_v11 = vadd.f32 %v6720_v39, %v5661_v8  ;;  %v5695_v3 = vsel %vm12561_vm8, %v11720_v24, 0.0  ;;  %vm12580_vm8 = vmmov %vm12571_vm0 }
 0x51d   : > { %v5693_v25 = vsel %vm12560_vm7, %v11712_v11, 0.0  ;;  %vm12575_vm7 = vmmov %vm12571_vm0 }
 0x51e   : > { %v5694_v2 = vadd.f32 %v5693_v25, %v5692_v54 }
 0x520   : > { %v8031_v55 = vpop.f32.mrf.mxu1  ;;  %v5696_v34 = vadd.f32 %v5695_v3, %v5694_v2 }
 0x521   : > { %v11728_v32 = vadd.f32 %v8031_v55, %v6720_v39 }
 0x522   : > { %v5671_v10 = vpop.f32.mrf.mxu1 }
 0x523   : > { %v11722_v58 = vadd.f32 %v6720_v39, %v5671_v10  ;;  %v5699_v30 = vsel %vm12563_vm2, %v11728_v32, 0.0  ;;  %vm12582_vm2 = vmmov %vm12571_vm0 }
 0x525   : > { %v5697_v37 = vsel %vm12562_vm1, %v11722_v58, 0.0  ;;  %vm12581_vm1 = vmmov %vm12571_vm0 }
 0x526   : > { %v5698_v16 = vadd.f32 %v5697_v37, %v5696_v34  ;;  %v5796_v37 = vld [vmem:[%s12576_s16] sm:$0x1]  ;;  %s8254_s16 = sshll.u32 %s8328_s13, 4  ;;  %s8255_s16 = int_to_ptr.vmem [resolvable:$false] %s8254_s16 }
 0x527   : > { %s8256_s17 = scalar_lea.vmem %s8255_s16, 2048  ;;  %p8257_p10 = scmp.lt.s32.totalorder %s11803_s19, %s8255_s16 }
 0x528   : > { %v8034_v15 = vpop.f32.mrf.mxu1  ;;  %v5700_v1 = vadd.f32 %v5699_v30, %v5698_v16  ;;  %p8258_p12 = scmp.lt.s32.totalorder %s8256_s17, %s8250_s3 }
 0x529   : > { %v11732_v63 = vadd.f32 %v8034_v15, %v6720_v39 }
 0x52a   : > { %v5681_v49 = vpop.f32.mrf.mxu1  ;;  %p8259_p13 = por %p8258_p12, %p8257_p10 }
 0x52b   : > { %v11734_v9 = vadd.f32 %v6720_v39, %v5681_v49  ;;  %v5703_v53 = vsel %vm12565_vm6, %v11732_v63, 0.0  ;;  %v6046_v39 = vld [vmem:[%s11861_s7] sm:$0xff]  ;;  %vm12584_vm6 = vmmov %vm12571_vm0 }
 0x52c   : > { %p8260_p0 = pnand %p8259_p13, %p8253_p9 }
 0x52d   : > { %v5701_v23 = vsel %vm12564_vm4, %v11734_v9, 0.0  ;;  %vm12583_vm4 = vmmov %vm12571_vm0 }
 0x52e   : > { %v5702_v60 = vadd.f32 %v5701_v23, %v5700_v1 }
 0x530   : > { %v5704_v46 = vadd.f32 %v5703_v53, %v5702_v60 }
 0x532   : > { %v5705_v42 = vrot.slane %v5704_v46, 4 }
 0x533   : > { %v7407_v50 = vpop.f32.mrf.mxu1 }
 0x534   : > { %v5706_v38 = vadd.f32 %v5705_v42, %v5704_v46 }
 0x535   : > { %v7408_v20 = vpop.f32.mrf.mxu1 }
 0x536   : > { %v5707_v5 = vrot.slane %v5706_v38, 2  ;;  %v7409_v21 = vadd.f32 %v7408_v20, %v7407_v50 }
 0x538   : > { %v5708_v14 = vadd.f32 %v5707_v5, %v5706_v38  ;;  %v7410_v22 = vpop.f32.mrf.mxu1 }
 0x53a   : > { %v5709_v40 = vrot.slane %v5708_v14, 1  ;;  %v7411_v43 = vpop.f32.mrf.mxu1 }
 0x53b   : > { %v7412_v8 = vadd.f32 %v7411_v43, %v7410_v22 }
 0x53c   : > { %v5710_v19 = vadd.f32 %v5709_v40, %v5708_v14  ;;  %v12577_v14 = vld [vmem:[#allocation15_spill] sm:$0xff] }
 0x53d   : > { %v6192_v40 = vsub.s32 0, %v12577_v14 }
 0x53e   : > { %v5711_v47 = vmul.f32 0.015625, %v5710_v19  ;;  %v7413_v45 = vpop.f32.mrf.mxu1  ;;  %v6748_v19 = vld [vmem:[%s12578_s22] ss:$0 sm:$0xff] }
 0x540   : > { %8052 = vmatmul.mubr.msk.f32.vlgmr.msra.gmra.mxu0 %vm12566_vm9, %v5711_v47  ;;  %v7414_v56 = vpop.f32.mrf.mxu1  ;;  %vm12585_vm9 = vmmov %vm12571_vm0 }
 0x541   : > { %8056 = vmatprep.mubr.msk.f32.mxu0 %vm12567_vm3, %v12442_v26  ;;  %8055 = vmatpush3.msra.mxu0 %v5795_v4  ;;  %v5720_v26 = vld [vmem:[%s11864_s10] sm:$0x1]  ;;  %v7415_v35 = vadd.f32 %v7414_v56, %v7413_v45  ;;  %vm12586_vm3 = vmmov %vm12571_vm0 }
 0x542   : > { %8059 = vmatprep.subr.mxu0 %v6053_v31 }
 0x544   : > { %v7416_v61 = vpop.f32.mrf.mxu1 }
 0x546   : > { %v7417_v48 = vpop.f32.mrf.mxu1 }
 0x547   : > { %v7418_v54 = vadd.f32 %v7417_v48, %v7416_v61 }
 0x54a   : > { %v7419_v29 = vpop.f32.mrf.mxu1 }
 0x54c   : > { %v7420_v28 = vpop.f32.mrf.mxu1 }
 0x54d   : > { %v7421_v12 = vadd.f32 %v7420_v28, %v7419_v29 }
 0x54e   : > { %v7422_v27 = vpop.f32.mrf.mxu1 }
 0x550   : > { %v7423_v13 = vpop.f32.mrf.mxu1 }
 0x551   : > { %v7424_v55 = vadd.f32 %v7423_v13, %v7422_v27 }
 0x552   : > { %v7425_v62 = vpop.f32.mrf.mxu1 }
 0x554   : > { %v7426_v59 = vpop.f32.mrf.mxu1 }
 0x555   : > { %v7427_v2 = vadd.f32 %v7426_v59, %v7425_v62 }
 0x556   : > { %v7428_v25 = vpop.f32.mrf.mxu1 }
 0x558   : > { %v7429_v10 = vpop.f32.mrf.mxu1 }
 0x559   : > { %v7430_v3 = vadd.f32 %v7429_v10, %v7428_v25 }
 0x600   : > { %v5790_v44 = vpop.f32.mrf.mxu0 }
 0x601   : > { %v5791_v57 = vadd.f32 %v5790_v44, %v5720_v26 }
 0x602   : > { %v8053_v51 = vpop.f32.mrf.mxu0 }
 0x603   : > { %v5794_v33 = vmax.f32 %v5791_v57, 0.0 }
 0x605   : > { %8057 = vmatmul.mubr.msk.f32.vlgmr.msra.gmra.mxu0 %vm5797_vm13, %v5794_v33  ;;  %vm12587_vm13 = vmmov %vm12571_vm0 }
 0x606   : > { %8060 = vmatpush3.msra.mxu0 %v6053_v31  ;;  %8075 = vmatprep.mubr.msk.f32.mxu0 %vm12568_vm14, %v7409_v21 }
 0x607   : > { %8061 = vmatprep.subr.mxu0 %v6052_v36 }
 0x608   : > { %8062 = vmatpush3.msra.mxu0 %v6052_v36 }
 0x609   : > { %8063 = vmatprep.subr.mxu0 %v6051_v41 }
 0x60a   : > { %8064 = vmatpush3.msra.mxu0 %v6051_v41 }
 0x60b   : > { %8065 = vmatprep.subr.mxu0 %v6050_v6 }
 0x60c   : > { %8066 = vmatpush3.msra.mxu0 %v6050_v6 }
 0x60d   : > { %8067 = vmatprep.subr.mxu0 %v6049_v7 }
 0x60e   : > { %8068 = vmatpush3.msra.mxu0 %v6049_v7 }
 0x60f   : > { %8069 = vmatprep.subr.mxu0 %v6048_v0 }
 0x610   : > { %8070 = vmatpush3.msra.mxu0 %v6048_v0 }
 0x611   : > { %8071 = vmatprep.subr.mxu0 %v6047_v18 }
 0x612   : > { %8072 = vmatpush3.msra.mxu0 %v6047_v18 }
 0x613   : > { %8073 = vmatprep.subr.mxu0 %v6046_v39 }
 0x614   : > { %8074 = vmatpush3.msra.mxu0 %v6046_v39 }
 0x615   : > { %8076 = vmatmul.mubr.msk.f32.vlgmr.msra.gmra.mxu0 %vm12569_vm15, %v7412_v8 }
 0x616   : > { %8078 = vmatprep.mubr.msk.f32.mxu0 %vm12570_vm11, %v7415_v35 }
 0x619   : > { %8079 = vmatmul.mubr.msk.f32.gmra.mxu0 %vm12571_vm0, %v7418_v54 }
 0x61a   : > { %8081 = vmatprep.mubr.msk.f32.mxu0 %vm12572_vm5, %v7421_v12 }
 0x61d   : > { %8082 = vmatmul.mubr.msk.f32.gmra.mxu0 %vm12573_vm10, %v7424_v55 }
 0x61e   : > { %8084 = vmatprep.mubr.msk.f32.mxu0 %vm12574_vm12, %v7427_v2 }
 0x621   : > { %8085 = vmatmul.mubr.msk.f32.gmra.mxu0 %vm12575_vm7, %v7430_v3 }
 0x6c5   : > { %v5867_v34 = vpop.f32.mrf.mxu0 }
 0x6c6   : > { %v5868_v16 = vadd.f32 %v5867_v34, %v5796_v37 }
 0x6c7   : > { %v8058_v15 = vpop.f32.mrf.mxu0 }
 0x6c8   : > { %v6731_v49 = vmul.f32 -1.442695, %v5868_v16 }
 0x6ca   : > { %8160 = vpow2.f32 %v6731_v49 }
 0x6d5   : > { %v8077_v30 = vpop.f32.mrf.mxu0 }
 0x6d6   : > { %v6157_v31 = vadd.f32 %v8077_v30, %v6748_v19 }
 0x6d7   : > { %v8161_v1 = vpop.eup %8160  ;;  %v6151_v23 = vpop.f32.mrf.mxu0 }
 0x6d8   : > { %v5874_v60 = vadd.f32 1.0, %v8161_v1  ;;  %v6152_v20 = vadd.f32 %v6748_v19, %v6151_v23 }
 0x6d9   : > { %v8080_v53 = vpop.f32.mrf.mxu0 }
 0x6da   : > { %8162 = vrcp.f32 %v5874_v60  ;;  %v6167_v22 = vadd.f32 %v8080_v53, %v6748_v19 }
 0x6db   : > { %v6161_v46 = vpop.f32.mrf.mxu0 }
 0x6dc   : > { %v6162_v43 = vadd.f32 %v6748_v19, %v6161_v46 }
 0x6dd   : > { %v8083_v42 = vpop.f32.mrf.mxu0 }
 0x6de   : > { %v6177_v45 = vadd.f32 %v8083_v42, %v6748_v19 }
 0x6df   : > { %v6171_v38 = vpop.f32.mrf.mxu0 }
 0x6e0   : > { %v6172_v56 = vadd.f32 %v6748_v19, %v6171_v38 }
 0x6e1   : > { %v8086_v5 = vpop.f32.mrf.mxu0 }
 0x6e2   : > { %v6187_v61 = vadd.f32 %v8086_v5, %v6748_v19 }
 0x6e3   : > { %v6181_v47 = vpop.f32.mrf.mxu0 }
 0x6e4   : > { %v6182_v48 = vadd.f32 %v6748_v19, %v6181_v47 }
 0x6e7   : > { %v8163_v4 = vpop.eup %8162 }
 0x6e8   : > { %v6193_v50 = vrot.slane %v8163_v4, %v6192_v40 }
 0x6ea   : > { %v6195_v26 = vmul.f32 %v6193_v50, %v11710_v52  ;;  %v6194_v29 = vmul.f32 %v6193_v50, %v11708_v17  ;;  %v6197_v44 = vmul.f32 %v6193_v50, %v11720_v24  ;;  %v6196_v57 = vmul.f32 %v6193_v50, %v11712_v11 }
 0x6eb   : > { %v6199_v51 = vmul.f32 %v6193_v50, %v11728_v32  ;;  %v6198_v21 = vmul.f32 %v6193_v50, %v11722_v58  ;;  %v6201_v28 = vmul.f32 %v6193_v50, %v11732_v63  ;;  %v6200_v33 = vmul.f32 %v6193_v50, %v11734_v9 }
 0x6ec   : > { %v6203_v36 = vadd.f32 %v6195_v26, %v6157_v31  ;;  %v6202_v41 = vadd.f32 %v6194_v29, %v6152_v20  ;;  %v6205_v52 = vadd.f32 %v6197_v44, %v6167_v22  ;;  %v6204_v27 = vadd.f32 %v6196_v57, %v6162_v43 }
 0x6ed   : > { %v6207_v17 = vadd.f32 %v6199_v51, %v6177_v45  ;;  %v6206_v6 = vadd.f32 %v6198_v21, %v6172_v56  ;;  %v6209_v24 = vadd.f32 %v6201_v28, %v6187_v61  ;;  %v6208_v7 = vadd.f32 %v6200_v33, %v6182_v48 }
 0x6ee   : > { %v6211_v11 = vmax.f32 %v6203_v36, 0.0  ;;  %v6210_v13 = vmax.f32 %v6202_v41, 0.0  ;;  %v6213_v32 = vmax.f32 %v6205_v52, 0.0  ;;  %v6212_v58 = vmax.f32 %v6204_v27, 0.0 }
 0x6ef   : > { %v6215_v63 = vmax.f32 %v6207_v17, 0.0  ;;  %v6214_v9 = vmax.f32 %v6206_v6, 0.0  ;;  %v6217_v0 = vmax.f32 %v6209_v24, 0.0  ;;  %v6216_v18 = vmax.f32 %v6208_v7, 0.0 }
 0x6f0   : > { %6219 = vst.msk [vmem:[%s473_s18 + $0x8] sm:$0xff] %vm12580_vm8, %v6211_v11 }
 0x6f1   : > { %6218 = vst.msk [vmem:[%s473_s18] sm:$0xff] %vm12581_vm1, %v6210_v13 }
 0x6f2   : > { %6221 = vst.msk [vmem:[%s473_s18 + $0x18] sm:$0xff] %vm12582_vm2, %v6213_v32 }
 0x6f3   : > { %6220 = vst.msk [vmem:[%s473_s18 + $0x10] sm:$0xff] %vm12583_vm4, %v6212_v58 }
 0x6f4   : > { %6223 = vst.msk [vmem:[%s473_s18 + $0x28] sm:$0xff] %vm12584_vm6, %v6215_v63 }
 0x6f5   : > { %6222 = vst.msk [vmem:[%s473_s18 + $0x20] sm:$0xff] %vm12585_vm9, %v6214_v9 }
 0x6f6   : > { %6225 = vst.msk [vmem:[%s473_s18 + $0x38] sm:$0xff] %vm12586_vm3, %v6217_v0 }
 0x6f7   : > { %6224 = vst.msk [vmem:[%s473_s18 + $0x30] sm:$0xff] %vm12587_vm13, %v6216_v18 }
 0x6f8   : > { %8263 = shalt.err (!%p8260_p0)
}
 0x6f9   : > { %s8264_s21 = scalar_lea.hbm %s11801_s12, 1024  ;;  %s8268_s23 = scalar_lea.hbm %s12579_s24, 2048 }
 0x6fa   : > { %p8265_p5 = scmp.ne.s32.totalorder %s11801_s12, %s8264_s21  ;;  %p8269_p4 = scmp.lt.s32.totalorder %s11801_s12, %s12579_s24 }
 0x6fb   : > { %p8270_p6 = scmp.lt.s32.totalorder %s8268_s23, %s8264_s21 }
 0x6fc   : > { %p8266_p2 = pnand %p8265_p5, %p12588_p11 }
 0x6fd   : > { %p8271_p8 = por %p8270_p6, %p8269_p4 }
 0x6fe   : > { %p8267_p1 = pneg %p8266_p2 }
 0x700   : > { %p8272_p3 = pnand %p8271_p8, %p8267_p1 }
 0x702   : > { %8275 = shalt.err (!%p8272_p3)
}
 0x703   : > { %s8329_s8 = smov 128   ;;  %s8330_s3 = smov 8  }
 0x704   : > { %8101 = dma.vmem_to_hbm [thread:$0]  (%p12588_p11), %s11803_s19, 1024, %s11801_s12, %s6227_s29, %s8329_s8, %s8329_s8, %s8330_s3  }
 0x705 PF: > { %s12589_s13 = sld [smem:[#allocation12_spill]]  ;;  %p12592_p9 = scmp.ge.s32.totalorder %s8318_s28, 2 }
 0x706   : > { %s12590_s16 = sld [smem:[#allocation13_spill]] }
 0x70b   : > { %s6255_s17 = sand.u32 1, %s12589_s13  }
 0x70c   : > { %p12591_p7 = scmp.ne.s32.totalorder %s12590_s16, 0  ;;  %s6256_s21 = scalar_lea.sflag [#allocation5], %s6255_s17 }
 0x70e   : > { %p8112_p10 = pnand %p12592_p9, %p12591_p7 }
 0x710   : > { %p8113_p12 = pneg %p8112_p10 }
 0x712   : > { %8301 = dma.done.wait (%p8113_p12), %s6256_s21, 1024  }
 0x713   : > { %8303 = vsyncadd (%p8113_p12), %s6256_s21, 4294966272  ;;  %s12593_s28 = sld [smem:[#allocation14_spill]]  ;;  %s12594_s25 = smov %s8310_s26 }
 0x714   : > { %s12595_s26 = smov %s8314_s27  ;;  %s12596_s27 = smov %s8475_s20 }
 0x719   : > { %p27_p13 = scmp.ge.s32.totalorder %s12593_s28, 4  }
 0x71b   :  { %29 = sbr.rel (!%p27_p13) target bundleno = 11 (0xb), region = 121 }
 0x720   :  { %6261 = vsyncpa [#allocation4], 1 }
 0x721   :  { %6263 = vsyncpa [#allocation4 + $0x1], 1 }
 0x722   :  { %6264 = vsyncpa [#allocation7], 1 }
 0x723   :  { %6265 = vsyncpa [#allocation5], 1 }
 0x724   :  { %6267 = vsyncpa [#allocation5 + $0x1], 1 }

</bundles_post_ra>
